<compile_context>
chip_gen: v7x
topology: tpu7x:2x2x1
jax: 0.10.0
libtpu: 0.0.40
codegen_flags: <defaults>
</compile_context>

<pallas_src>
import functools

import jax
import jax.numpy as jnp
from jax import lax
from jax.experimental import pallas as pl
from jax.experimental.pallas import tpu as pltpu

EPS = 1e-5


def _round_up(x, m):
    return (x + m - 1) // m * m


@functools.lru_cache(maxsize=None)
def _vmem_limit_bytes():
    limit = 64 * 1024 * 1024
    try:
        cap = int(pltpu.get_tpu_info().vmem_capacity_bytes)
        limit = max(32 * 1024 * 1024, min(cap * 3 // 4, 96 * 1024 * 1024))
    except Exception:
        pass
    return limit


def _pick_th(H, W, Wp, cinp, cop, pool):
    """Largest row tile TH (dividing H, even when pooling) that fits a VMEM budget."""
    def vmem_need(th):
        return ((th + 3) * Wp * cinp * 2 * 2      # halo row inputs, bf16, 2 buffers
                + th * Wp * cinp * 2 * 2          # headroom for tap-slice copies
                + th * Wp * cop * 4               # f32 accumulator
                + th * W * cop * 2 * 2            # output slab, 2 buffers
                + 9 * cinp * cop * 2 * 2)         # weights, 2 buffers

    budget = 12 * 1024 * 1024
    if vmem_need(H) <= budget:
        return H                                  # whole image per grid step
    for th in range(min(16, H), 0, -1):           # multi-ref halo path: <= 19 refs
        if H % th:
            continue
        if pool and th % 2:
            continue
        if vmem_need(th) <= budget:
            return th
    return 2 if pool else 1


# ------------------------------------------------------------------
# Conv3x3 + folded BatchNorm + ReLU (+ optional fused 2x2 maxpool)
# ------------------------------------------------------------------
def _conv_kernel(*refs, n_row_refs, th, w_out, wp, cinp, cop, pool):
    """row refs: n_row_refs blocks (1, R, Wp, Cin) covering padded rows
                 [i*TH, i*TH + TH + 3) for batch n (R*n_row_refs == TH+3).
       w_ref   : (9, Cin, Cout) bf16 BN-folded taps, tap t = dy*3 + dx.
       b_ref   : (1, Cout) f32.
       outputs : (1, TH, W, Cout) bf16, or pooled (1, TH/2, W/2, Cout) bf16 vals
                 + same-shape int8 indices when pool=True.
    """
    row_refs = refs[:n_row_refs]
    w_ref = refs[n_row_refs]
    b_ref = refs[n_row_refs + 1]
    outs = refs[n_row_refs + 2:]

    # Assemble the halo slab and flatten (rows, Wp) -> M so that every 3x3 tap
    # is a contiguous M-slice (constant shift dy*Wp + dx) of one buffer.
    pieces = [r[0] for r in row_refs]                       # (R, Wp, Cin) each
    slab = pieces[0] if len(pieces) == 1 else jnp.concatenate(pieces, axis=0)
    s2 = slab.reshape(-1, cinp)                             # ((TH+3)*Wp, Cin)

    m_rows = th * wp
    acc = None
    for dy in range(3):
        for dx in range(3):
            off = dy * wp + dx
            lhs = s2[off:off + m_rows, :]                   # contiguous M-slice
            part = jnp.dot(lhs, w_ref[dy * 3 + dx],
                           preferred_element_type=jnp.float32)
            acc = part if acc is None else acc + part

    y = jnp.maximum(acc + b_ref[...], 0.0)                  # hoisted f32 epilogue
    y = y.reshape(th, wp, cop)[:, :w_out, :]                # drop seam columns
    y = y.astype(jnp.bfloat16)

    if not pool:
        outs[0][0] = y
        return

    # Fused 2x2 maxpool (+ PyTorch-style window-local argmax, int8).
    v_ref, i_ref = outs
    y4 = y.reshape(th // 2, 2, w_out, cop)
    top, bot = y4[:, 0], y4[:, 1]                           # even / odd rows
    tr = top.reshape(th // 2, w_out // 2, 2 * cop)          # (w, c) -> (w/2, 2c)
    br = bot.reshape(th // 2, w_out // 2, 2 * cop)
    a, b = tr[..., :cop], tr[..., cop:]
    c, d = br[..., :cop], br[..., cop:]
    m = jnp.maximum(jnp.maximum(a, b), jnp.maximum(c, d))
    idx = jnp.where(a == m, 0,
          jnp.where(b == m, 1,
          jnp.where(c == m, 2, 3))).astype(jnp.int8)
    v_ref[0] = m
    i_ref[0] = idx


def conv3x3_bn_relu(x, w, b, gamma, beta, mean, var, *, pool=False, th=None):
    """x: (N, H, W, Cx) with Cx >= Cin (channels [Cin:] must be zero).

    Returns (N, H, W, Cop) bf16 with Cop = round_up(Cout, 128); channels
    [Cout:] are exactly zero.  With pool=True the 2x2 maxpool is fused and the
    function returns (pooled_vals, pooled_idx_int8), each (N, H/2, W/2, Cop).
    """
    N, H, W, Cx = x.shape
    kh, kw, Cin, Cout = w.shape
    assert (kh, kw) == (3, 3) and Cx >= Cin
    if pool:
        assert H % 2 == 0 and W % 2 == 0

    # Fold conv bias + BatchNorm(eval) into the weights / a per-channel bias.
    scale = gamma * lax.rsqrt(var + EPS)
    bias = (beta + (b - mean) * scale).astype(jnp.float32)

    Cxp = _round_up(max(Cx, 8), 8)          # lane-pad tiny input channel counts
    Cop = _round_up(Cout, 128)              # lane-dense outputs (21/64 -> 128)
    Wp = _round_up(W + 2, 8)                # padded width, sublane aligned

    wk = jnp.pad(w * scale, ((0, 0), (0, 0), (0, Cxp - Cin), (0, Cop - Cout)))
    wk = wk.reshape(9, Cxp, Cop).astype(jnp.bfloat16)
    biasp = jnp.pad(bias, (0, Cop - Cout)).reshape(1, Cop)

    # Single spatially padded bf16 copy (1 top / 2 bottom rows, 1 left col,
    # right cols up to Wp).  No 9x im2col in HBM.
    xp = jnp.pad(x.astype(jnp.bfloat16),
                 ((0, 0), (1, 2), (1, Wp - W - 1), (0, Cxp - Cx)))

    if th is None:
        th = _pick_th(H, W, Wp, Cxp, Cop, pool)
    assert H % th == 0 and (not pool or th % 2 == 0)

    if th == H:  # whole image per grid step: single full-extent row block
        n_row_refs = 1
        row_specs = [pl.BlockSpec((1, H + 3, Wp, Cxp), lambda n, i: (n, 0, 0, 0))]
    else:        # TH+3 row-shifted 1-row blocks express the halo without overlap
        n_row_refs = th + 3

        def _row_spec(d):
            return pl.BlockSpec((1, 1, Wp, Cxp),
                                lambda n, i, d=d: (n, i * th + d, 0, 0))

        row_specs = [_row_spec(d) for d in range(th + 3)]

    in_specs = row_specs + [
        pl.BlockSpec((9, Cxp, Cop), lambda n, i: (0, 0, 0)),
        pl.BlockSpec((1, Cop), lambda n, i: (0, 0)),
    ]

    if pool:
        out_shape = (jax.ShapeDtypeStruct((N, H // 2, W // 2, Cop), jnp.bfloat16),
                     jax.ShapeDtypeStruct((N, H // 2, W // 2, Cop), jnp.int8))
        out_specs = (pl.BlockSpec((1, th // 2, W // 2, Cop), lambda n, i: (n, i, 0, 0)),
                     pl.BlockSpec((1, th // 2, W // 2, Cop), lambda n, i: (n, i, 0, 0)))
    else:
        out_shape = jax.ShapeDtypeStruct((N, H, W, Cop), jnp.bfloat16)
        out_specs = pl.BlockSpec((1, th, W, Cop), lambda n, i: (n, i, 0, 0))

    kern = functools.partial(_conv_kernel, n_row_refs=n_row_refs, th=th,
                             w_out=W, wp=Wp, cinp=Cxp, cop=Cop, pool=pool)

    return pl.pallas_call(
        kern,
        grid=(N, H // th),
        in_specs=in_specs,
        out_specs=out_specs,
        out_shape=out_shape,
        compiler_params=pltpu.CompilerParams(
            dimension_semantics=("parallel", "parallel"),
            vmem_limit_bytes=_vmem_limit_bytes(),
        ),
    )(*([xp] * n_row_refs), wk, biasp)


# ------------------------------------------------------------------
# MaxUnpool2d(2, 2)
# ------------------------------------------------------------------
def _maxunpool_kernel(v_ref, i_ref, o_ref):
    # v_ref/i_ref: (1, 1, Wh, C); o_ref: (1, 2, Wh, 2C)
    v = v_ref[0, 0]
    idx = i_ref[0, 0].astype(jnp.int32)
    z = jnp.zeros_like(v)
    o_ref[0, 0] = jnp.concatenate(
        [jnp.where(idx == 0, v, z), jnp.where(idx == 1, v, z)], axis=-1)
    o_ref[0, 1] = jnp.concatenate(
        [jnp.where(idx == 2, v, z), jnp.where(idx == 3, v, z)], axis=-1)


def maxunpool2x2(v, idx, out_shape):
    N, H, W, C = out_shape
    Hh, Wh = H // 2, W // 2
    assert v.shape == (N, Hh, Wh, C) and idx.shape == v.shape
    out = pl.pallas_call(
        _maxunpool_kernel,
        out_shape=jax.ShapeDtypeStruct((N, H, Wh, 2 * C), v.dtype),
        grid=(N, Hh),
        in_specs=[pl.BlockSpec((1, 1, Wh, C), lambda n, i: (n, i, 0, 0)),
                  pl.BlockSpec((1, 1, Wh, C), lambda n, i: (n, i, 0, 0))],
        out_specs=pl.BlockSpec((1, 2, Wh, 2 * C), lambda n, i: (n, i, 0, 0)),
        compiler_params=pltpu.CompilerParams(
            dimension_semantics=("parallel", "parallel"),
            vmem_limit_bytes=_vmem_limit_bytes(),
        ),
    )(v, idx)
    return out.reshape(N, H, W, C)


# ------------------------------------------------------------------
# Parameters (deterministic synthetic init; vgg16 weight import not applicable)
# ------------------------------------------------------------------
def make_cbr_params(key, cin, cout):
    kw, kb, kg, kbe, km, kv = jax.random.split(key, 6)
    std = (2.0 / (9 * cin)) ** 0.5
    return dict(
        w=jax.random.normal(kw, (3, 3, cin, cout), jnp.float32) * std,
        b=jax.random.normal(kb, (cout,), jnp.float32) * 0.01,
        gamma=1.0 + 0.1 * jax.random.normal(kg, (cout,), jnp.float32),
        beta=0.1 * jax.random.normal(kbe, (cout,), jnp.float32),
        mean=0.1 * jax.random.normal(km, (cout,), jnp.float32),
        var=1.0 + 0.1 * jax.random.uniform(kv, (cout,), jnp.float32),
    )


def init_segnet_params(key, in_channels=3, classes=21):
    down_cfg = [
        [(in_channels, 64), (64, 64)],
        [(64, 128), (128, 128)],
        [(128, 256), (256, 256), (256, 256)],
        [(256, 512), (512, 512), (512, 512)],
        [(512, 512), (512, 512), (512, 512)],
    ]
    up_cfg = [
        [(512, 512), (512, 512), (512, 512)],   # up5
        [(512, 512), (512, 512), (512, 256)],   # up4
        [(256, 256), (256, 256), (256, 128)],   # up3
        [(128, 128), (128, 64)],                # up2
        [(64, 64), (64, classes)],              # up1
    ]
    keys = iter(jax.random.split(key, 64))
    block = lambda cfg: [make_cbr_params(next(keys), ci, co) for ci, co in cfg]
    return {"down": [block(c) for c in down_cfg],
            "up": [block(c) for c in up_cfg]}


# ------------------------------------------------------------------
# SegNet forward (Pallas) and pure-JAX reference
# ------------------------------------------------------------------
def segnet_forward(params, x):
    """Returns (N, H, W, Cpad) bf16; the true class logits are [..., :classes]."""
    skips = []
    h = x
    for blk in params["down"]:
        for p in blk[:-1]:
            h = conv3x3_bn_relu(h, **p)
        h, idx = conv3x3_bn_relu(h, **blk[-1], pool=True)   # fused conv+pool
        n, hh, wh, c = h.shape
        skips.append((idx, (n, 2 * hh, 2 * wh, c)))
    for blk, (idx, shape) in zip(params["up"], reversed(skips)):
        h = maxunpool2x2(h, idx, shape)
        for p in blk:
            h = conv3x3_bn_relu(h, **p)
    return h


def _conv_ref(x, w, b, gamma, beta, mean, var):
    scale = gamma * lax.rsqrt(var + EPS)
    bias = beta + (b - mean) * scale
    y = lax.conv_general_dilated(
        x.astype(jnp.bfloat16), (w * scale).astype(jnp.bfloat16), (1, 1), "SAME",
        dimension_numbers=("NHWC", "HWIO", "NHWC"),
        preferred_element_type=jnp.float32)
    return jnp.maximum(y + bias, 0.0).astype(jnp.bfloat16)


def _pool_ref(x):
    N, H, W, C = x.shape
    a = x[:, 0::2, 0::2, :]
    b = x[:, 0::2, 1::2, :]
    c = x[:, 1::2, 0::2, :]
    d = x[:, 1::2, 1::2, :]
    m = jnp.maximum(jnp.maximum(a, b), jnp.maximum(c, d))
    idx = jnp.where(a == m, 0, jnp.where(b == m, 1, jnp.where(c == m, 2, 3)))
    return m, idx.astype(jnp.int32), (N, H, W, C)


def _unpool_ref(v, idx, out_shape):
    N, H, W, C = out_shape
    idx = idx.astype(jnp.int32)
    z = jnp.zeros_like(v)
    outs = [jnp.where(idx == k, v, z) for k in range(4)]
    row0 = jnp.stack(outs[:2], axis=3)            # (N, Hh, Wh, 2, C)
    row1 = jnp.stack(outs[2:], axis=3)
    return jnp.stack([row0, row1], axis=2).reshape(N, H, W, C)


def segnet_forward_ref(params, x):
    skips = []
    h = x
    for blk in params["down"]:
        for p in blk:
            h = _conv_ref(h, **p)
        h, idx, shape = _pool_ref(h)
        skips.append((idx, shape))
    for blk, (idx, shape) in zip(params["up"], reversed(skips)):
        h = _unpool_ref(h, idx, shape)
        for p in blk:
            h = _conv_ref(h, **p)
    return h


# ------------------------------------------------------------------
if __name__ == "__main__":
    key = jax.random.PRNGKey(0)
    kx, kp, k1, k2 = jax.random.split(key, 4)

    # ---- per-kernel unit checks (identical inputs -> deterministic) ----
    xc = jax.random.normal(k1, (2, 16, 16, 64), jnp.float32)
    pc = make_cbr_params(k2, 64, 64)
    want = _conv_ref(xc, **pc).astype(jnp.float32)
    for th in (None, 4):                       # whole-image and halo-row paths
        got = conv3x3_bn_relu(xc, **pc, th=th)[..., :64].astype(jnp.float32)
        err = float(jnp.max(jnp.abs(got - want)) / (jnp.max(jnp.abs(want)) + 1e-6))
        assert err < 1e-2, f"conv kernel mismatch (th={th}): {err}"

    # Fused conv+pool must match pooling the Pallas conv output exactly (both
    # pool the same deterministic bf16 tensor with the same tie-break order).
    y_np = conv3x3_bn_relu(xc, **pc)
    v_f, i_f = conv3x3_bn_relu(xc, **pc, pool=True)
    v_r, i_r, shp = _pool_ref(y_np)
    assert jnp.array_equal(v_f, v_r), "fused maxpool values mismatch"
    assert jnp.array_equal(i_f.astype(jnp.int32), i_r), "fused maxpool indices mismatch"

    u_p = maxunpool2x2(v_f, i_f, shp)
    u_r = _unpool_ref(v_r, i_r, shp)
    assert jnp.array_equal(u_p, u_r), "maxunpool mismatch"

    # ---- end-to-end SegNet forward ----
    N, H, W, CIN, CLASSES = 2, 32, 32, 3, 21   # 32x32 so 5 maxpools are valid
    x = jax.random.normal(kx, (N, H, W, CIN), jnp.float32)
    params = init_segnet_params(kp, in_channels=CIN, classes=CLASSES)

    out_pad = jax.block_until_ready(jax.jit(segnet_forward)(params, x))
    out = out_pad[..., :CLASSES].astype(jnp.float32)
    ref = jax.jit(segnet_forward_ref)(params, x).astype(jnp.float32)

    assert out.shape == (N, H, W, CLASSES), out.shape
    # Mean (not max) metric: the Pallas and reference paths may, very rarely,
    # pick a different (equally valid) argmax in a 2x2 pool window on near-tied
    # bf16 values, relocating one activation; a max metric would be flaky on
    # that while a mean metric still catches any real bookkeeping/compute bug.
    mean_err = float(jnp.mean(jnp.abs(out - ref)) / (jnp.mean(jnp.abs(ref)) + 1e-6))
    assert mean_err < 5e-2, f"segnet forward mismatch: mean rel err {mean_err}"
    print("KERNEL_OK")
</pallas_src>

<mosaic_0001>
module attributes {stable_mosaic.version = 11 : i64} {
  func.func @_conv_kernel(%arg0: i32, %arg1: i32, %arg2: memref<1x19x24x64xbf16, #tpu.memory_space<vmem>>, %arg3: memref<9x64x128xbf16, #tpu.memory_space<vmem>>, %arg4: memref<1x128xf32, #tpu.memory_space<vmem>>, %arg5: memref<1x16x16x128xbf16, #tpu.memory_space<vmem>>) attributes {dimension_semantics = [#tpu.dimension_semantics<parallel>, #tpu.dimension_semantics<parallel>], iteration_bounds = array<i64: 2, 1>, scalar_prefetch = 0 : i64, scratch_operands = 0 : i64, tpu.core_type = #tpu.core_type<tc>, window_params = [{transform_indices = @transform_0, window_bounds = array<i64: 1, 19, 24, 64>}, {pipeline_mode = #tpu.pipeline_mode<synchronous>, transform_indices = @transform_1, window_bounds = array<i64: 9, 64, 128>}, {pipeline_mode = #tpu.pipeline_mode<synchronous>, transform_indices = @transform_2, window_bounds = array<i64: 1, 128>}, {transform_indices = @transform_3, window_bounds = array<i64: 1, 16, 16, 128>}]} {
    %c0 = arith.constant 0 : index
    %c0_0 = arith.constant 0 : index
    %c0_1 = arith.constant 0 : index
    %c0_2 = arith.constant 0 : index
    %0 = vector.load %arg2[%c0, %c0_0, %c0_1, %c0_2] : memref<1x19x24x64xbf16, #tpu.memory_space<vmem>>, vector<1x19x24x64xbf16>
    %1 = vector.shape_cast %0 : vector<1x19x24x64xbf16> to vector<19x24x64xbf16>
    %2 = vector.shape_cast %1 : vector<19x24x64xbf16> to vector<456x64xbf16>
    %3 = vector.extract_strided_slice %2 {offsets = [0, 0], sizes = [384, 64], strides = [1, 1]} : vector<456x64xbf16> to vector<384x64xbf16>
    %c0_3 = arith.constant 0 : index
    %c0_4 = arith.constant 0 : index
    %c0_5 = arith.constant 0 : index
    %4 = vector.load %arg3[%c0_3, %c0_4, %c0_5] : memref<9x64x128xbf16, #tpu.memory_space<vmem>>, vector<1x64x128xbf16>
    %5 = vector.shape_cast %4 : vector<1x64x128xbf16> to vector<64x128xbf16>
    %cst = arith.constant dense<0.000000e+00> : vector<384x128xf32>
    %6 = tpu.matmul %3, %5, %cst {dimension_numbers = #tpu.dot_dimension_numbers<[1], [0], [0], [1], [0, 0, 1, 1], [], []>} : vector<384x64xbf16>, vector<64x128xbf16>, vector<384x128xf32> -> vector<384x128xf32>
    %7 = vector.extract_strided_slice %2 {offsets = [1, 0], sizes = [384, 64], strides = [1, 1]} : vector<456x64xbf16> to vector<384x64xbf16>
    %c1 = arith.constant 1 : index
    %c0_6 = arith.constant 0 : index
    %c0_7 = arith.constant 0 : index
    %8 = vector.load %arg3[%c1, %c0_6, %c0_7] : memref<9x64x128xbf16, #tpu.memory_space<vmem>>, vector<1x64x128xbf16>
    %9 = vector.shape_cast %8 : vector<1x64x128xbf16> to vector<64x128xbf16>
    %cst_8 = arith.constant dense<0.000000e+00> : vector<384x128xf32>
    %10 = tpu.matmul %7, %9, %cst_8 {dimension_numbers = #tpu.dot_dimension_numbers<[1], [0], [0], [1], [0, 0, 1, 1], [], []>} : vector<384x64xbf16>, vector<64x128xbf16>, vector<384x128xf32> -> vector<384x128xf32>
    %11 = arith.addf %6, %10 : vector<384x128xf32>
    %12 = vector.extract_strided_slice %2 {offsets = [2, 0], sizes = [384, 64], strides = [1, 1]} : vector<456x64xbf16> to vector<384x64xbf16>
    %c2 = arith.constant 2 : index
    %c0_9 = arith.constant 0 : index
    %c0_10 = arith.constant 0 : index
    %13 = vector.load %arg3[%c2, %c0_9, %c0_10] : memref<9x64x128xbf16, #tpu.memory_space<vmem>>, vector<1x64x128xbf16>
    %14 = vector.shape_cast %13 : vector<1x64x128xbf16> to vector<64x128xbf16>
    %cst_11 = arith.constant dense<0.000000e+00> : vector<384x128xf32>
    %15 = tpu.matmul %12, %14, %cst_11 {dimension_numbers = #tpu.dot_dimension_numbers<[1], [0], [0], [1], [0, 0, 1, 1], [], []>} : vector<384x64xbf16>, vector<64x128xbf16>, vector<384x128xf32> -> vector<384x128xf32>
    %16 = arith.addf %11, %15 : vector<384x128xf32>
    %17 = vector.extract_strided_slice %2 {offsets = [24, 0], sizes = [384, 64], strides = [1, 1]} : vector<456x64xbf16> to vector<384x64xbf16>
    %c3 = arith.constant 3 : index
    %c0_12 = arith.constant 0 : index
    %c0_13 = arith.constant 0 : index
    %18 = vector.load %arg3[%c3, %c0_12, %c0_13] : memref<9x64x128xbf16, #tpu.memory_space<vmem>>, vector<1x64x128xbf16>
    %19 = vector.shape_cast %18 : vector<1x64x128xbf16> to vector<64x128xbf16>
    %cst_14 = arith.constant dense<0.000000e+00> : vector<384x128xf32>
    %20 = tpu.matmul %17, %19, %cst_14 {dimension_numbers = #tpu.dot_dimension_numbers<[1], [0], [0], [1], [0, 0, 1, 1], [], []>} : vector<384x64xbf16>, vector<64x128xbf16>, vector<384x128xf32> -> vector<384x128xf32>
    %21 = arith.addf %16, %20 : vector<384x128xf32>
    %22 = vector.extract_strided_slice %2 {offsets = [25, 0], sizes = [384, 64], strides = [1, 1]} : vector<456x64xbf16> to vector<384x64xbf16>
    %c4 = arith.constant 4 : index
    %c0_15 = arith.constant 0 : index
    %c0_16 = arith.constant 0 : index
    %23 = vector.load %arg3[%c4, %c0_15, %c0_16] : memref<9x64x128xbf16, #tpu.memory_space<vmem>>, vector<1x64x128xbf16>
    %24 = vector.shape_cast %23 : vector<1x64x128xbf16> to vector<64x128xbf16>
    %cst_17 = arith.constant dense<0.000000e+00> : vector<384x128xf32>
    %25 = tpu.matmul %22, %24, %cst_17 {dimension_numbers = #tpu.dot_dimension_numbers<[1], [0], [0], [1], [0, 0, 1, 1], [], []>} : vector<384x64xbf16>, vector<64x128xbf16>, vector<384x128xf32> -> vector<384x128xf32>
    %26 = arith.addf %21, %25 : vector<384x128xf32>
    %27 = vector.extract_strided_slice %2 {offsets = [26, 0], sizes = [384, 64], strides = [1, 1]} : vector<456x64xbf16> to vector<384x64xbf16>
    %c5 = arith.constant 5 : index
    %c0_18 = arith.constant 0 : index
    %c0_19 = arith.constant 0 : index
    %28 = vector.load %arg3[%c5, %c0_18, %c0_19] : memref<9x64x128xbf16, #tpu.memory_space<vmem>>, vector<1x64x128xbf16>
    %29 = vector.shape_cast %28 : vector<1x64x128xbf16> to vector<64x128xbf16>
    %cst_20 = arith.constant dense<0.000000e+00> : vector<384x128xf32>
    %30 = tpu.matmul %27, %29, %cst_20 {dimension_numbers = #tpu.dot_dimension_numbers<[1], [0], [0], [1], [0, 0, 1, 1], [], []>} : vector<384x64xbf16>, vector<64x128xbf16>, vector<384x128xf32> -> vector<384x128xf32>
    %31 = arith.addf %26, %30 : vector<384x128xf32>
    %32 = vector.extract_strided_slice %2 {offsets = [48, 0], sizes = [384, 64], strides = [1, 1]} : vector<456x64xbf16> to vector<384x64xbf16>
    %c6 = arith.constant 6 : index
    %c0_21 = arith.constant 0 : index
    %c0_22 = arith.constant 0 : index
    %33 = vector.load %arg3[%c6, %c0_21, %c0_22] : memref<9x64x128xbf16, #tpu.memory_space<vmem>>, vector<1x64x128xbf16>
    %34 = vector.shape_cast %33 : vector<1x64x128xbf16> to vector<64x128xbf16>
    %cst_23 = arith.constant dense<0.000000e+00> : vector<384x128xf32>
    %35 = tpu.matmul %32, %34, %cst_23 {dimension_numbers = #tpu.dot_dimension_numbers<[1], [0], [0], [1], [0, 0, 1, 1], [], []>} : vector<384x64xbf16>, vector<64x128xbf16>, vector<384x128xf32> -> vector<384x128xf32>
    %36 = arith.addf %31, %35 : vector<384x128xf32>
    %37 = vector.extract_strided_slice %2 {offsets = [49, 0], sizes = [384, 64], strides = [1, 1]} : vector<456x64xbf16> to vector<384x64xbf16>
    %c7 = arith.constant 7 : index
    %c0_24 = arith.constant 0 : index
    %c0_25 = arith.constant 0 : index
    %38 = vector.load %arg3[%c7, %c0_24, %c0_25] : memref<9x64x128xbf16, #tpu.memory_space<vmem>>, vector<1x64x128xbf16>
    %39 = vector.shape_cast %38 : vector<1x64x128xbf16> to vector<64x128xbf16>
    %cst_26 = arith.constant dense<0.000000e+00> : vector<384x128xf32>
    %40 = tpu.matmul %37, %39, %cst_26 {dimension_numbers = #tpu.dot_dimension_numbers<[1], [0], [0], [1], [0, 0, 1, 1], [], []>} : vector<384x64xbf16>, vector<64x128xbf16>, vector<384x128xf32> -> vector<384x128xf32>
    %41 = arith.addf %36, %40 : vector<384x128xf32>
    %42 = vector.extract_strided_slice %2 {offsets = [50, 0], sizes = [384, 64], strides = [1, 1]} : vector<456x64xbf16> to vector<384x64xbf16>
    %c8 = arith.constant 8 : index
    %c0_27 = arith.constant 0 : index
    %c0_28 = arith.constant 0 : index
    %43 = vector.load %arg3[%c8, %c0_27, %c0_28] : memref<9x64x128xbf16, #tpu.memory_space<vmem>>, vector<1x64x128xbf16>
    %44 = vector.shape_cast %43 : vector<1x64x128xbf16> to vector<64x128xbf16>
    %cst_29 = arith.constant dense<0.000000e+00> : vector<384x128xf32>
    %45 = tpu.matmul %42, %44, %cst_29 {dimension_numbers = #tpu.dot_dimension_numbers<[1], [0], [0], [1], [0, 0, 1, 1], [], []>} : vector<384x64xbf16>, vector<64x128xbf16>, vector<384x128xf32> -> vector<384x128xf32>
    %46 = arith.addf %41, %45 : vector<384x128xf32>
    %c0_30 = arith.constant 0 : index
    %c0_31 = arith.constant 0 : index
    %47 = vector.load %arg4[%c0_30, %c0_31] : memref<1x128xf32, #tpu.memory_space<vmem>>, vector<1x128xf32>
    %48 = vector.broadcast %47 : vector<1x128xf32> to vector<384x128xf32>
    %49 = arith.addf %46, %48 : vector<384x128xf32>
    %cst_32 = arith.constant 0.000000e+00 : f32
    %50 = vector.broadcast %cst_32 : f32 to vector<384x128xf32>
    %51 = arith.maximumf %49, %50 : vector<384x128xf32>
    %52 = vector.shape_cast %51 : vector<384x128xf32> to vector<16x24x128xf32>
    %53 = vector.extract_strided_slice %52 {offsets = [0, 0, 0], sizes = [16, 16, 128], strides = [1, 1, 1]} : vector<16x24x128xf32> to vector<16x16x128xf32>
    %54 = arith.truncf %53 : vector<16x16x128xf32> to vector<16x16x128xbf16>
    %c0_33 = arith.constant 0 : index
    %c0_34 = arith.constant 0 : index
    %c0_35 = arith.constant 0 : index
    %c0_36 = arith.constant 0 : index
    %55 = vector.load %arg5[%c0_33, %c0_34, %c0_35, %c0_36] : memref<1x16x16x128xbf16, #tpu.memory_space<vmem>>, vector<1x16x16x128xbf16>
    %56 = vector.shape_cast %55 : vector<1x16x16x128xbf16> to vector<16x16x128xbf16>
    %57 = vector.shape_cast %54 : vector<16x16x128xbf16> to vector<1x16x16x128xbf16>
    tpu.vector_store %arg5[%c0_33, %c0_34, %c0_35, %c0_36], %57 {strides = array<i32>} : memref<1x16x16x128xbf16, #tpu.memory_space<vmem>>, vector<1x16x16x128xbf16>,
    return
  }
  func.func @transform_0(%arg0: i32, %arg1: i32) -> (i32, i32, i32, i32) {
    %c0_i32 = arith.constant 0 : i32
    %c0_i32_0 = arith.constant 0 : i32
    %c0_i32_1 = arith.constant 0 : i32
    %c0_i32_2 = arith.constant 0 : i32
    return %arg0, %c0_i32, %c0_i32_0, %c0_i32_1 : i32, i32, i32, i32
  }
  func.func @transform_1(%arg0: i32, %arg1: i32) -> (i32, i32, i32) {
    %c0_i32 = arith.constant 0 : i32
    %c0_i32_0 = arith.constant 0 : i32
    %c0_i32_1 = arith.constant 0 : i32
    %c0_i32_2 = arith.constant 0 : i32
    return %c0_i32, %c0_i32_0, %c0_i32_1 : i32, i32, i32
  }
  func.func @transform_2(%arg0: i32, %arg1: i32) -> (i32, i32) {
    %c0_i32 = arith.constant 0 : i32
    %c0_i32_0 = arith.constant 0 : i32
    %c0_i32_1 = arith.constant 0 : i32
    return %c0_i32, %c0_i32_0 : i32, i32
  }
  func.func @transform_3(%arg0: i32, %arg1: i32) -> (i32, i32, i32, i32) {
    %c0_i32 = arith.constant 0 : i32
    %c0_i32_0 = arith.constant 0 : i32
    %c0_i32_1 = arith.constant 0 : i32
    return %arg0, %arg1, %c0_i32, %c0_i32_0 : i32, i32, i32, i32
  }
}

</mosaic_0001>

<bundles_post_ra>
// kernel: tpu_custom_call.1
= control target key start
LH: loop header
LB: loop body
LE: loop exit
PB: predicated region body
PF: predicated region fallthrough
CT: control target
= control target key end

     0   :  { %8 = vsyncpa [#allocation3], 0  ;;  %s7613_s0 = inlined_call_operand.hbm [shape: bf16[2,19,24,64], index: 0, kind: input, shape index: {}]   ;;  %s7614_s1 = inlined_call_operand.hbm [shape: bf16[9,64,128], index: 1, kind: input, shape index: {}]   ;;  %s7615_s2 = inlined_call_operand.hbm [shape: f32[1,128], index: 2, kind: input, shape index: {}]   ;;  %s7616_s3 = inlined_call_operand.hbm [shape: bf16[2,16,16,128], index: 3, kind: output, shape index: {}]  }
   0x1   :  { %10 = vsyncpa [#allocation3 + $0x1], 0 }
   0x2   :  { %11 = vsyncpa [#allocation6], 0 }
   0x3   :  { %12 = vsyncpa [#allocation4], 0 }
   0x4   :  { %14 = vsyncpa [#allocation4 + $0x1], 0  ;;  %s5777_s12 = smov 0   ;;  %s5779_s13 = smov 0  }
   0x5   :  { %s5781_s14 = smov 0   ;;  %s5783_s15 = smov 0  }
   0x6   :  { %s5785_s16 = smov 0   ;;  %s5787_s17 = smov 0  }
   0x7 LB: > { %s4147_s18 = sadd.s32 4294967295, %s5747_s17   ;;  %s4148_s19 = sadd.s32 4294967294, %s5747_s17   ;;  %s5747_s17 = sphi %s5787_s17, %s20_s17   ;;  %s5743_s16 = sphi %s5785_s16, %s7914_s16   ;;  %s5739_s15 = sphi %s5783_s15, %s7913_s15   ;;  %s5735_s14 = sphi %s5781_s14, %s7912_s14   ;;  %s5731_s13 = sphi %s5779_s13, %s7911_s13   ;;  %s5727_s12 = sphi %s5777_s12, %s7910_s12  }
   0x8   : > { %p52_p0 = scmp.ne.s32.totalorder %s5731_s13, %s5727_s12  ;;  %p5811_p1 = scmp.eq.s32.totalorder %s4147_s18, 0 }
   0x9   : > { %p5815_p2 = scmp.eq.s32.totalorder %s4147_s18, 1  ;;  %p126_p3 = scmp.eq.s32.totalorder %s4148_s19, 1 }
   0xa   : > { %s7718_s20 = scalar_select %p5811_p1, 1, 0 }
   0xb   : > { %p5821_p4 = por %p5811_p1, %p52_p0  ;;  %p4149_p5 = scmp.ge.s32.totalorder %s5747_s17, 1 }
   0xc   : > { %p5826_p6 = por %p126_p3, %p52_p0  ;;  %p133_p7 = scmp.lt.s32.totalorder %s5747_s17, 3 }
   0xd   : > { %s7720_s22 = scalar_select %p5821_p4, 1, 0 }
   0xe   : > { %s7721_s23 = scalar_select %p5826_p6, 1, 0 }
   0xf   : > { %p5831_p8 = pnand %p4149_p5, %p133_p7  ;;  %s5749_s25 = smov [#allocation5]  }
  0x10   : > { %s145_s26 = sshll.u32 %s5749_s25, 4  ;;  %s5750_s28 = smov [#allocation7]   ;;  %s5835_s26 = int_to_ptr.vmem [resolvable:$true] %s145_s26 }
  0x11   : > { %p5409_p9 = pneg %p5831_p8  ;;  %s159_s29 = sshll.u32 %s5750_s28, 4  ;;  %s5846_s29 = int_to_ptr.vmem [resolvable:$true] %s159_s29 }
  0x12   : > { %s5575_s5 = scalar_lea.hbm %s7614_s1, 4608 }
  0x13   : > { %p5842_p11 = pnand %p5409_p9, %p5811_p1  ;;  %p5576_p12 = scmp.ne.s32.totalorder %s7614_s1, %s5575_s5 }
  0x14   : > { %p5582_p5 = scmp.lt.u32.totalorder %s5575_s5, %s7614_s1 }
  0x15   : > { %p5577_p13 = pneg %p5842_p11 }
  0x17   : > { %p5578_p0 = pnand %p5577_p13, %p5576_p12 }
  0x19   : > { %p5579_p3 = pneg %p5578_p0 }
  0x1b   : > { %p5584_p7 = pnand %p5582_p5, %p5579_p3 }
  0x1d   : > { %5587 = shalt.err (!%p5584_p7)
}
  0x1e   : > { %s5588_s10 = scalar_lea.vmem %s5835_s26, 4608  ;;  %p5596_p1 = scmp.lt.s32.totalorder %s5835_s26, %s5835_s26 }
  0x1f   : > { %p5589_p9 = scmp.ne.s32.totalorder %s5835_s26, %s5588_s10  ;;  %p5597_p12 = scmp.lt.s32.totalorder %s5588_s10, %s5588_s10 }
  0x21   : > { %p5591_p10 = pnand %p5589_p9, %p5577_p13  ;;  %p5598_p0 = por %p5597_p12, %p5596_p1 }
  0x23   : > { %p5592_p6 = pneg %p5591_p10 }
  0x25   : > { %p5599_p4 = pnand %p5598_p0, %p5592_p6 }
  0x27   : > { %5602 = shalt.err (!%p5599_p4)
}
  0x28   : > { %s5751_s11 = smov 64   ;;  %s5752_s18 = smov 4  }
  0x29   : > { %5412 = dma.hbm_to_vmem [thread:$0]  (!%p5842_p11), %s7614_s1, 4608, %s5835_s26, [#allocation6], %s5751_s11, %s5751_s11, %s5752_s18  }
  0x2a   : > { %s5603_s4 = scalar_lea.hbm %s7615_s2, 16 }
  0x2b   : > { %p5604_p1 = scmp.ne.s32.totalorder %s7615_s2, %s5603_s4  ;;  %p5610_p10 = scmp.lt.u32.totalorder %s5603_s4, %s7615_s2 }
  0x2d   : > { %p5606_p4 = pnand %p5604_p1, %p5577_p13 }
  0x2f   : > { %p5607_p6 = pneg %p5606_p4 }
  0x31   : > { %p5612_p3 = pnand %p5610_p10, %p5607_p6 }
  0x33   : > { %5615 = shalt.err (!%p5612_p3)
}
  0x34   : > { %s5616_s26 = scalar_lea.vmem %s5846_s29, 16  ;;  %s5623_s9 = scalar_lea.vmem %s5846_s29, 32 }
  0x35   : > { %p5617_p5 = scmp.ne.s32.totalorder %s5846_s29, %s5616_s26  ;;  %p5624_p12 = scmp.lt.s32.totalorder %s5846_s29, %s5846_s29 }
  0x36   : > { %p5625_p0 = scmp.lt.s32.totalorder %s5623_s9, %s5616_s26 }
  0x37   : > { %p5619_p7 = pnand %p5617_p5, %p5577_p13 }
  0x38   : > { %p5626_p1 = por %p5625_p0, %p5624_p12 }
  0x39   : > { %p5620_p9 = pneg %p5619_p7 }
  0x3b   : > { %p5627_p4 = pnand %p5626_p1, %p5620_p9 }
  0x3d   : > { %5630 = shalt.err (!%p5627_p4)
}
  0x3e   : > { %5415 = dma.hbm_to_vmem [thread:$0]  (!%p5842_p11), %s7615_s2, 16, %s5846_s29, [#allocation6]  }
  0x3f   : > { %s32_s25 = sadd.s32 1, %s5743_s16  ;;  %s39_s28 = sadd.s32 1, %s5735_s14 }
  0x40   : > { %p34_p13 = scmp.ge.s32.totalorder %s32_s25, 2  ;;  %p46_p6 = scmp.ne.s32.totalorder %s5735_s14, %s5731_s13 }
  0x41   : > { %p47_p10 = scmp.eq.s32.totalorder %s5747_s17, 0  ;;  %p5426_p3 = scmp.lt.s32.totalorder %s5747_s17, 2 }
  0x42   : > { %s7916_s25 = smov (%p34_p13, %s32_s25), 0  ;;  %p5914_p7 = por %p5815_p2, %p46_p6 }
  0x43   : > { %p48_p5 = por %p47_p10, %p46_p6  ;;  %s36_s30 = ssub.s32 %s5743_s16, %s7916_s25 }
  0x44   : > { %s7724_s27 = scalar_select %p5914_p7, 1, 0 }
  0x45   : > { %s170_s4 = sand.u32 1, %s5735_s14   ;;  %p37_p9 = scmp.eq.s32.totalorder %s36_s30, 0 }
  0x46   : > { %s5394_s29 = smul.u32 228, %s170_s4  ;;  %p5921_p11 = pnand %p5426_p3, %p48_p5 }
  0x47   : > { %s5926_s6 = scalar_select %p37_p9, %s5735_s14, %s39_s28  }
  0x48   : > { %s5395_s7 = smul.u32 3648, %s5743_s16  ;;  %s174_s8 = scalar_lea.vmem [#allocation2], %s5394_s29 }
  0x49   : > { %s181_s26 = sshll.u32 %s174_s8, 4  ;;  %s5936_s19 = scalar_lea.sflag [#allocation3], %s170_s4  ;;  %s5934_s26 = int_to_ptr.vmem [resolvable:$true] %s181_s26 }
  0x4a   : > { %s5932_s10 = scalar_lea.hbm %s7613_s0, %s5395_s7  ;;  %p5633_p12 = pneg %p5921_p11 }
  0x4b   : > { %s5631_s30 = scalar_lea.hbm %s5932_s10, 3648  ;;  %s5636_s7 = scalar_lea.hbm %s7613_s0, 7296 }
  0x4c   : > { %p5632_p2 = scmp.ne.s32.totalorder %s5932_s10, %s5631_s30  ;;  %p5637_p4 = scmp.lt.u32.totalorder %s5932_s10, %s7613_s0 }
  0x4d   : > { %p5638_p13 = scmp.lt.u32.totalorder %s5636_s7, %s5631_s30  ;;  %p5640_p10 = scmp.lt.u32.totalorder %s5631_s30, %s5932_s10 }
  0x4e   : > { %p5634_p0 = pnand %p5633_p12, %p5632_p2 }
  0x4f   : > { %p5639_p6 = por %p5638_p13, %p5637_p4 }
  0x50   : > { %p5635_p1 = pneg %p5634_p0 }
  0x51   : > { %p5641_p3 = por %p5640_p10, %p5639_p6 }
  0x53   : > { %p5642_p5 = pnand %p5641_p3, %p5635_p1 }
  0x55   : > { %5645 = shalt.err (!%p5642_p5)
}
  0x56   : > { %s5646_s4 = scalar_lea.vmem %s5934_s26, 3648  ;;  %s5753_s9 = smov [#allocation2]  }
  0x57   : > { %p5647_p9 = scmp.ne.s32.totalorder %s5934_s26, %s5646_s4  ;;  %s5651_s28 = sshll.u32 %s5753_s9, 4  ;;  %s5652_s28 = int_to_ptr.vmem [resolvable:$false] %s5651_s28 }
  0x58   : > { %s5653_s29 = scalar_lea.vmem %s5652_s28, 7296  ;;  %p5654_p7 = scmp.lt.s32.totalorder %s5934_s26, %s5652_s28 }
  0x59   : > { %p5649_p2 = pnand %p5647_p9, %p5633_p12  ;;  %p5655_p4 = scmp.lt.s32.totalorder %s5653_s29, %s5646_s4 }
  0x5b   : > { %p5650_p0 = pneg %p5649_p2  ;;  %p5656_p13 = por %p5655_p4, %p5654_p7 }
  0x5d   : > { %p5657_p6 = pnand %p5656_p13, %p5650_p0 }
  0x5f   : > { %5660 = shalt.err (!%p5657_p6)
}
  0x60   : > { %5419 = dma.hbm_to_vmem [thread:$0]  (!%p5921_p11), %s5932_s10, 3648, %s5934_s26, %s5936_s19, %s5751_s11, %s5751_s11, %s5752_s18  }
  0x61   : > { %193 = sbr.rel (%p5831_p8) target bundleno = 793 (0x319), region = 32 }
  0x68   : > { %s5970_s30 = sand.u32 1, %s5731_s13   ;;  %p7726_p7 = scmp.ne.s32.totalorder %s7720_s22, 0 }
  0x69   : > { %s5396_s7 = smul.u32 228, %s5970_s30  ;;  %s196_s8 = scalar_lea.sflag [#allocation3], %s5970_s30 }
  0x6b   : > { %s5974_s21 = scalar_lea.vmem [#allocation2], %s5396_s7 }
  0x6c   : > { %5714 = dma.done.wait (%p7726_p7), %s196_s8, 3648  }
  0x6d   : > { %5716 = vsyncadd (%p7726_p7), %s196_s8, 4294963648  ;;  %p7727_p11 = scmp.ne.s32.totalorder %s7718_s20, 0 }
  0x6f   : > { %5718 = dma.done.wait (%p7727_p11), [#allocation6], 4624  }
  0x70   : > { %5720 = vsyncadd (%p7727_p11), [#allocation6], 4294962672  ;;  %v5484_v0 = vld [vmem:[#allocation5 + $0x20] sm:$0xff]   ;;  %v5485_v1 = vld [vmem:[#allocation5 + $0x28] sm:$0xff]   ;;  %vm427_vm0 = vsmask.f32 7424 }
  0x71   : > { %4882 = vmatprep.subr.bf16.mxu0 %v5484_v0  ;;  %5386 = vmatprep.subr.bf16.mxu1 %v5484_v0  ;;  %v5486_v2 = vld [vmem:[#allocation5 + $0x30] sm:$0xff]   ;;  %v234_v3 = vld [vmem:[%s5974_s21 + $0x8] sm:$0xf]  ;;  %v5986_v4 = vld [vmem:[%s5974_s21 + $0xc] sm:$0xf]  ;;  %vm648_vm1 = vcmask 523264  }
  0x72   : > { %4883 = vmatpush3.bf16.msra.mxu0 %v5484_v0  ;;  %5390 = vmatpush3.bf16.msra.mxu1 %v5484_v0  ;;  %v5989_v5 = vld [vmem:[%s5974_s21] sm:$0xff]   ;;  %v5995_v8 = vcombine.low %v234_v3, %v5986_v4  ;;  %v6001_v10 = vld [vmem:[%s5974_s21 + $0x68] sm:$0xf]  ;;  %v6004_v11 = vld [vmem:[%s5974_s21 + $0x6c] sm:$0xf]  ;;  %vm1220_vm2 = vcmask 1046528  }
  0x73   : > { %4884 = vmatprep.subr.bf16.mxu0 %v5485_v1  ;;  %5387 = vmatprep.subr.bf16.mxu1 %v5485_v1  ;;  %v5992_v6 = vld [vmem:[%s5974_s21 + $0x60] sm:$0xf]  ;;  %v5998_v9 = vld [vmem:[%s5974_s21 + $0x64] sm:$0xf]  ;;  %v429_v12 = vshrl.u32 %v5989_v5, 16  ;;  %v431_v13 = vshll.u32 %v5989_v5, 16  ;;  %v6014_v15 = vcombine.low %v6001_v10, %v6004_v11 }
  0x74   : > { %v5487_v7 = vld [vmem:[#allocation5 + $0x38] sm:$0xff]   ;;  %v6010_v14 = vcombine.low %v5992_v6, %v5998_v9  ;;  %v6017_v16 = vld [vmem:[%s5974_s21 + $0x10] sm:$0xf]  ;;  %v6020_v17 = vld [vmem:[%s5974_s21 + $0x14] sm:$0xf]  ;;  %v436_v18 = vshll.u32 %v5995_v8, 16 }
  0x75   : > { %7729 = vst [vmem:[#allocation13_spill] sm:$0xff] %v6014_v15  ;;  %v440_v19 = vshrl.u32 %v5995_v8, 16  ;;  %v6026_v20 = vcombine.low %v6017_v16, %v6020_v17  ;;  %v6029_v21 = vld [vmem:[%s5974_s21 + $0x70] sm:$0xf]  ;;  %v6032_v22 = vld [vmem:[%s5974_s21 + $0x74] sm:$0xf] }
  0x76   : > { %4885 = vmatpush3.bf16.msra.mxu0 %v5485_v1  ;;  %5391 = vmatpush3.bf16.msra.mxu1 %v5485_v1  ;;  %7728 = vst [vmem:[#allocation12_spill] sm:$0xff] %v6010_v14  ;;  %v433_v23 = vrot.slane %v431_v13, 1  ;;  %v524_v24 = vshll.u32 %v6010_v14, 16  ;;  %v528_v25 = vshrl.u32 %v6010_v14, 16  ;;  %v532_v26 = vshll.u32 %v6014_v15, 16  ;;  %v5494_v31 = vld [vmem:[#allocation5] sm:$0xff]  }
  0x77   : > { %4886 = vmatprep.subr.bf16.mxu0 %v5486_v2  ;;  %5388 = vmatprep.subr.bf16.mxu1 %v5486_v2  ;;  %v438_v27 = vrot.slane %v436_v18, 1  ;;  %v536_v28 = vshrl.u32 %v6014_v15, 16  ;;  %v444_v29 = vshll.u32 %v6026_v20, 16  ;;  %v6041_v30 = vcombine.low %v6029_v21, %v6032_v22  ;;  %v5495_v38 = vld [vmem:[#allocation5 + $0x40] sm:$0xff]   ;;  %v6047_v39 = vld [vmem:[%s5974_s21 + $0x18] sm:$0xf] }
  0x78   : > { %v434_v32 = vor.u32 %v433_v23, %v429_v12  ;;  %v6043_v33 = vrot.slane %v524_v24, 1  ;;  %v534_v34 = vrot.slane %v532_v26, 1  ;;  %v448_v40 = vshrl.u32 %v6026_v20, 16  ;;  %v6053_v44 = vld [vmem:[%s5974_s21 + $0x1c] sm:$0xf]  ;;  %v5500_v53 = vld [vmem:[#allocation5 + $0x8] sm:$0xff]  }
  0x79   : > { %7730 = vst [vmem:[#allocation14_spill] sm:$0xff] %v6041_v30  ;;  %v442_v35 = vor.u32 %v440_v19, %v438_v27  ;;  %v446_v36 = vrot.slane %v444_v29, 1  ;;  %v540_v37 = vshll.u32 %v6041_v30, 16  ;;  %v6056_v45 = vld [vmem:[%s5974_s21 + $0x78] sm:$0xf]  ;;  %v6065_v49 = vcombine.low %v6047_v39, %v6053_v44  ;;  %v5501_v60 = vld [vmem:[#allocation5 + $0x48] sm:$0xff]  }
  0x7a   : > { %4887 = vmatpush3.bf16.msra.mxu0 %v5486_v2  ;;  %5392 = vmatpush3.bf16.msra.mxu1 %v5486_v2  ;;  %v439_v41 = vsel %vm427_vm0, %v434_v32, %v438_v27  ;;  %v530_v42 = vor.u32 %v528_v25, %v6043_v33  ;;  %v538_v43 = vor.u32 %v536_v28, %v534_v34  ;;  %v6059_v46 = vld [vmem:[%s5974_s21 + $0x7c] sm:$0xf]  ;;  %v6068_v51 = vld [vmem:[%s5974_s21 + $0x20] sm:$0xf]  ;;  %v6071_v52 = vld [vmem:[%s5974_s21 + $0x24] sm:$0xf] }
  0x7b   : > { %4888 = vmatprep.subr.bf16.mxu0 %v5487_v7  ;;  %5389 = vmatprep.subr.bf16.mxu1 %v5487_v7  ;;  %7731 = vst [vmem:[#allocation15_spill] sm:$0xff] %v6059_v46  ;;  %v447_v47 = vsel %vm427_vm0, %v442_v35, %v446_v36  ;;  %v542_v48 = vrot.slane %v540_v37, 1  ;;  %v450_v50 = vor.u32 %v448_v40, %v446_v36  ;;  %v544_v56 = vshrl.u32 %v6041_v30, 16  ;;  %v6086_v58 = vld [vmem:[%s5974_s21 + $0x80] sm:$0xf]  ;;  %v6112_v19 = vld [vmem:[#allocation5 + $0x10] sm:$0xff]  }
  0x7c   : > { %4890 = vmatprep.mubr.msk.bf16.mxu0 %vm648_vm1, %v439_v41  ;;  %v6074_v54 = vsel %vm427_vm0, %v530_v42, %v534_v34  ;;  %v6078_v55 = vcombine.low %v6056_v45, %v6059_v46  ;;  %v6083_v57 = vcombine.low %v6068_v51, %v6071_v52  ;;  %7734 = vst [vmem:[#allocation18_spill] sm:$0xff] %v6086_v58  ;;  %v6089_v59 = vld [vmem:[%s5974_s21 + $0x84] sm:$0xf]  ;;  %v452_v62 = vshll.u32 %v6065_v49, 16  ;;  %v6110_v18 = vld [vmem:[%s5974_s21 + $0x28] sm:$0xf] }
  0x7d   : > { %7732 = vst [vmem:[#allocation16_spill] sm:$0xff] %v6074_v54  ;;  %7735 = vst [vmem:[#allocation19_spill] sm:$0xff] %v6089_v59  ;;  %4914 = vmatprep.mubr.msk.bf16.mxu1 %vm648_vm1, %v6074_v54  ;;  %v6094_v61 = vsel %vm427_vm0, %v538_v43, %v542_v48  ;;  %v456_v63 = vshrl.u32 %v6065_v49, 16  ;;  %v6100_v0 = vcombine.low %v6086_v58, %v6089_v59  ;;  %v6115_v25 = vld [vmem:[%s5974_s21 + $0x2c] sm:$0xf]  ;;  %v5511_v36 = vld [vmem:[#allocation5 + $0x50] sm:$0xff]  }
  0x7e   : > { %4889 = vmatpush3.bf16.msra.mxu0 %v5487_v7  ;;  %5393 = vmatpush3.bf16.msra.mxu1 %v5487_v7  ;;  %7733 = vst [vmem:[#allocation17_spill] sm:$0xff] %v6078_v55  ;;  %7736 = vst [vmem:[#allocation20_spill] sm:$0xff] %v6094_v61  ;;  %v546_v1 = vor.u32 %v544_v56, %v542_v48  ;;  %v548_v2 = vshll.u32 %v6078_v55, 16  ;;  %v460_v3 = vshll.u32 %v6083_v57, 16  ;;  %v552_v7 = vshrl.u32 %v6078_v55, 16  ;;  %s4157_s20 = sshll.u32 %s5970_s30, 7 }
  0x7f   : > { %4938 = vmatprep.subr.bf16.mxu1 %v5494_v31  ;;  %7737 = vst [vmem:[#allocation21_spill] sm:$0xff] %v6100_v0  ;;  %4994 = vmatprep.subr.bf16.mxu0 %v5495_v38  ;;  %v454_v12 = vrot.slane %v452_v62, 1  ;;  %v556_v13 = vshll.u32 %v6100_v0, 16  ;;  %v464_v26 = vshrl.u32 %v6083_v57, 16  ;;  %v560_v27 = vshrl.u32 %v6100_v0, 16  ;;  %s7485_s22 = scalar_lea.vmem [#allocation8], %s4157_s20 }
  0x80   : > { %v550_v23 = vrot.slane %v548_v2, 1  ;;  %v462_v24 = vrot.slane %v460_v3, 1  ;;  %v6125_v34 = vld [vmem:[%s5974_s21 + $0x88] sm:$0xf]  ;;  %v6128_v35 = vld [vmem:[%s5974_s21 + $0x8c] sm:$0xf] }
  0x81   : > { %4891 = vmatmul.mubr.msk.bf16.vlgmr.msra.gmra.mrb[0].mxu0 %vm648_vm1, %v447_v47  ;;  %4915 = vmatmul.mubr.msk.bf16.vlgmr.msra.gmra.mrb[0].mxu1 %vm648_vm1, %v6094_v61  ;;  %v455_v28 = vsel %vm427_vm0, %v450_v50, %v454_v12  ;;  %v458_v29 = vor.u32 %v456_v63, %v454_v12  ;;  %v558_v32 = vrot.slane %v556_v13, 1  ;;  %7738 = vst [vmem:[#allocation22_spill] sm:$0xff] %v6125_v34  ;;  %7739 = vst [vmem:[#allocation23_spill] sm:$0xff] %v6128_v35  ;;  %v6139_v42 = vld [vmem:[%s5974_s21 + $0x30] sm:$0xf]  ;;  %v5517_v61 = vld [vmem:[#allocation5 + $0x58] sm:$0xff]  }
  0x82   : > { %4939 = vmatpush3.bf16.msra.mxu1 %v5494_v31  ;;  %4995 = vmatpush3.bf16.msra.mxu0 %v5495_v38  ;;  %v6122_v31 = vcombine.low %v6110_v18, %v6115_v25  ;;  %v6132_v37 = vsel %vm427_vm0, %v546_v1, %v550_v23  ;;  %v554_v38 = vor.u32 %v552_v7, %v550_v23  ;;  %v6142_v43 = vld [vmem:[%s5974_s21 + $0x34] sm:$0xf]  ;;  %v6145_v47 = vld [vmem:[%s5974_s21 + $0x90] sm:$0xf]  ;;  %v6161_v1 = vld [vmem:[%s5974_s21 + $0x38] sm:$0xf] }
  0x83   : > { %4940 = vmatprep.subr.bf16.mxu1 %v5500_v53  ;;  %4996 = vmatprep.subr.bf16.mxu0 %v5501_v60  ;;  %7740 = vst [vmem:[#allocation24_spill] sm:$0xff] %v6132_v37  ;;  %v466_v40 = vor.u32 %v464_v26, %v462_v24  ;;  %v6136_v41 = vcombine.low %v6125_v34, %v6128_v35  ;;  %7742 = vst [vmem:[#allocation26_spill] sm:$0xff] %v6145_v47  ;;  %v6158_v63 = vld [vmem:[%s5974_s21 + $0x94] sm:$0xf]  ;;  %v6173_v13 = vld [vmem:[%s5974_s21 + $0x3c] sm:$0xf] }
  0x84   : > { %4894 = vmatprep.mubr.msk.bf16.mxu0 %vm648_vm1, %v455_v28  ;;  %4918 = vmatprep.mubr.msk.bf16.mxu1 %vm648_vm1, %v6132_v37  ;;  %v6150_v48 = vsel %vm427_vm0, %v458_v29, %v462_v24  ;;  %v468_v50 = vshll.u32 %v6122_v31, 16  ;;  %v562_v56 = vor.u32 %v560_v27, %v558_v32  ;;  %v6155_v62 = vcombine.low %v6139_v42, %v6142_v43  ;;  %v6176_v23 = vld [vmem:[%s5974_s21 + $0x98] sm:$0xf]  ;;  %v5516_v28 = vld [vmem:[#allocation5 + $0x18] sm:$0xff]   ;;  %v6277_v55 = vld [vmem:[%s5974_s21 + $0x54] sm:$0xf] }
  0x85   : > { %7741 = vst [vmem:[#allocation25_spill] sm:$0xff] %v6136_v41  ;;  %7743 = vst [vmem:[#allocation27_spill] sm:$0xff] %v6150_v48  ;;  %v6164_v2 = vsel %vm427_vm0, %v554_v38, %v558_v32  ;;  %v564_v3 = vshll.u32 %v6136_v41, 16  ;;  %v472_v7 = vshrl.u32 %v6122_v31, 16  ;;  %v6170_v12 = vcombine.low %v6145_v47, %v6158_v63  ;;  %v6195_v37 = vld [vmem:[%s5974_s21 + $0x40] sm:$0xf] }
  0x86   : > { %7744 = vst [vmem:[#allocation28_spill] sm:$0xff] %v6158_v63  ;;  %7745 = vst [vmem:[#allocation29_spill] sm:$0xff] %v6164_v2  ;;  %4941 = vmatpush3.bf16.msra.mxu1 %v5500_v53  ;;  %4997 = vmatpush3.bf16.msra.mxu0 %v5501_v60  ;;  %v470_v24 = vrot.slane %v468_v50, 1  ;;  %v476_v26 = vshll.u32 %v6155_v62, 16  ;;  %v568_v27 = vshrl.u32 %v6136_v41, 16  ;;  %v6182_v53 = vcombine.low %v6161_v1, %v6173_v13  ;;  %s4534_s24 = sshll.u32 %s5739_s15, 11 }
  0x87   : > { %7746 = vst [vmem:[#allocation30_spill] sm:$0xff] %v6170_v12  ;;  %7747 = vst [vmem:[#allocation31_spill] sm:$0xff] %v6176_v23  ;;  %v6185_v60 = vld [vmem:[%s5974_s21 + $0x9c] sm:$0xf]  ;;  %4942 = vmatprep.subr.bf16.mxu1 %v6112_v19  ;;  %4998 = vmatprep.subr.bf16.mxu0 %v5511_v36  ;;  %v566_v29 = vrot.slane %v564_v3, 1  ;;  %v572_v32 = vshll.u32 %v6170_v12, 16  ;;  %s7561_s26 = scalar_lea.hbm %s7616_s3, %s4534_s24 }
  0x88   : > { %7748 = vst [vmem:[#allocation32_spill] sm:$0xff] %v6185_v60  ;;  %v480_v38 = vshrl.u32 %v6155_v62, 16  ;;  %v6192_v50 = vcombine.low %v6176_v23, %v6185_v60  ;;  %v6202_v3 = vsel %vm427_vm0, %v466_v40, %v470_v24  ;;  %v474_v54 = vor.u32 %v472_v7, %v470_v24  ;;  %v6206_v34 = vld [vmem:[%s5974_s21 + $0x44] sm:$0xf]  ;;  %v6209_v60 = vld [vmem:[%s5974_s21 + $0xa0] sm:$0xf] }
  0x89   : > { %4895 = vmatmul.mubr.msk.bf16.gmra.mrb[4].mxu0 %vm648_vm1, %v6150_v48  ;;  %4919 = vmatmul.mubr.msk.bf16.gmra.mrb[4].mxu1 %vm648_vm1, %v6164_v2  ;;  %7750 = vst [vmem:[#allocation34_spill] sm:$0xff] %v6202_v3  ;;  %v478_v63 = vrot.slane %v476_v26, 1  ;;  %v484_v59 = vshll.u32 %v6182_v53, 16  ;;  %7751 = vst [vmem:[#allocation35_spill] sm:$0xff] %v6209_v60  ;;  %v6211_v23 = vld [vmem:[#allocation5 + $0x60] sm:$0xff]   ;;  %v6216_v48 = vsel %vm427_vm0, %v562_v56, %v566_v29  ;;  %v574_v40 = vrot.slane %v572_v32, 1 }
  0x8a   : > { %7749 = vst [vmem:[#allocation33_spill] sm:$0xff] %v6192_v50  ;;  %4898 = vmatprep.mubr.msk.bf16.mxu0 %vm648_vm1, %v6202_v3  ;;  %7752 = vst [vmem:[#allocation36_spill] sm:$0xff] %v6216_v48  ;;  %v570_v2 = vor.u32 %v568_v27, %v566_v29  ;;  %v576_v7 = vshrl.u32 %v6170_v12, 16  ;;  %v6220_v24 = vld [vmem:[%s5974_s21 + $0xa4] sm:$0xf]  ;;  %4943 = vmatpush3.bf16.msra.mxu1 %v6112_v19  ;;  %v580_v3 = vshll.u32 %v6192_v50, 16 }
  0x8b   : > { %7753 = vst [vmem:[#allocation37_spill] sm:$0xff] %v6220_v24  ;;  %4922 = vmatprep.mubr.msk.bf16.mxu1 %vm648_vm1, %v6216_v48  ;;  %v482_v26 = vor.u32 %v480_v38, %v478_v63  ;;  %v486_v41 = vrot.slane %v484_v59, 1  ;;  %4999 = vmatpush3.bf16.msra.mxu0 %v5511_v36  ;;  %v6227_v56 = vsel %vm427_vm0, %v474_v54, %v478_v63  ;;  %v6234_v19 = vld [vmem:[%s5974_s21 + $0x48] sm:$0xf]  ;;  %v488_v54 = vshrl.u32 %v6182_v53, 16  ;;  %s4044_s11 = sshll.u32 %s7485_s22, 4  ;;  %s7563_s11 = int_to_ptr.vmem [resolvable:$true] %s4044_s11 }
  0x8c   : > { %7754 = vst [vmem:[#allocation38_spill] sm:$0xff] %v6227_v56  ;;  %v578_v27 = vor.u32 %v576_v7, %v574_v40  ;;  %v6231_v29 = vcombine.low %v6195_v37, %v6206_v34  ;;  %4944 = vmatprep.subr.bf16.mxu1 %v5516_v28  ;;  %5000 = vmatprep.subr.bf16.mxu0 %v5517_v61  ;;  %v6236_v32 = vld [vmem:[#allocation5 + $0x80] sm:$0xff]   ;;  %v582_v36 = vrot.slane %v580_v3, 1  ;;  %v6280_v30 = vld [vmem:[%s5974_s21 + $0xb0] sm:$0xf]  ;;  %s4028_s10 = scalar_lea.sflag [#allocation4], %s5970_s30 }
  0x8d   : > { %v6239_v59 = vsel %vm427_vm0, %v570_v2, %v574_v40  ;;  %v6244_v63 = vcombine.low %v6209_v60, %v6220_v24  ;;  %v6247_v38 = vld [vmem:[%s5974_s21 + $0x4c] sm:$0xf]  ;;  %v6250_v7 = vld [vmem:[%s5974_s21 + $0xa8] sm:$0xf]  ;;  %v6253_v48 = vsel %vm427_vm0, %v482_v26, %v486_v41  ;;  %v584_v2 = vshrl.u32 %v6192_v50, 16  ;;  %7764 = vst [vmem:[#allocation48_spill] sm:$0xff] %v6280_v30 }
  0x8e   : > { %7755 = vst [vmem:[#allocation39_spill] sm:$0xff] %v6231_v29  ;;  %7756 = vst [vmem:[#allocation40_spill] sm:$0xff] %v6239_v59  ;;  %v492_v12 = vshll.u32 %v6231_v29, 16  ;;  %v6259_v3 = vcombine.low %v6234_v19, %v6247_v38  ;;  %v6262_v40 = vld [vmem:[%s5974_s21 + $0xac] sm:$0xf]  ;;  %4945 = vmatpush3.bf16.msra.mxu1 %v5516_v28  ;;  %v6268_v60 = vsel %vm427_vm0, %v578_v27, %v582_v36  ;;  %v496_v0 = vshrl.u32 %v6231_v29, 16 }
  0x8f   : > { %7757 = vst [vmem:[#allocation41_spill] sm:$0xff] %v6244_v63  ;;  %7758 = vst [vmem:[#allocation42_spill] sm:$0xff] %v6250_v7  ;;  %v6265_v24 = vld [vmem:[%s5974_s21 + $0x50] sm:$0xf]  ;;  %v588_v26 = vshll.u32 %v6244_v63, 16  ;;  %v6274_v50 = vcombine.low %v6250_v7, %v6262_v40  ;;  %5001 = vmatpush3.bf16.msra.mxu0 %v5517_v61  ;;  %5050 = vmatprep.subr.bf16.mxu1 %v6211_v23  ;;  %v592_v27 = vshrl.u32 %v6244_v63, 16 }
  0x90   : > { %7759 = vst [vmem:[#allocation43_spill] sm:$0xff] %v6253_v48  ;;  %7760 = vst [vmem:[#allocation44_spill] sm:$0xff] %v6259_v3  ;;  %v500_v28 = vshll.u32 %v6259_v3, 16  ;;  %v6287_v15 = vcombine.low %v6265_v24, %v6277_v55  ;;  %v6290_v14 = vld [vmem:[%s5974_s21 + $0xb4] sm:$0xf]  ;;  %5106 = vmatprep.subr.bf16.mxu0 %v6236_v32  ;;  %v494_v61 = vrot.slane %v492_v12, 1  ;;  %v586_v35 = vor.u32 %v584_v2, %v582_v36 }
  0x91   : > { %7761 = vst [vmem:[#allocation45_spill] sm:$0xff] %v6262_v40  ;;  %7762 = vst [vmem:[#allocation46_spill] sm:$0xff] %v6268_v60  ;;  %4899 = vmatmul.mubr.msk.bf16.gmra.mrb[8].mxu0 %vm648_vm1, %v6227_v56  ;;  %4923 = vmatmul.mubr.msk.bf16.gmra.mrb[8].mxu1 %vm648_vm1, %v6239_v59  ;;  %v590_v40 = vrot.slane %v588_v26, 1  ;;  %v596_v7 = vshll.u32 %v6274_v50, 16  ;;  %v6300_v63 = vcombine.low %v6280_v30, %v6290_v14  ;;  %v6307_v29 = vld [vmem:[%s5974_s21 + $0x58] sm:$0xf] }
  0x92   : > { %7763 = vst [vmem:[#allocation47_spill] sm:$0xff] %v6274_v50  ;;  %7765 = vst [vmem:[#allocation49_spill] sm:$0xff] %v6287_v15  ;;  %4902 = vmatprep.mubr.msk.bf16.mxu0 %vm648_vm1, %v6253_v48  ;;  %4926 = vmatprep.mubr.msk.bf16.mxu1 %vm648_vm1, %v6268_v60  ;;  %v490_v56 = vor.u32 %v488_v54, %v486_v41  ;;  %v498_v59 = vor.u32 %v496_v0, %v494_v61  ;;  %v502_v47 = vrot.slane %v500_v28, 1  ;;  %v6312_v30 = vld [vmem:[%s5974_s21 + $0x5c] sm:$0xf]  ;;  %s5661_s19 = scalar_lea.vmem %s7563_s11, 2048 }
  0x93   : > { %7766 = vst [vmem:[#allocation50_spill] sm:$0xff] %v6290_v14  ;;  %7767 = vst [vmem:[#allocation51_spill] sm:$0xff] %v6300_v63  ;;  %v594_v12 = vor.u32 %v592_v27, %v590_v40  ;;  %v598_v26 = vrot.slane %v596_v7, 1  ;;  %v504_v46 = vshrl.u32 %v6259_v3, 16  ;;  %v508_v14 = vshll.u32 %v6287_v15, 16  ;;  %p5662_p8 = scmp.ne.s32.totalorder %s7563_s11, %s5661_s19  ;;  %p7907_p12 = scmp.ne.s32.totalorder %s7724_s27, 0 }
  0x94   : > { %v6315_v48 = vld [vmem:[%s5974_s21 + $0xb8] sm:$0xf]  ;;  %v600_v60 = vshrl.u32 %v6274_v50, 16  ;;  %v604_v41 = vshll.u32 %v6300_v63, 16  ;;  %v6321_v0 = vcombine.low %v6307_v29, %v6312_v30  ;;  %v512_v36 = vshrl.u32 %v6287_v15, 16  ;;  %s5754_s15 = smov [#allocation8]  }
  0x95   : > { %7768 = vst [vmem:[#allocation52_spill] sm:$0xff] %v6315_v48  ;;  %v6325_v54 = vld [vmem:[%s5974_s21 + $0xbc] sm:$0xf]  ;;  %v6328_v7 = vsel %vm427_vm0, %v490_v56, %v494_v61  ;;  %v6331_v2 = vsel %vm427_vm0, %v586_v35, %v590_v40  ;;  %v6338_v27 = vld [vmem:[%s5974_s21 + $0xc0] sm:$0xf]  ;;  %v6341_v50 = vsel %vm427_vm0, %v498_v59, %v502_v47  ;;  %v6344_v3 = vsel %vm427_vm0, %v594_v12, %v598_v26  ;;  %p5663_p1 = pnand %p5662_p8, %p7907_p12  ;;  %s5665_s4 = sshll.u32 %s5754_s15, 4  ;;  %s5666_s4 = int_to_ptr.vmem [resolvable:$false] %s5665_s4 }
  0x96   : > { %7769 = vst [vmem:[#allocation53_spill] sm:$0xff] %v6325_v54  ;;  %7770 = vst [vmem:[#allocation54_spill] sm:$0xff] %v6328_v7  ;;  %v6335_v28 = vcombine.low %v6315_v48, %v6325_v54  ;;  %v516_v15 = vshll.u32 %v6321_v0, 16  ;;  %v608_v56 = vshrl.u32 %v6300_v63, 16  ;;  %v506_v35 = vor.u32 %v504_v46, %v502_v47  ;;  %s5667_s9 = scalar_lea.vmem %s5666_s4, 4096  ;;  %p5668_p3 = scmp.lt.s32.totalorder %s7563_s11, %s5666_s4 }
  0x97   : > { %7771 = vst [vmem:[#allocation55_spill] sm:$0xff] %v6331_v2  ;;  %7773 = vst [vmem:[#allocation57_spill] sm:$0xff] %v6341_v50  ;;  %v510_v40 = vrot.slane %v508_v14, 1  ;;  %v606_v54 = vrot.slane %v604_v41, 1  ;;  %v602_v59 = vor.u32 %v600_v60, %v598_v26  ;;  %v6359_v12 = vcombine.low %v6338_v27, %v6338_v27  ;;  %p5664_p10 = pneg %p5663_p1  ;;  %p5669_p5 = scmp.lt.s32.totalorder %s5667_s9, %s5661_s19 }
  0x98   : > { %7772 = vst [vmem:[#allocation56_spill] sm:$0xff] %v6335_v28  ;;  %7774 = vst [vmem:[#allocation58_spill] sm:$0xff] %v6344_v3  ;;  %v612_v61 = vshll.u32 %v6335_v28, 16  ;;  %v518_v63 = vrot.slane %v516_v15, 1  ;;  %v520_v46 = vshrl.u32 %v6321_v0, 16  ;;  %v616_v47 = vshrl.u32 %v6335_v28, 16 }
  0x99   : > { %4903 = vmatmul.mubr.msk.bf16.gmra.mrb[12].mxu0 %vm648_vm1, %v6328_v7  ;;  %4927 = vmatmul.mubr.msk.bf16.gmra.mrb[12].mxu1 %vm648_vm1, %v6331_v2  ;;  %v514_v48 = vor.u32 %v512_v36, %v510_v40  ;;  %v610_v7 = vor.u32 %v608_v56, %v606_v54  ;;  %v6362_v2 = vsel %vm427_vm0, %v506_v35, %v510_v40  ;;  %v620_v60 = vshll.u32 %v6359_v12, 16  ;;  %p5670_p9 = por %p5669_p5, %p5668_p3 }
  0x9a   : > { %4906 = vmatprep.mubr.msk.bf16.mxu0 %vm648_vm1, %v6341_v50  ;;  %4930 = vmatprep.mubr.msk.bf16.mxu1 %vm648_vm1, %v6344_v3  ;;  %v614_v58 = vrot.slane %v612_v61, 1  ;;  %7775 = vst [vmem:[#allocation59_spill] sm:$0xff] %v6362_v2  ;;  %v6365_v14 = vsel %vm427_vm0, %v602_v59, %v606_v54  ;;  %v522_v15 = vor.u32 %v520_v46, %v518_v63  ;;  %v1221_v54 = vrot.slane %v5989_v5, 1  ;;  %v7787_v59 = vld [vmem:[#allocation39_spill] sm:$0xff] }
  0x9b   : > { %7776 = vst [vmem:[#allocation60_spill] sm:$0xff] %v6365_v14  ;;  %v6371_v26 = vsel %vm427_vm0, %v514_v48, %v518_v63  ;;  %v622_v48 = vrot.slane %v620_v60, 1  ;;  %v6397_v63 = vcombine.low %v5986_v4, %v6017_v16  ;;  %v6405_v40 = vcombine.low %v6053_v44, %v6068_v51  ;;  %v5524_v51 = vld [vmem:[#allocation5 + $0x68] sm:$0xff]   ;;  %v7789_v60 = vld [vmem:[#allocation23_spill] sm:$0xff]  ;;  %p5671_p2 = pnand %p5670_p9, %p5664_p10 }
  0x9c   : > { %7777 = vst [vmem:[#allocation61_spill] sm:$0xff] %v6371_v26  ;;  %v6374_v41 = vsel %vm427_vm0, %v610_v7, %v614_v58  ;;  %v6384_v36 = vor.u32 %v616_v47, %v614_v58  ;;  %v1222_v7 = vrot.slane %v5995_v8, 1  ;;  %v6390_v56 = vsel %vm427_vm0, %v522_v15, %v6043_v33  ;;  %v7788_v47 = vld [vmem:[#allocation26_spill] sm:$0xff]  ;;  %v7813_v3 = vld [vmem:[#allocation47_spill] sm:$0xff] }
  0x9d   : > { %7778 = vst [vmem:[#allocation62_spill] sm:$0xff] %v6374_v41  ;;  %7780 = vst [vmem:[#allocation64_spill] sm:$0xff] %v6390_v56  ;;  %v6401_v58 = vcombine.low %v6020_v17, %v6047_v39  ;;  %v6409_v33 = vcombine.low %v6071_v52, %v6110_v18  ;;  %v1224_v4 = vrot.slane %v6026_v20, 1  ;;  %v6420_v16 = vcombine.low %v6115_v25, %v6139_v42  ;;  %v5525_v52 = vld [vmem:[#allocation5 + $0x88] sm:$0xff]  }
  0x9e   : > { %7779 = vst [vmem:[#allocation63_spill] sm:$0xff] %v6384_v36  ;;  %v623_v61 = vsel %vm427_vm0, %v6384_v36, %v622_v48  ;;  %v1223_v35 = vsel %vm1220_vm2, %v1221_v54, %v1222_v7  ;;  %v6424_v17 = vcombine.low %v6142_v43, %v6161_v1  ;;  %v1226_v39 = vrot.slane %v6065_v49, 1  ;;  %v5527_v1 = vld [vmem:[#allocation5 + $0x90] sm:$0xff]   ;;  %v7790_v48 = vld [vmem:[#allocation44_spill] sm:$0xff] }
  0x9f   : > { %v6429_v44 = vcombine.low %v6173_v13, %v6195_v37  ;;  %v6435_v25 = vcombine.low %v6206_v34, %v6234_v19  ;;  %v6442_v42 = vcombine.low %v6247_v38, %v6265_v24  ;;  %v1228_v37 = vrot.slane %v6083_v57, 1  ;;  %v5526_v34 = vld [vmem:[#allocation5 + $0x70] sm:$0xff]  }
  0xa0   : > { %v1227_v18 = vsel %vm1220_vm2, %v1224_v4, %v1226_v39  ;;  %v6449_v43 = vcombine.low %v6277_v55, %v6307_v29  ;;  %v6457_v13 = vcombine.low %v6312_v30, %v5992_v6  ;;  %v6465_v55 = vcombine.low %v6004_v11, %v6029_v21  ;;  %v5528_v6 = vld [vmem:[#allocation5 + $0x78] sm:$0xff]   ;;  %v7812_v36 = vld [vmem:[#allocation41_spill] sm:$0xff] }
  0xa1   : > { %4907 = vmatmul.mubr.msk.bf16.gmra.mrb[16].mxu0 %vm648_vm1, %v6362_v2  ;;  %4931 = vmatmul.mubr.msk.bf16.gmra.mrb[16].mxu1 %vm648_vm1, %v6365_v14  ;;  %v5529_v30 = vld [vmem:[#allocation5 + $0x98] sm:$0xff]   ;;  %v1234_v11 = vrot.slane %v6182_v53, 1  ;;  %v1236_v46 = vrot.slane %v7787_v59, 1  ;;  %v6514_v15 = vcombine.low %v7789_v60, %v7788_v47  ;;  %v1238_v54 = vrot.slane %v7790_v48, 1  ;;  %v7805_v60 = vld [vmem:[#allocation25_spill] sm:$0xff] }
  0xa2   : > { %4910 = vmatprep.mubr.msk.bf16.mxu0 %vm648_vm1, %v6371_v26  ;;  %4934 = vmatprep.mubr.msk.bf16.mxu1 %vm648_vm1, %v6374_v41  ;;  %v7783_v21 = vld [vmem:[#allocation18_spill] sm:$0xff]  ;;  %v7784_v29 = vld [vmem:[#allocation15_spill] sm:$0xff]  ;;  %v1260_v14 = vrot.slane %v7812_v36, 1  ;;  %v2013_v26 = vshll.u32 %v6409_v33, 16  ;;  %v5541_v2 = vld [vmem:[#allocation5 + $0xa8] sm:$0xff]  }
  0xa3   : > { %v6489_v19 = vcombine.low %v7784_v29, %v7783_v21 }
  0xa9   : > { %4911 = vmatmul.mubr.msk.bf16.gmra.mrb[20].mxu0 %vm648_vm1, %v6390_v56  ;;  %4935 = vmatmul.mubr.msk.bf16.gmra.mrb[20].mxu1 %vm648_vm1, %v623_v61  ;;  %v6521_v61 = vsel %vm1220_vm2, %v1236_v46, %v1238_v54  ;;  %v2006_v56 = vshll.u32 %v6405_v40, 16 }
  0xaa   : > { %4946 = vmatprep.mubr.msk.bf16.mxu1 %vm648_vm1, %v5989_v5  ;;  %5002 = vmatprep.mubr.msk.bf16.mxu0 %vm648_vm1, %v1223_v35  ;;  %v1225_v5 = vsel %vm1220_vm2, %v1222_v7, %v1224_v4  ;;  %v6518_v7 = vsel %vm1220_vm2, %v1234_v11, %v1236_v46  ;;  %7792 = vst [vmem:[#allocation26_spill] sm:$0xff] %v6521_v61  ;;  %v7793_v35 = vld [vmem:[#allocation49_spill] sm:$0xff] }
  0xab   : > { %7791 = vst [vmem:[#allocation39_spill] sm:$0xff] %v6518_v7  ;;  %v1240_v4 = vrot.slane %v7793_v35, 1  ;;  %v7804_v46 = vld [vmem:[#allocation21_spill] sm:$0xff] }
  0xac   : > { %v1252_v47 = vrot.slane %v7804_v46, 1 }
  0xb1   : > { %4947 = vmatmul.mubr.msk.bf16.vlgmr.msra.gmra.mrb[24].mxu1 %vm648_vm1, %v5995_v8  ;;  %5003 = vmatmul.mubr.msk.bf16.vlgmr.msra.gmra.mrb[24].mxu0 %vm648_vm1, %v1225_v5  ;;  %v1230_v8 = vrot.slane %v6122_v31, 1  ;;  %v6534_v5 = vsel %vm1220_vm2, %v1238_v54, %v1240_v4  ;;  %v1254_v54 = vrot.slane %v7805_v60, 1 }
  0xb2   : > { %5051 = vmatpush3.bf16.msra.mxu1 %v6211_v23  ;;  %5107 = vmatpush3.bf16.msra.mxu0 %v6236_v32  ;;  %v6461_v23 = vcombine.low %v5998_v9, %v6001_v10  ;;  %v6479_v9 = vcombine.low %v6032_v22, %v6056_v45  ;;  %v1232_v10 = vrot.slane %v6155_v62, 1  ;;  %v6491_v22 = vld [vmem:[#allocation5 + $0xa0] sm:$0xff]   ;;  %7794 = vst [vmem:[#allocation23_spill] sm:$0xff] %v6534_v5 }
  0xb3   : > { %4950 = vmatprep.mubr.msk.bf16.mxu1 %vm648_vm1, %v6026_v20  ;;  %5006 = vmatprep.mubr.msk.bf16.mxu0 %vm648_vm1, %v1227_v18  ;;  %v6468_v20 = vsel %vm1220_vm2, %v1226_v39, %v1228_v37  ;;  %v6471_v24 = vsel %vm1220_vm2, %v1228_v37, %v1230_v8  ;;  %v6493_v45 = vld [vmem:[#allocation5 + $0xc0] sm:$0xff]   ;;  %v1242_v39 = vrot.slane %v6321_v0, 1  ;;  %v7797_v37 = vld [vmem:[#allocation13_spill] sm:$0xff] }
  0xb4   : > { %5052 = vmatprep.subr.bf16.mxu1 %v5524_v51  ;;  %5108 = vmatprep.subr.bf16.mxu0 %v5525_v52  ;;  %7781 = vst [vmem:[#allocation65_spill] sm:$0xff] %v6468_v20  ;;  %7782 = vst [vmem:[#allocation66_spill] sm:$0xff] %v6471_v24  ;;  %v6496_v32 = vsel %vm1220_vm2, %v1230_v8, %v1232_v10  ;;  %v6499_v38 = vsel %vm1220_vm2, %v1232_v10, %v1234_v11  ;;  %v1246_v8 = vrot.slane %v7797_v37, 1  ;;  %v7801_v10 = vld [vmem:[#allocation17_spill] sm:$0xff] }
  0xb5   : > { %7785 = vst [vmem:[#allocation18_spill] sm:$0xff] %v6496_v32  ;;  %7786 = vst [vmem:[#allocation15_spill] sm:$0xff] %v6499_v38  ;;  %v1250_v11 = vrot.slane %v7801_v10, 1 }
  0xb6   : > { %5053 = vmatpush3.bf16.msra.mxu1 %v5524_v51  ;;  %5109 = vmatpush3.bf16.msra.mxu0 %v5525_v52  ;;  %v6537_v51 = vsel %vm1220_vm2, %v1240_v4, %v1242_v39  ;;  %v7796_v52 = vld [vmem:[#allocation12_spill] sm:$0xff] }
  0xb7   : > { %5054 = vmatprep.subr.bf16.mxu1 %v5526_v34  ;;  %5110 = vmatprep.subr.bf16.mxu0 %v5527_v1  ;;  %7795 = vst [vmem:[#allocation44_spill] sm:$0xff] %v6537_v51  ;;  %v1244_v18 = vrot.slane %v7796_v52, 1  ;;  %v6582_v4 = vsel %vm1220_vm2, %v1250_v11, %v1252_v47 }
  0xb8   : > { %7806 = vst [vmem:[#allocation17_spill] sm:$0xff] %v6582_v4 }
  0xb9   : > { %4951 = vmatmul.mubr.msk.bf16.gmra.mrb[28].mxu1 %vm648_vm1, %v6065_v49  ;;  %5007 = vmatmul.mubr.msk.bf16.gmra.mrb[28].mxu0 %vm648_vm1, %v6468_v20 }
  0xba   : > { %4954 = vmatprep.mubr.msk.bf16.mxu1 %vm648_vm1, %v6083_v57  ;;  %5010 = vmatprep.mubr.msk.bf16.mxu0 %vm648_vm1, %v6471_v24 }
  0xbb   : > { %5055 = vmatpush3.bf16.msra.mxu1 %v5526_v34  ;;  %5111 = vmatpush3.bf16.msra.mxu0 %v5527_v1  ;;  %v6550_v34 = vsel %vm1220_vm2, %v1242_v39, %v1244_v18  ;;  %v6553_v1 = vsel %vm1220_vm2, %v1244_v18, %v1246_v8  ;;  %v6585_v39 = vsel %vm1220_vm2, %v1252_v47, %v1254_v54  ;;  %v7808_v18 = vld [vmem:[#allocation30_spill] sm:$0xff] }
  0xbc   : > { %5056 = vmatprep.subr.bf16.mxu1 %v5528_v6  ;;  %5112 = vmatprep.subr.bf16.mxu0 %v5529_v30  ;;  %7798 = vst [vmem:[#allocation49_spill] sm:$0xff] %v6550_v34  ;;  %7799 = vst [vmem:[#allocation12_spill] sm:$0xff] %v6553_v1 }
  0xbd   : > { %7807 = vst [vmem:[#allocation21_spill] sm:$0xff] %v6585_v39 }
  0xbf   : > { %5057 = vmatpush3.bf16.msra.mxu1 %v5528_v6  ;;  %5113 = vmatpush3.bf16.msra.mxu0 %v5529_v30  ;;  %v7800_v6 = vld [vmem:[#allocation14_spill] sm:$0xff] }
  0xc0   : > { %5162 = vmatprep.subr.bf16.mxu1 %v6491_v22  ;;  %5218 = vmatprep.subr.bf16.mxu0 %v6493_v45  ;;  %v1248_v30 = vrot.slane %v7800_v6, 1 }
  0xc1   : > { %4955 = vmatmul.mubr.msk.bf16.gmra.mrb[32].mxu1 %vm648_vm1, %v6122_v31  ;;  %5011 = vmatmul.mubr.msk.bf16.gmra.mrb[32].mxu0 %vm648_vm1, %v6496_v32 }
  0xc2   : > { %4958 = vmatprep.mubr.msk.bf16.mxu1 %vm648_vm1, %v6155_v62  ;;  %5014 = vmatprep.mubr.msk.bf16.mxu0 %vm648_vm1, %v6499_v38  ;;  %v6566_v21 = vsel %vm1220_vm2, %v1246_v8, %v1248_v30  ;;  %v6569_v29 = vsel %vm1220_vm2, %v1248_v30, %v1250_v11  ;;  %v1256_v8 = vrot.slane %v7808_v18, 1  ;;  %v7809_v30 = vld [vmem:[#allocation33_spill] sm:$0xff] }
  0xc3   : > { %7802 = vst [vmem:[#allocation13_spill] sm:$0xff] %v6566_v21  ;;  %7803 = vst [vmem:[#allocation14_spill] sm:$0xff] %v6569_v29  ;;  %v1258_v11 = vrot.slane %v7809_v30, 1 }
  0xc4   : > { %v6598_v41 = vsel %vm1220_vm2, %v1254_v54, %v1256_v8  ;;  %v1262_v54 = vrot.slane %v7813_v3, 1 }
  0xc5   : > { %7810 = vst [vmem:[#allocation25_spill] sm:$0xff] %v6598_v41  ;;  %v6601_v47 = vsel %vm1220_vm2, %v1256_v8, %v1258_v11 }
  0xc6   : > { %7811 = vst [vmem:[#allocation30_spill] sm:$0xff] %v6601_v47  ;;  %v6617_v8 = vsel %vm1220_vm2, %v1260_v14, %v1262_v54 }
  0xc7   : > { %7815 = vst [vmem:[#allocation67_spill] sm:$0xff] %v6617_v8 }
  0xc9   : > { %4959 = vmatmul.mubr.msk.bf16.gmra.mrb[36].mxu1 %vm648_vm1, %v6182_v53  ;;  %5015 = vmatmul.mubr.msk.bf16.gmra.mrb[36].mxu0 %vm648_vm1, %v6518_v7 }
  0xca   : > { %4962 = vmatprep.mubr.msk.bf16.mxu1 %vm648_vm1, %v7787_v59  ;;  %5018 = vmatprep.mubr.msk.bf16.mxu0 %vm648_vm1, %v6521_v61  ;;  %v5542_v61 = vld [vmem:[#allocation5 + $0xc8] sm:$0xff]  }
  0xd1   : > { %4963 = vmatmul.mubr.msk.bf16.gmra.mrb[40].mxu1 %vm648_vm1, %v7790_v48  ;;  %5019 = vmatmul.mubr.msk.bf16.gmra.mrb[40].mxu0 %vm648_vm1, %v6534_v5  ;;  %v2027_v5 = vshll.u32 %v6424_v17, 16 }
  0xd2   : > { %4966 = vmatprep.mubr.msk.bf16.mxu1 %vm648_vm1, %v7793_v35  ;;  %5022 = vmatprep.mubr.msk.bf16.mxu0 %vm648_vm1, %v6537_v51 }
  0xd9   : > { %4967 = vmatmul.mubr.msk.bf16.gmra.mrb[44].mxu1 %vm648_vm1, %v6321_v0  ;;  %5023 = vmatmul.mubr.msk.bf16.gmra.mrb[44].mxu0 %vm648_vm1, %v6550_v34  ;;  %v2003_v34 = vshrl.u32 %v6401_v58, 16 }
  0xda   : > { %4970 = vmatprep.mubr.msk.bf16.mxu1 %vm648_vm1, %v7796_v52  ;;  %5026 = vmatprep.mubr.msk.bf16.mxu0 %vm648_vm1, %v6553_v1  ;;  %v1999_v1 = vshll.u32 %v6401_v58, 16 }
  0xe1   : > { %4971 = vmatmul.mubr.msk.bf16.gmra.mrb[48].mxu1 %vm648_vm1, %v7797_v37  ;;  %5027 = vmatmul.mubr.msk.bf16.gmra.mrb[48].mxu0 %vm648_vm1, %v6566_v21 }
  0xe2   : > { %4974 = vmatprep.mubr.msk.bf16.mxu1 %vm648_vm1, %v7800_v6  ;;  %5030 = vmatprep.mubr.msk.bf16.mxu0 %vm648_vm1, %v6569_v29 }
  0xe9   : > { %4975 = vmatmul.mubr.msk.bf16.gmra.mrb[52].mxu1 %vm648_vm1, %v7801_v10  ;;  %5031 = vmatmul.mubr.msk.bf16.gmra.mrb[52].mxu0 %vm648_vm1, %v6582_v4 }
  0xea   : > { %4978 = vmatprep.mubr.msk.bf16.mxu1 %vm648_vm1, %v7804_v46  ;;  %5034 = vmatprep.mubr.msk.bf16.mxu0 %vm648_vm1, %v6585_v39  ;;  %v6614_v39 = vsel %vm1220_vm2, %v1258_v11, %v1260_v14  ;;  %v6629_v11 = vrot.slane %v6335_v28, 1  ;;  %v1995_v14 = vshll.u32 %v6397_v63, 16 }
  0xeb   : > { %7814 = vst [vmem:[#allocation33_spill] sm:$0xff] %v6614_v39 }
  0xec   : > { %7817 = vst [vmem:[#allocation68_spill] sm:$0xff] %v6629_v11  ;;  %v1997_v21 = vrot.slane %v1995_v14, 1 }
  0xf1   : > { %4979 = vmatmul.mubr.msk.bf16.gmra.mrb[56].mxu1 %vm648_vm1, %v7805_v60  ;;  %5035 = vmatmul.mubr.msk.bf16.gmra.mrb[56].mxu0 %vm648_vm1, %v6598_v41 }
  0xf2   : > { %4982 = vmatprep.mubr.msk.bf16.mxu1 %vm648_vm1, %v7808_v18  ;;  %5038 = vmatprep.mubr.msk.bf16.mxu0 %vm648_vm1, %v6601_v47  ;;  %v7816_v47 = vld [vmem:[#allocation51_spill] sm:$0xff] }
  0xf3   : > { %v1264_v41 = vrot.slane %v7816_v47, 1 }
  0xf5   : > { %v6633_v4 = vsel %vm1220_vm2, %v1262_v54, %v1264_v41  ;;  %v6637_v29 = vsel %vm1220_vm2, %v1264_v41, %v6629_v11  ;;  %v1268_v41 = vrot.slane %v6359_v12, 1 }
  0xf6   : > { %7818 = vst [vmem:[#allocation69_spill] sm:$0xff] %v6633_v4  ;;  %7819 = vst [vmem:[#allocation70_spill] sm:$0xff] %v6637_v29 }
  0xf7   : > { %v1269_v14 = vsel %vm1220_vm2, %v6629_v11, %v1268_v41  ;;  %v2020_v41 = vshll.u32 %v6420_v16, 16  ;;  %v2024_v11 = vshrl.u32 %v6420_v16, 16 }
  0xf9   : > { %4983 = vmatmul.mubr.msk.bf16.gmra.mrb[60].mxu1 %vm648_vm1, %v7809_v30  ;;  %5039 = vmatmul.mubr.msk.bf16.gmra.mrb[60].mxu0 %vm648_vm1, %v6614_v39  ;;  %v1993_v39 = vshrl.u32 %v6397_v63, 16 }
  0xfa   : > { %4986 = vmatprep.mubr.msk.bf16.mxu1 %vm648_vm1, %v7812_v36  ;;  %5042 = vmatprep.mubr.msk.bf16.mxu0 %vm648_vm1, %v6617_v8  ;;  %v2001_v8 = vrot.slane %v1999_v1, 1  ;;  %v2008_v1 = vrot.slane %v2006_v56, 1 }
  0xfb   : > { %v1998_v54 = vor.u32 %v1997_v21, %v1993_v39  ;;  %v2015_v39 = vrot.slane %v2013_v26, 1  ;;  %v2022_v26 = vrot.slane %v2020_v41, 1 }
  0xfc   : > { %v2005_v12 = vor.u32 %v2003_v34, %v2001_v8  ;;  %v2029_v34 = vrot.slane %v2027_v5, 1  ;;  %v5557_v5 = vld [vmem:[#allocation5 + $0xb8] sm:$0xff]  }
  0xfd   : > { %v2002_v51 = vsel %vm427_vm0, %v1998_v54, %v2001_v8  ;;  %v5550_v8 = vld [vmem:[#allocation5 + $0xd0] sm:$0xff]  }
  0xfe   : > { %v2009_v54 = vsel %vm427_vm0, %v2005_v12, %v2008_v1  ;;  %v2034_v12 = vshll.u32 %v6429_v44, 16 }
 0x101   : > { %4987 = vmatmul.mubr.msk.bf16.gmra.mrb[64].mxu1 %vm648_vm1, %v7813_v3  ;;  %5043 = vmatmul.mubr.msk.bf16.gmra.mrb[64].mxu0 %vm648_vm1, %v6633_v4  ;;  %v2010_v4 = vshrl.u32 %v6405_v40, 16 }
 0x102   : > { %4990 = vmatprep.mubr.msk.bf16.mxu1 %vm648_vm1, %v7816_v47  ;;  %5046 = vmatprep.mubr.msk.bf16.mxu0 %vm648_vm1, %v6637_v29  ;;  %v2017_v29 = vshrl.u32 %v6409_v33, 16  ;;  %v6836_v47 = vld [vmem:[%s5974_s21 + $0xcc] sm:$0xf] }
 0x103   : > { %v2012_v21 = vor.u32 %v2010_v4, %v2008_v1  ;;  %v5549_v4 = vld [vmem:[#allocation5 + $0xb0] sm:$0xff]  }
 0x104   : > { %v2019_v56 = vor.u32 %v2017_v29, %v2015_v39  ;;  %v2038_v29 = vshrl.u32 %v6429_v44, 16 }
 0x106   : > { %v2023_v1 = vsel %vm427_vm0, %v2019_v56, %v2022_v26 }
 0x109   : > { %4991 = vmatmul.mubr.msk.bf16.gmra.mrb[68].mxu1 %vm648_vm1, %v6335_v28  ;;  %5047 = vmatmul.mubr.msk.bf16.gmra.mrb[68].mxu0 %vm648_vm1, %v1269_v14  ;;  %v2016_v14 = vsel %vm427_vm0, %v2012_v21, %v2015_v39  ;;  %v2041_v21 = vshll.u32 %v6435_v25, 16  ;;  %v2036_v39 = vrot.slane %v2034_v12, 1 }
 0x10a   : > { %5058 = vmatprep.mubr.msk.bf16.mxu1 %vm648_vm1, %v6397_v63  ;;  %5114 = vmatprep.mubr.msk.bf16.mxu0 %vm648_vm1, %v2002_v51  ;;  %v2026_v51 = vor.u32 %v2024_v11, %v2022_v26  ;;  %v5558_v11 = vld [vmem:[#allocation5 + $0xd8] sm:$0xff]   ;;  %v2048_v26 = vshll.u32 %v6442_v42, 16 }
 0x10b   : > { %v2043_v41 = vrot.slane %v2041_v21, 1 }
 0x111   : > { %5059 = vmatmul.mubr.msk.bf16.vlgmr.msra.gmra.mrb[72].mxu1 %vm648_vm1, %v6401_v58  ;;  %5115 = vmatmul.mubr.msk.bf16.vlgmr.msra.gmra.mrb[72].mxu0 %vm648_vm1, %v2009_v54  ;;  %v6689_v54 = vld [vmem:[#allocation5 + $0xe0] sm:$0xff]  }
 0x112   : > { %5163 = vmatpush3.bf16.msra.mxu1 %v6491_v22  ;;  %5219 = vmatpush3.bf16.msra.mxu0 %v6493_v45  ;;  %v2031_v22 = vshrl.u32 %v6424_v17, 16  ;;  %v2030_v45 = vsel %vm427_vm0, %v2026_v51, %v2029_v34  ;;  %v2045_v51 = vshrl.u32 %v6435_v25, 16 }
 0x113   : > { %5062 = vmatprep.mubr.msk.bf16.mxu1 %vm648_vm1, %v6405_v40  ;;  %5118 = vmatprep.mubr.msk.bf16.mxu0 %vm648_vm1, %v2016_v14  ;;  %v6691_v14 = vld [vmem:[#allocation5 + $0x100] sm:$0xff]  }
 0x114   : > { %5164 = vmatprep.subr.bf16.mxu1 %v5541_v2  ;;  %5220 = vmatprep.subr.bf16.mxu0 %v5542_v61 }
 0x116   : > { %5165 = vmatpush3.bf16.msra.mxu1 %v5541_v2  ;;  %5221 = vmatpush3.bf16.msra.mxu0 %v5542_v61  ;;  %v2033_v2 = vor.u32 %v2031_v22, %v2029_v34  ;;  %v2040_v61 = vor.u32 %v2038_v29, %v2036_v39  ;;  %v2052_v34 = vshrl.u32 %v6442_v42, 16  ;;  %v2062_v29 = vshll.u32 %v6457_v13, 16 }
 0x117   : > { %5166 = vmatprep.subr.bf16.mxu1 %v5549_v4  ;;  %5222 = vmatprep.subr.bf16.mxu0 %v5550_v8 }
 0x118   : > { %v2037_v56 = vsel %vm427_vm0, %v2033_v2, %v2036_v39  ;;  %v2044_v12 = vsel %vm427_vm0, %v2040_v61, %v2043_v41  ;;  %v2066_v39 = vshrl.u32 %v6457_v13, 16  ;;  %v2069_v2 = vshll.u32 %v6461_v23, 16 }
 0x119   : > { %5063 = vmatmul.mubr.msk.bf16.gmra.mrb[76].mxu1 %vm648_vm1, %v6409_v33  ;;  %5119 = vmatmul.mubr.msk.bf16.gmra.mrb[76].mxu0 %vm648_vm1, %v2023_v1  ;;  %v2055_v1 = vshll.u32 %v6449_v43, 16  ;;  %v2064_v61 = vrot.slane %v2062_v29, 1 }
 0x11a   : > { %5066 = vmatprep.mubr.msk.bf16.mxu1 %vm648_vm1, %v6420_v16  ;;  %5122 = vmatprep.mubr.msk.bf16.mxu0 %vm648_vm1, %v2030_v45 }
 0x11b   : > { %5167 = vmatpush3.bf16.msra.mxu1 %v5549_v4  ;;  %5223 = vmatpush3.bf16.msra.mxu0 %v5550_v8  ;;  %v2050_v4 = vrot.slane %v2048_v26, 1  ;;  %v2047_v8 = vor.u32 %v2045_v51, %v2043_v41  ;;  %v2057_v45 = vrot.slane %v2055_v1, 1  ;;  %v2068_v26 = vor.u32 %v2066_v39, %v2064_v61 }
 0x11c   : > { %5168 = vmatprep.subr.bf16.mxu1 %v5557_v5  ;;  %5224 = vmatprep.subr.bf16.mxu0 %v5558_v11  ;;  %v2076_v51 = vshll.u32 %v6465_v55, 16 }
 0x11d   : > { %v2054_v22 = vor.u32 %v2052_v34, %v2050_v4  ;;  %v2051_v21 = vsel %vm427_vm0, %v2047_v8, %v2050_v4  ;;  %v2073_v34 = vshrl.u32 %v6461_v23, 16  ;;  %v2080_v4 = vshrl.u32 %v6465_v55, 16 }
 0x11e   : > { %v2083_v8 = vshll.u32 %v6479_v9, 16 }
 0x11f   : > { %5169 = vmatpush3.bf16.msra.mxu1 %v5557_v5  ;;  %5225 = vmatpush3.bf16.msra.mxu0 %v5558_v11  ;;  %v2059_v5 = vshrl.u32 %v6449_v43, 16  ;;  %v2058_v11 = vsel %vm427_vm0, %v2054_v22, %v2057_v45  ;;  %v2078_v22 = vrot.slane %v2076_v51, 1  ;;  %v2094_v51 = vshrl.u32 %v6489_v19, 16 }
 0x120   : > { %5274 = vmatprep.subr.bf16.mxu1 %v6689_v54  ;;  %5330 = vmatprep.subr.bf16.mxu0 %v6691_v14 }
 0x121   : > { %5067 = vmatmul.mubr.msk.bf16.gmra.mrb[80].mxu1 %vm648_vm1, %v6424_v17  ;;  %5123 = vmatmul.mubr.msk.bf16.gmra.mrb[80].mxu0 %vm648_vm1, %v2037_v56  ;;  %v2061_v41 = vor.u32 %v2059_v5, %v2057_v45  ;;  %v2071_v56 = vrot.slane %v2069_v2, 1  ;;  %v2082_v29 = vor.u32 %v2080_v4, %v2078_v22  ;;  %v7820_v5 = vld [vmem:[#allocation22_spill] sm:$0xff]  ;;  %v2090_v2 = vshll.u32 %v6489_v19, 16 }
 0x122   : > { %5070 = vmatprep.mubr.msk.bf16.mxu1 %vm648_vm1, %v6429_v44  ;;  %5126 = vmatprep.mubr.msk.bf16.mxu0 %vm648_vm1, %v2044_v12 }
 0x123   : > { %v2065_v12 = vsel %vm427_vm0, %v2061_v41, %v2064_v61  ;;  %v2072_v1 = vsel %vm427_vm0, %v2068_v26, %v2071_v56  ;;  %v2075_v45 = vor.u32 %v2073_v34, %v2071_v56  ;;  %v2087_v41 = vshrl.u32 %v6479_v9, 16 }
 0x124   : > { %v2092_v56 = vrot.slane %v2090_v2, 1 }
 0x125   : > { %v2079_v61 = vsel %vm427_vm0, %v2075_v45, %v2078_v22  ;;  %v7823_v22 = vld [vmem:[#allocation28_spill] sm:$0xff] }
 0x129   : > { %5071 = vmatmul.mubr.msk.bf16.gmra.mrb[84].mxu1 %vm648_vm1, %v6435_v25  ;;  %5127 = vmatmul.mubr.msk.bf16.gmra.mrb[84].mxu0 %vm648_vm1, %v2051_v21  ;;  %v2085_v21 = vrot.slane %v2083_v8, 1  ;;  %v7822_v8 = vld [vmem:[#allocation31_spill] sm:$0xff] }
 0x12a   : > { %5074 = vmatprep.mubr.msk.bf16.mxu1 %vm648_vm1, %v6442_v42  ;;  %5130 = vmatprep.mubr.msk.bf16.mxu0 %vm648_vm1, %v2058_v11  ;;  %v7821_v11 = vld [vmem:[#allocation19_spill] sm:$0xff]  ;;  %v6749_v45 = vcombine.low %v7823_v22, %v7822_v8  ;;  %v7828_v8 = vld [vmem:[#allocation37_spill] sm:$0xff] }
 0x12b   : > { %v6733_v39 = vcombine.low %v7821_v11, %v7820_v5  ;;  %v2086_v26 = vsel %vm427_vm0, %v2082_v29, %v2085_v21  ;;  %v2089_v34 = vor.u32 %v2087_v41, %v2085_v21  ;;  %v2104_v29 = vshll.u32 %v6514_v15, 16  ;;  %v7824_v41 = vld [vmem:[#allocation35_spill] sm:$0xff] }
 0x12c   : > { %v2111_v50 = vshll.u32 %v6749_v45, 16 }
 0x12d   : > { %v2093_v5 = vsel %vm427_vm0, %v2089_v34, %v2092_v56  ;;  %v2101_v11 = vshrl.u32 %v6733_v39, 16  ;;  %v2106_v21 = vrot.slane %v2104_v29, 1 }
 0x12e   : > { %v2113_v34 = vrot.slane %v2111_v50, 1 }
 0x131   : > { %5075 = vmatmul.mubr.msk.bf16.gmra.mrb[88].mxu1 %vm648_vm1, %v6449_v43  ;;  %5131 = vmatmul.mubr.msk.bf16.gmra.mrb[88].mxu0 %vm648_vm1, %v2065_v12  ;;  %v2097_v12 = vshll.u32 %v6733_v39, 16 }
 0x132   : > { %5078 = vmatprep.mubr.msk.bf16.mxu1 %vm648_vm1, %v6457_v13  ;;  %5134 = vmatprep.mubr.msk.bf16.mxu0 %vm648_vm1, %v2072_v1  ;;  %v2096_v1 = vor.u32 %v2094_v51, %v2092_v56 }
 0x133   : > { %v2099_v4 = vrot.slane %v2097_v12, 1 }
 0x135   : > { %v2100_v2 = vsel %vm427_vm0, %v2096_v1, %v2099_v4  ;;  %v2103_v12 = vor.u32 %v2101_v11, %v2099_v4  ;;  %v7827_v1 = vld [vmem:[#allocation42_spill] sm:$0xff]  ;;  %v7830_v4 = vld [vmem:[#allocation48_spill] sm:$0xff]  ;;  %v7831_v11 = vld [vmem:[#allocation45_spill] sm:$0xff] }
 0x136   : > { %v6769_v22 = vcombine.low %v7828_v8, %v7827_v1  ;;  %v7834_v1 = vld [vmem:[#allocation50_spill] sm:$0xff] }
 0x137   : > { %v2107_v29 = vsel %vm427_vm0, %v2103_v12, %v2106_v21 }
 0x138   : > { %7829 = vst [vmem:[#allocation19_spill] sm:$0xff] %v6769_v22  ;;  %v2125_v38 = vshll.u32 %v6769_v22, 16  ;;  %v2129_v32 = vshrl.u32 %v6769_v22, 16 }
 0x139   : > { %5079 = vmatmul.mubr.msk.bf16.gmra.mrb[92].mxu1 %vm648_vm1, %v6461_v23  ;;  %5135 = vmatmul.mubr.msk.bf16.gmra.mrb[92].mxu0 %vm648_vm1, %v2079_v61  ;;  %v2108_v61 = vshrl.u32 %v6514_v15, 16 }
 0x13a   : > { %5082 = vmatprep.mubr.msk.bf16.mxu1 %vm648_vm1, %v6465_v55  ;;  %5138 = vmatprep.mubr.msk.bf16.mxu0 %vm648_vm1, %v2086_v26  ;;  %v7825_v26 = vld [vmem:[#allocation32_spill] sm:$0xff]  ;;  %v2127_v12 = vrot.slane %v2125_v38, 1  ;;  %v7836_v38 = vld [vmem:[#allocation53_spill] sm:$0xff] }
 0x13b   : > { %v6762_v51 = vcombine.low %v7825_v26, %v7824_v41  ;;  %v2110_v56 = vor.u32 %v2108_v61, %v2106_v21 }
 0x13d   : > { %7826 = vst [vmem:[#allocation22_spill] sm:$0xff] %v6762_v51  ;;  %v2118_v7 = vshll.u32 %v6762_v51, 16  ;;  %v2114_v41 = vsel %vm427_vm0, %v2110_v56, %v2113_v34  ;;  %v2122_v26 = vshrl.u32 %v6762_v51, 16  ;;  %v7833_v56 = vld [vmem:[#allocation52_spill] sm:$0xff] }
 0x13e   : > { %v6789_v8 = vcombine.low %v7834_v1, %v7833_v56 }
 0x13f   : > { %v2120_v50 = vrot.slane %v2118_v7, 1 }
 0x140   : > { %7835 = vst [vmem:[#allocation28_spill] sm:$0xff] %v6789_v8  ;;  %v2139_v24 = vshll.u32 %v6789_v8, 16 }
 0x141   : > { %5083 = vmatmul.mubr.msk.bf16.gmra.mrb[96].mxu1 %vm648_vm1, %v6479_v9  ;;  %5139 = vmatmul.mubr.msk.bf16.gmra.mrb[96].mxu0 %vm648_vm1, %v2093_v5  ;;  %v2115_v5 = vshrl.u32 %v6749_v45, 16  ;;  %v2124_v21 = vor.u32 %v2122_v26, %v2120_v50 }
 0x142   : > { %5086 = vmatprep.mubr.msk.bf16.mxu1 %vm648_vm1, %v6489_v19  ;;  %5142 = vmatprep.mubr.msk.bf16.mxu0 %vm648_vm1, %v2100_v2  ;;  %v6782_v2 = vcombine.low %v7831_v11, %v7830_v4 }
 0x143   : > { %v2117_v61 = vor.u32 %v2115_v5, %v2113_v34  ;;  %v2128_v4 = vsel %vm427_vm0, %v2124_v21, %v2127_v12  ;;  %v6801_v34 = vld [vmem:[%s5974_s21 + $0xc8] sm:$0xf]  ;;  %v6805_v5 = vcombine.low %v7836_v38, %v6338_v27  ;;  %v2141_v21 = vrot.slane %v2139_v24, 1 }
 0x144   : > { %7832 = vst [vmem:[#allocation31_spill] sm:$0xff] %v6782_v2  ;;  %v2136_v11 = vshrl.u32 %v6782_v2, 16  ;;  %v2143_v24 = vshrl.u32 %v6789_v8, 16 }
 0x145   : > { %v2121_v7 = vsel %vm427_vm0, %v2117_v61, %v2120_v50  ;;  %7837 = vst [vmem:[#allocation35_spill] sm:$0xff] %v6805_v5  ;;  %v2131_v50 = vor.u32 %v2129_v32, %v2127_v12 }
 0x149   : > { %5087 = vmatmul.mubr.msk.bf16.gmra.mrb[100].mxu1 %vm648_vm1, %v6733_v39  ;;  %5143 = vmatmul.mubr.msk.bf16.gmra.mrb[100].mxu0 %vm648_vm1, %v2107_v29  ;;  %v2132_v29 = vshll.u32 %v6782_v2, 16 }
 0x14a   : > { %5090 = vmatprep.mubr.msk.bf16.mxu1 %vm648_vm1, %v6514_v15  ;;  %5146 = vmatprep.mubr.msk.bf16.mxu0 %vm648_vm1, %v2114_v41  ;;  %v6798_v41 = vld [vmem:[%s5974_s21 + $0xc4] sm:$0xf] }
 0x14b   : > { %v2134_v26 = vrot.slane %v2132_v29, 1  ;;  %v6815_v56 = vcombine.low %v6798_v41, %v6801_v34  ;;  %v2146_v29 = vshll.u32 %v6805_v5, 16 }
 0x14d   : > { %v2138_v61 = vor.u32 %v2136_v11, %v2134_v26  ;;  %v2135_v32 = vsel %vm427_vm0, %v2131_v50, %v2134_v26  ;;  %v2148_v26 = vrot.slane %v2146_v29, 1  ;;  %v2145_v50 = vor.u32 %v2143_v24, %v2141_v21 }
 0x14e   : > { %v2157_v24 = vshrl.u32 %v6815_v56, 16 }
 0x14f   : > { %v2142_v11 = vsel %vm427_vm0, %v2138_v61, %v2141_v21  ;;  %v6846_v61 = vcombine.low %v6836_v47, %v6836_v47  ;;  %v2149_v21 = vsel %vm427_vm0, %v2145_v50, %v2148_v26  ;;  %v2511_v50 = vrot.slane %v6397_v63, 1 }
 0x151   : > { %5091 = vmatmul.mubr.msk.bf16.gmra.mrb[104].mxu1 %vm648_vm1, %v6749_v45  ;;  %5147 = vmatmul.mubr.msk.bf16.gmra.mrb[104].mxu0 %vm648_vm1, %v2121_v7  ;;  %7841 = vst [vmem:[#allocation48_spill] sm:$0xff] %v6846_v61 }
 0x152   : > { %5094 = vmatprep.mubr.msk.bf16.mxu1 %vm648_vm1, %v6762_v51  ;;  %5150 = vmatprep.mubr.msk.bf16.mxu0 %vm648_vm1, %v2128_v4 }
 0x154   : > { %v4892_v27 = vpop.f32.mrb[0].mxu0  ;;  %v4916_v1 = vpop.f32.mrb[0].mxu1 }
 0x155   : > { %v6817_v38 = vpop.f32.mrb[1].mxu0  ;;  %v6819_v20 = vpop.f32.mrb[1].mxu1  ;;  %v2150_v27 = vshrl.u32 %v6805_v5, 16  ;;  %v2153_v1 = vshll.u32 %v6815_v56, 16 }
 0x156   : > { %7838 = vst [vmem:[#allocation32_spill] sm:$0xff] %v6819_v20  ;;  %v6822_v7 = vpop.f32.mrb[2].mxu0  ;;  %v6824_v28 = vpop.f32.mrb[2].mxu1 }
 0x157   : > { %7839 = vst [vmem:[#allocation42_spill] sm:$0xff] %v6824_v28  ;;  %v6828_v12 = vpop.f32.mrb[3].mxu0  ;;  %v6830_v4 = vpop.f32.mrb[3].mxu1  ;;  %v2155_v28 = vrot.slane %v2153_v1, 1 }
 0x158   : > { %7840 = vst [vmem:[#allocation37_spill] sm:$0xff] %v6830_v4  ;;  %v2152_v4 = vor.u32 %v2150_v27, %v2148_v26 }
 0x159   : > { %5095 = vmatmul.mubr.msk.bf16.gmra.mrb[108].mxu1 %vm648_vm1, %v6769_v22  ;;  %5151 = vmatmul.mubr.msk.bf16.gmra.mrb[108].mxu0 %vm648_vm1, %v2135_v32 }
 0x15a   : > { %5098 = vmatprep.mubr.msk.bf16.mxu1 %vm648_vm1, %v6782_v2  ;;  %5154 = vmatprep.mubr.msk.bf16.mxu0 %vm648_vm1, %v2142_v11  ;;  %v2161_v11 = vshll.u32 %v6846_v61, 16  ;;  %v2156_v22 = vsel %vm427_vm0, %v2152_v4, %v2155_v28  ;;  %v2512_v61 = vrot.slane %v6401_v58, 1 }
 0x15c   : > { %v6848_v20 = vpop.f32.mrb[4].mxu0  ;;  %v6850_v3 = vpop.f32.mrb[4].mxu1  ;;  %v2163_v26 = vrot.slane %v2161_v11, 1 }
 0x15d   : > { %7842 = vst [vmem:[#allocation45_spill] sm:$0xff] %v6850_v3  ;;  %v6852_v36 = vpop.f32.mrb[5].mxu0  ;;  %v6854_v32 = vpop.f32.mrb[5].mxu1 }
 0x15e   : > { %7843 = vst [vmem:[#allocation52_spill] sm:$0xff] %v6854_v32  ;;  %v6856_v29 = vpop.f32.mrb[6].mxu0  ;;  %v6858_v2 = vpop.f32.mrb[6].mxu1 }
 0x15f   : > { %7844 = vst [vmem:[#allocation50_spill] sm:$0xff] %v6858_v2  ;;  %v773_v27 = vpop.f32.mrb[7].mxu0  ;;  %v861_v1 = vpop.f32.mrb[7].mxu1  ;;  %v2159_v2 = vor.u32 %v2157_v24, %v2155_v28  ;;  %v2513_v28 = vsel %vm1220_vm2, %v2511_v50, %v2512_v61 }
 0x161   : > { %5099 = vmatmul.mubr.msk.bf16.gmra.mrb[112].mxu1 %vm648_vm1, %v6789_v8  ;;  %5155 = vmatmul.mubr.msk.bf16.gmra.mrb[112].mxu0 %vm648_vm1, %v2149_v21  ;;  %v2164_v21 = vsel %vm427_vm0, %v2159_v2, %v2163_v26 }
 0x162   : > { %5102 = vmatprep.mubr.msk.bf16.mxu1 %vm648_vm1, %v6805_v5  ;;  %5158 = vmatprep.mubr.msk.bf16.mxu0 %vm648_vm1, %v2156_v22  ;;  %v2516_v22 = vrot.slane %v6409_v33, 1  ;;  %v2518_v33 = vrot.slane %v6420_v16, 1 }
 0x164   : > { %v6872_v27 = vpop.f32.mrb[8].mxu0  ;;  %v6874_v1 = vpop.f32.mrb[8].mxu1 }
 0x165   : > { %v785_v4 = vpop.f32.mrb[9].mxu0  ;;  %v873_v32 = vpop.f32.mrb[9].mxu1 }
 0x166   : > { %v4901_v3 = vpop.f32.mrb[10].mxu0  ;;  %v4925_v8 = vpop.f32.mrb[10].mxu1  ;;  %v5565_v4 = vld [vmem:[#allocation5 + $0x108] sm:$0xff]  }
 0x167   : > { %v6877_v51 = vpop.f32.mrb[11].mxu0  ;;  %v6879_v5 = vpop.f32.mrb[11].mxu1  ;;  %v2514_v3 = vrot.slane %v6405_v40, 1  ;;  %v5564_v40 = vld [vmem:[#allocation5 + $0xe8] sm:$0xff]  }
 0x169   : > { %5103 = vmatmul.mubr.msk.bf16.gmra.mrb[116].mxu1 %vm648_vm1, %v6815_v56  ;;  %5159 = vmatmul.mubr.msk.bf16.gmra.mrb[116].mxu0 %vm648_vm1, %v2164_v21  ;;  %v2515_v11 = vsel %vm1220_vm2, %v2512_v61, %v2514_v3  ;;  %v2520_v61 = vrot.slane %v6424_v17, 1  ;;  %v5566_v21 = vld [vmem:[#allocation5 + $0xf0] sm:$0xff]  }
 0x16a   : > { %5170 = vmatprep.mubr.msk.bf16.mxu1 %vm648_vm1, %v2513_v28  ;;  %5226 = vmatprep.mubr.msk.bf16.mxu0 %vm648_vm1, %v6065_v49  ;;  %v2517_v49 = vsel %vm1220_vm2, %v2514_v3, %v2516_v22  ;;  %v5567_v28 = vld [vmem:[#allocation5 + $0x110] sm:$0xff]  }
 0x16c   : > { %v4904_v63 = vpop.f32.mrb[12].mxu0  ;;  %v4928_v58 = vpop.f32.mrb[12].mxu1 }
 0x16d   : > { %v6890_v2 = vpop.f32.mrb[13].mxu0  ;;  %v6892_v8 = vpop.f32.mrb[13].mxu1 }
 0x16e   : > { %v6894_v32 = vpop.f32.mrb[14].mxu0  ;;  %v6896_v24 = vpop.f32.mrb[14].mxu1 }
 0x16f   : > { %v6899_v26 = vpop.f32.mrb[15].mxu0  ;;  %v6901_v50 = vpop.f32.mrb[15].mxu1 }
 0x171   : > { %5171 = vmatmul.mubr.msk.bf16.vlgmr.msra.gmra.mrb[120].mxu1 %vm648_vm1, %v2515_v11  ;;  %5227 = vmatmul.mubr.msk.bf16.vlgmr.msra.gmra.mrb[120].mxu0 %vm648_vm1, %v6083_v57  ;;  %v2521_v11 = vsel %vm1220_vm2, %v2518_v33, %v2520_v61 }
 0x172   : > { %5275 = vmatpush3.bf16.msra.mxu1 %v6689_v54  ;;  %5331 = vmatpush3.bf16.msra.mxu0 %v6691_v14 }
 0x173   : > { %5174 = vmatprep.mubr.msk.bf16.mxu1 %vm648_vm1, %v2517_v49  ;;  %5230 = vmatprep.mubr.msk.bf16.mxu0 %vm648_vm1, %v6122_v31  ;;  %v2519_v31 = vsel %vm1220_vm2, %v2516_v22, %v2518_v33  ;;  %v5568_v49 = vld [vmem:[#allocation5 + $0xf8] sm:$0xff]   ;;  %v2522_v22 = vrot.slane %v6429_v44, 1 }
 0x174   : > { %v6914_v3 = vpop.f32.mrb[16].mxu0  ;;  %v6916_v63 = vpop.f32.mrb[16].mxu1  ;;  %5276 = vmatprep.subr.bf16.mxu1 %v5564_v40  ;;  %5332 = vmatprep.subr.bf16.mxu0 %v5565_v4 }
 0x175   : > { %7845 = vst [vmem:[#allocation53_spill] sm:$0xff] %v6916_v63  ;;  %v6918_v57 = vpop.f32.mrb[17].mxu0  ;;  %v6920_v54 = vpop.f32.mrb[17].mxu1  ;;  %v5569_v63 = vld [vmem:[#allocation5 + $0x118] sm:$0xff]  }
 0x176   : > { %v6922_v16 = vpop.f32.mrb[18].mxu0  ;;  %v6924_v14 = vpop.f32.mrb[18].mxu1  ;;  %5277 = vmatpush3.bf16.msra.mxu1 %v5564_v40  ;;  %5333 = vmatpush3.bf16.msra.mxu0 %v5565_v4  ;;  %v2524_v40 = vrot.slane %v6435_v25, 1  ;;  %v2526_v25 = vrot.slane %v6442_v42, 1 }
 0x177   : > { %7846 = vst [vmem:[#allocation71_spill] sm:$0xff] %v6924_v14  ;;  %v817_v17 = vpop.f32.mrb[19].mxu0  ;;  %v905_v58 = vpop.f32.mrb[19].mxu1  ;;  %5278 = vmatprep.subr.bf16.mxu1 %v5566_v21  ;;  %5334 = vmatprep.subr.bf16.mxu0 %v5567_v28 }
 0x178   : > { %v2525_v44 = vsel %vm1220_vm2, %v2522_v22, %v2524_v40 }
 0x179   : > { %5175 = vmatmul.mubr.msk.bf16.gmra.mrb[124].mxu1 %vm648_vm1, %v2519_v31  ;;  %5231 = vmatmul.mubr.msk.bf16.gmra.mrb[124].mxu0 %vm648_vm1, %v6155_v62 }
 0x17a   : > { %5178 = vmatprep.mubr.msk.bf16.mxu1 %vm648_vm1, %v2521_v11  ;;  %5234 = vmatprep.mubr.msk.bf16.mxu0 %vm648_vm1, %v6182_v53  ;;  %v2523_v11 = vsel %vm1220_vm2, %v2520_v61, %v2522_v22  ;;  %v2528_v61 = vrot.slane %v6449_v43, 1 }
 0x17b   : > { %5279 = vmatpush3.bf16.msra.mxu1 %v5566_v21  ;;  %5335 = vmatpush3.bf16.msra.mxu0 %v5567_v28 }
 0x17c   : > { %v6936_v4 = vpop.f32.mrb[20].mxu0  ;;  %v6938_v33 = vpop.f32.mrb[20].mxu1  ;;  %5280 = vmatprep.subr.bf16.mxu1 %v5568_v49  ;;  %5336 = vmatprep.subr.bf16.mxu0 %v5569_v63 }
 0x17d   : > { %v829_v31 = vpop.f32.mrb[21].mxu0  ;;  %v917_v17 = vpop.f32.mrb[21].mxu1 }
 0x17e   : > { %v4913_v62 = vpop.f32.mrb[22].mxu0  ;;  %v4937_v58 = vpop.f32.mrb[22].mxu1 }
 0x17f   : > { %v6941_v14 = vpop.f32.mrb[23].mxu0  ;;  %v6943_v53 = vpop.f32.mrb[23].mxu1  ;;  %5281 = vmatpush3.bf16.msra.mxu1 %v5568_v49  ;;  %5337 = vmatpush3.bf16.msra.mxu0 %v5569_v63  ;;  %v2527_v62 = vsel %vm1220_vm2, %v2524_v40, %v2526_v25  ;;  %v2532_v40 = vrot.slane %v6461_v23, 1 }
 0x181   : > { %5179 = vmatmul.mubr.msk.bf16.gmra.mrb[128].mxu1 %vm648_vm1, %v2523_v11  ;;  %5235 = vmatmul.mubr.msk.bf16.gmra.mrb[128].mxu0 %vm648_vm1, %v7787_v59 }
 0x182   : > { %5182 = vmatprep.mubr.msk.bf16.mxu1 %vm648_vm1, %v2525_v44  ;;  %5238 = vmatprep.mubr.msk.bf16.mxu0 %vm648_vm1, %v7790_v48  ;;  %v2529_v48 = vsel %vm1220_vm2, %v2526_v25, %v2528_v61 }
 0x184   : > { %v4948_v21 = vpop.f32.mrb[24].mxu1  ;;  %v5004_v28 = vpop.f32.mrb[24].mxu0 }
 0x185   : > { %v1036_v31 = vpop.f32.mrb[25].mxu1  ;;  %v1400_v22 = vpop.f32.mrb[25].mxu0 }
 0x186   : > { %v1037_v63 = vadd.f32 %v1036_v31, %v6817_v38  ;;  %v4949_v49 = vpop.f32.mrb[26].mxu1  ;;  %v5005_v17 = vpop.f32.mrb[26].mxu0 }
 0x187   : > { %v1047_v59 = vadd.f32 %v4949_v49, %v6822_v7  ;;  %v1039_v58 = vpop.f32.mrb[27].mxu1  ;;  %v1403_v11 = vpop.f32.mrb[27].mxu0  ;;  %v2530_v7 = vrot.slane %v6457_v13, 1 }
 0x188   : > { %v6958_v44 = vadd.f32 %v1400_v22, %v1037_v63  ;;  %v1040_v42 = vadd.f32 %v1039_v58, %v6828_v12 }
 0x189   : > { %v6961_v43 = vadd.f32 %v5005_v17, %v1047_v59  ;;  %5183 = vmatmul.mubr.msk.bf16.gmra.mrb[132].mxu1 %vm648_vm1, %v2527_v62  ;;  %5239 = vmatmul.mubr.msk.bf16.gmra.mrb[132].mxu0 %vm648_vm1, %v7793_v35  ;;  %v2531_v49 = vsel %vm1220_vm2, %v2528_v61, %v2530_v7  ;;  %v2533_v23 = vsel %vm1220_vm2, %v2530_v7, %v2532_v40 }
 0x18a   : > { %v6966_v38 = vadd.f32 %v1403_v11, %v1040_v42  ;;  %5186 = vmatprep.mubr.msk.bf16.mxu1 %vm648_vm1, %v2529_v48  ;;  %5242 = vmatprep.mubr.msk.bf16.mxu0 %vm648_vm1, %v6321_v0 }
 0x18c   : > { %v4952_v25 = vpop.f32.mrb[28].mxu1  ;;  %v5008_v12 = vpop.f32.mrb[28].mxu0 }
 0x18d   : > { %v1059_v21 = vadd.f32 %v4952_v25, %v6848_v20  ;;  %v1051_v28 = vpop.f32.mrb[29].mxu1  ;;  %v1415_v31 = vpop.f32.mrb[29].mxu0  ;;  %v2536_v20 = vrot.slane %v6479_v9, 1 }
 0x18e   : > { %v1052_v22 = vadd.f32 %v1051_v28, %v6852_v36  ;;  %v4953_v35 = vpop.f32.mrb[30].mxu1  ;;  %v5009_v63 = vpop.f32.mrb[30].mxu0  ;;  %v2534_v36 = vrot.slane %v6465_v55, 1 }
 0x18f   : > { %v6976_v17 = vadd.f32 %v5008_v12, %v1059_v21  ;;  %v1062_v0 = vadd.f32 %v4953_v35, %v6856_v29  ;;  %v1054_v62 = vpop.f32.mrb[31].mxu1  ;;  %v1418_v13 = vpop.f32.mrb[31].mxu0 }
 0x190   : > { %v6980_v59 = vadd.f32 %v1415_v31, %v1052_v22  ;;  %v5574_v31 = vld [vmem:[%s5974_s21 + $0xc0] sm:$0xf]  ;;  %v2540_v22 = vrot.slane %v6733_v39, 1 }
 0x191   : > { %v6982_v58 = vadd.f32 %v5009_v63, %v1062_v0  ;;  %5187 = vmatmul.mubr.msk.bf16.gmra.mrb[136].mxu1 %vm648_vm1, %v2531_v49  ;;  %5243 = vmatmul.mubr.msk.bf16.gmra.mrb[136].mxu0 %vm648_vm1, %v7796_v52  ;;  %v2535_v52 = vsel %vm1220_vm2, %v2532_v40, %v2534_v36  ;;  %v7000_v9 = vcombine.low %v5574_v31, %v6798_v41 }
 0x192   : > { %5190 = vmatprep.mubr.msk.bf16.mxu1 %vm648_vm1, %v2533_v23  ;;  %5246 = vmatprep.mubr.msk.bf16.mxu0 %vm648_vm1, %v7797_v37  ;;  %v2537_v37 = vsel %vm1220_vm2, %v2534_v36, %v2536_v20 }
 0x193   : > { %v3199_v41 = vshll.u32 %v7000_v9, 16 }
 0x194   : > { %v4956_v29 = vpop.f32.mrb[32].mxu1  ;;  %v5012_v61 = vpop.f32.mrb[32].mxu0 }
 0x195   : > { %v1074_v11 = vadd.f32 %v4956_v29, %v6872_v27  ;;  %v1066_v48 = vpop.f32.mrb[33].mxu1  ;;  %v1430_v42 = vpop.f32.mrb[33].mxu0  ;;  %v2538_v27 = vrot.slane %v6489_v19, 1  ;;  %v3203_v19 = vshrl.u32 %v7000_v9, 16 }
 0x196   : > { %v4957_v7 = vpop.f32.mrb[34].mxu1  ;;  %v5013_v25 = vpop.f32.mrb[34].mxu0 }
 0x197   : > { %v6994_v12 = vadd.f32 %v5012_v61, %v1074_v11  ;;  %v1068_v21 = vpop.f32.mrb[35].mxu1  ;;  %v1432_v28 = vpop.f32.mrb[35].mxu0  ;;  %v2541_v42 = vsel %vm1220_vm2, %v2538_v27, %v2540_v22  ;;  %v7032_v25 = vld [vmem:[%s5974_s21 + $0xd0] sm:$0xff]  }
 0x198   : > { %v1069_v55 = vadd.f32 %v1068_v21, %v6877_v51  ;;  %v7013_v51 = vcombine.low %v6801_v34, %v6836_v47  ;;  %v3511_v47 = vrot.slane %v7000_v9, 1 }
 0x199   : > { %5191 = vmatmul.mubr.msk.bf16.gmra.mrb[140].mxu1 %vm648_vm1, %v2535_v52  ;;  %5247 = vmatmul.mubr.msk.bf16.gmra.mrb[140].mxu0 %vm648_vm1, %v7800_v6  ;;  %v7017_v6 = vrot.slane %v3199_v41, 1 }
 0x19a   : > { %v7006_v40 = vadd.f32 %v1432_v28, %v1069_v55  ;;  %5194 = vmatprep.mubr.msk.bf16.mxu1 %vm648_vm1, %v2537_v37  ;;  %5250 = vmatprep.mubr.msk.bf16.mxu0 %vm648_vm1, %v7801_v10  ;;  %v3206_v49 = vshll.u32 %v7013_v51, 16  ;;  %v2539_v10 = vsel %vm1220_vm2, %v2536_v20, %v2538_v27  ;;  %v3513_v29 = vrot.slane %v7013_v51, 1 }
 0x19b   : > { %v3205_v39 = vor.u32 %v3203_v19, %v7017_v6  ;;  %v2544_v28 = vrot.slane %v6749_v45, 1  ;;  %v3213_v37 = vshll.u32 %v7032_v25, 16  ;;  %v3210_v55 = vshrl.u32 %v7013_v51, 16 }
 0x19c   : > { %v4960_v35 = vpop.f32.mrb[36].mxu1  ;;  %v5016_v63 = vpop.f32.mrb[36].mxu0  ;;  %v3208_v36 = vrot.slane %v3206_v49, 1  ;;  %v7040_v52 = vsel %vm1220_vm2, %v3511_v47, %v3513_v29  ;;  %v3515_v49 = vrot.slane %v7032_v25, 1 }
 0x19d   : > { %v1080_v0 = vpop.f32.mrb[37].mxu1  ;;  %v1444_v62 = vpop.f32.mrb[37].mxu0  ;;  %v7056_v41 = vrot.slane %v3213_v37, 1 }
 0x19e   : > { %v1081_v34 = vadd.f32 %v1080_v0, %v6890_v2  ;;  %v4961_v13 = vpop.f32.mrb[38].mxu1  ;;  %v5017_v23 = vpop.f32.mrb[38].mxu0  ;;  %v7035_v2 = vsel %vm427_vm0, %v3205_v39, %v3208_v36  ;;  %v3212_v19 = vor.u32 %v3210_v55, %v3208_v36 }
 0x19f   : > { %v1091_v61 = vadd.f32 %v4961_v13, %v6894_v32  ;;  %v1083_v11 = vpop.f32.mrb[39].mxu1  ;;  %v1447_v48 = vpop.f32.mrb[39].mxu0 }
 0x1a0   : > { %v7028_v7 = vadd.f32 %v1444_v62, %v1081_v34  ;;  %v1084_v20 = vadd.f32 %v1083_v11, %v6899_v26  ;;  %v2542_v26 = vrot.slane %v6514_v15, 1 }
 0x1a1   : > { %v7042_v21 = vadd.f32 %v5017_v23, %v1091_v61  ;;  %5195 = vmatmul.mubr.msk.bf16.gmra.mrb[144].mxu1 %vm648_vm1, %v2539_v10  ;;  %5251 = vmatmul.mubr.msk.bf16.gmra.mrb[144].mxu0 %vm648_vm1, %v7804_v46  ;;  %v7848_v61 = vld [vmem:[#allocation19_spill] sm:$0xff] }
 0x1a2   : > { %v7047_v32 = vadd.f32 %v1447_v48, %v1084_v20  ;;  %5198 = vmatprep.mubr.msk.bf16.mxu1 %vm648_vm1, %v2541_v42  ;;  %5254 = vmatprep.mubr.msk.bf16.mxu0 %vm648_vm1, %v7805_v60  ;;  %v2543_v45 = vsel %vm1220_vm2, %v2540_v22, %v2542_v26  ;;  %v2545_v62 = vsel %vm1220_vm2, %v2542_v26, %v2544_v28  ;;  %v2548_v11 = vrot.slane %v7848_v61, 1 }
 0x1a4   : > { %v4964_v31 = vpop.f32.mrb[40].mxu1  ;;  %v5020_v27 = vpop.f32.mrb[40].mxu0 }
 0x1a5   : > { %v1103_v46 = vadd.f32 %v4964_v31, %v6914_v3  ;;  %v1095_v35 = vpop.f32.mrb[41].mxu1  ;;  %v1459_v63 = vpop.f32.mrb[41].mxu0  ;;  %v7068_v3 = vsel %vm427_vm0, %v3212_v19, %v7056_v41  ;;  %v7850_v19 = vld [vmem:[#allocation47_spill] sm:$0xff] }
 0x1a6   : > { %v1096_v60 = vadd.f32 %v1095_v35, %v6918_v57  ;;  %v4965_v15 = vpop.f32.mrb[42].mxu1  ;;  %v5021_v0 = vpop.f32.mrb[42].mxu0  ;;  %v7073_v57 = vsel %vm1220_vm2, %v3513_v29, %v3515_v49 }
 0x1a7   : > { %v7063_v10 = vadd.f32 %v5020_v27, %v1103_v46  ;;  %v1106_v34 = vadd.f32 %v4965_v15, %v6922_v16  ;;  %v1098_v13 = vpop.f32.mrb[43].mxu1  ;;  %v1462_v23 = vpop.f32.mrb[43].mxu0  ;;  %v7847_v16 = vld [vmem:[#allocation22_spill] sm:$0xff]  ;;  %v7852_v15 = vld [vmem:[#allocation28_spill] sm:$0xff] }
 0x1a8   : > { %v7075_v39 = vadd.f32 %v1459_v63, %v1096_v60  ;;  %v2546_v36 = vrot.slane %v7847_v16, 1  ;;  %v7849_v63 = vld [vmem:[#allocation41_spill] sm:$0xff]  ;;  %v7853_v13 = vld [vmem:[#allocation32_spill] sm:$0xff] }
 0x1a9   : > { %v7077_v22 = vadd.f32 %v5021_v0, %v1106_v34  ;;  %5199 = vmatmul.mubr.msk.bf16.gmra.mrb[148].mxu1 %vm648_vm1, %v2543_v45  ;;  %5255 = vmatmul.mubr.msk.bf16.gmra.mrb[148].mxu0 %vm648_vm1, %v7808_v18  ;;  %v2552_v0 = vrot.slane %v7852_v15, 1  ;;  %v7859_v15 = vld [vmem:[#allocation45_spill] sm:$0xff] }
 0x1aa   : > { %5202 = vmatprep.mubr.msk.bf16.mxu1 %vm648_vm1, %v2545_v62  ;;  %5258 = vmatprep.mubr.msk.bf16.mxu0 %vm648_vm1, %v7809_v30  ;;  %v2547_v31 = vsel %vm1220_vm2, %v2544_v28, %v2546_v36  ;;  %v2549_v30 = vsel %vm1220_vm2, %v2546_v36, %v2548_v11  ;;  %v7851_v28 = vld [vmem:[#allocation31_spill] sm:$0xff] }
 0x1ab   : > { %v2550_v60 = vrot.slane %v7851_v28, 1 }
 0x1ac   : > { %v4968_v29 = vpop.f32.mrb[44].mxu1  ;;  %v5024_v48 = vpop.f32.mrb[44].mxu0 }
 0x1ad   : > { %v1118_v42 = vadd.f32 %v4968_v29, %v6936_v4  ;;  %v1110_v20 = vpop.f32.mrb[45].mxu1  ;;  %v1474_v26 = vpop.f32.mrb[45].mxu0  ;;  %v2551_v61 = vsel %vm1220_vm2, %v2548_v11, %v2550_v60  ;;  %v7854_v29 = vld [vmem:[#allocation42_spill] sm:$0xff]  ;;  %v7857_v11 = vld [vmem:[#allocation56_spill] sm:$0xff] }
 0x1ae   : > { %v4969_v37 = vpop.f32.mrb[46].mxu1  ;;  %v5025_v55 = vpop.f32.mrb[46].mxu0  ;;  %v2553_v26 = vsel %vm1220_vm2, %v2550_v60, %v2552_v0 }
 0x1af   : > { %v7089_v18 = vadd.f32 %v5024_v48, %v1118_v42  ;;  %v1112_v27 = vpop.f32.mrb[47].mxu1  ;;  %v1476_v46 = vpop.f32.mrb[47].mxu0  ;;  %v7855_v55 = vld [vmem:[#allocation37_spill] sm:$0xff] }
 0x1b0   : > { %v1113_v35 = vadd.f32 %v1112_v27, %v6941_v14 }
 0x1b1   : > { %5203 = vmatmul.mubr.msk.bf16.gmra.mrb[152].mxu1 %vm648_vm1, %v2547_v31  ;;  %5259 = vmatmul.mubr.msk.bf16.gmra.mrb[152].mxu0 %vm648_vm1, %v7849_v63 }
 0x1b2   : > { %v7096_v4 = vadd.f32 %v1476_v46, %v1113_v35  ;;  %5206 = vmatprep.mubr.msk.bf16.mxu1 %vm648_vm1, %v2549_v30  ;;  %5262 = vmatprep.mubr.msk.bf16.mxu0 %vm648_vm1, %v7850_v19  ;;  %v7856_v46 = vld [vmem:[#allocation51_spill] sm:$0xff]  ;;  %v2556_v19 = vrot.slane %v6815_v56, 1 }
 0x1b3   : > { %v7858_v35 = vld [vmem:[#allocation35_spill] sm:$0xff] }
 0x1b4   : > { %v4972_v45 = vpop.f32.mrb[48].mxu1  ;;  %v5028_v62 = vpop.f32.mrb[48].mxu0  ;;  %v2554_v63 = vrot.slane %v7858_v35, 1 }
 0x1b5   : > { %v1124_v34 = vpop.f32.mrb[49].mxu1  ;;  %v1488_v14 = vpop.f32.mrb[49].mxu0 }
 0x1b6   : > { %v1125_v23 = vadd.f32 %v1124_v34, %v7853_v13  ;;  %v4973_v16 = vpop.f32.mrb[50].mxu1  ;;  %v5029_v36 = vpop.f32.mrb[50].mxu0  ;;  %v2557_v56 = vsel %vm1220_vm2, %v2554_v63, %v2556_v19 }
 0x1b7   : > { %v1135_v48 = vadd.f32 %v4973_v16, %v7854_v29  ;;  %v1127_v42 = vpop.f32.mrb[51].mxu1  ;;  %v1491_v20 = vpop.f32.mrb[51].mxu0  ;;  %v7861_v29 = vld [vmem:[#allocation50_spill] sm:$0xff] }
 0x1b8   : > { %v7107_v37 = vadd.f32 %v1488_v14, %v1125_v23  ;;  %v1128_v31 = vadd.f32 %v1127_v42, %v7855_v55  ;;  %v7860_v14 = vld [vmem:[#allocation52_spill] sm:$0xff] }
 0x1b9   : > { %v7110_v27 = vadd.f32 %v5029_v36, %v1135_v48  ;;  %5207 = vmatmul.mubr.msk.bf16.gmra.mrb[156].mxu1 %vm648_vm1, %v2551_v61  ;;  %5263 = vmatmul.mubr.msk.bf16.gmra.mrb[156].mxu0 %vm648_vm1, %v7856_v46  ;;  %v2555_v36 = vsel %vm1220_vm2, %v2552_v0, %v2554_v63  ;;  %v7862_v0 = vld [vmem:[#allocation48_spill] sm:$0xff] }
 0x1ba   : > { %v7115_v30 = vadd.f32 %v1491_v20, %v1128_v31  ;;  %5210 = vmatprep.mubr.msk.bf16.mxu1 %vm648_vm1, %v2553_v26  ;;  %5266 = vmatprep.mubr.msk.bf16.mxu0 %vm648_vm1, %v7857_v11  ;;  %v2558_v31 = vrot.slane %v7862_v0, 1 }
 0x1bc   : > { %v4976_v28 = vpop.f32.mrb[52].mxu1  ;;  %v5032_v60 = vpop.f32.mrb[52].mxu0 }
 0x1bd   : > { %v1147_v45 = vadd.f32 %v4976_v28, %v7859_v15  ;;  %v1139_v62 = vpop.f32.mrb[53].mxu1  ;;  %v1503_v34 = vpop.f32.mrb[53].mxu0 }
 0x1be   : > { %v1140_v13 = vadd.f32 %v1139_v62, %v7860_v14  ;;  %v4977_v23 = vpop.f32.mrb[54].mxu1  ;;  %v5033_v16 = vpop.f32.mrb[54].mxu0 }
 0x1bf   : > { %v7125_v61 = vadd.f32 %v5032_v60, %v1147_v45  ;;  %v1150_v48 = vadd.f32 %v4977_v23, %v7861_v29  ;;  %v1142_v42 = vpop.f32.mrb[55].mxu1  ;;  %v1506_v20 = vpop.f32.mrb[55].mxu0  ;;  %v2559_v45 = vsel %vm1220_vm2, %v2556_v19, %v2558_v31  ;;  %v7864_v23 = vld [vmem:[#allocation65_spill] sm:$0xff] }
 0x1c0   : > { %v7129_v26 = vadd.f32 %v1503_v34, %v1140_v13 }
 0x1c1   : > { %v7131_v55 = vadd.f32 %v5033_v16, %v1150_v48  ;;  %5211 = vmatmul.mubr.msk.bf16.gmra.mrb[160].mxu1 %vm648_vm1, %v2555_v36  ;;  %5267 = vmatmul.mubr.msk.bf16.gmra.mrb[160].mxu0 %vm648_vm1, %v7000_v9  ;;  %v5573_v9 = vld [vmem:[%s5974_s21 + $0xd8] ss:$0 sps:$4 sm:$0xff]  }
 0x1c2   : > { %5214 = vmatprep.mubr.msk.bf16.mxu1 %vm648_vm1, %v2557_v56  ;;  %5270 = vmatprep.mubr.msk.bf16.mxu0 %vm648_vm1, %v7013_v51 }
 0x1c4   : > { %v4980_v46 = vpop.f32.mrb[56].mxu1  ;;  %v5036_v11 = vpop.f32.mrb[56].mxu0 }
 0x1c5   : > { %v1162_v35 = vadd.f32 %v4980_v46, %v6874_v1  ;;  %v1154_v63 = vpop.f32.mrb[57].mxu1  ;;  %v1518_v28 = vpop.f32.mrb[57].mxu0  ;;  %v7863_v1 = vld [vmem:[#allocation27_spill] sm:$0xff] }
 0x1c6   : > { %v4981_v60 = vpop.f32.mrb[58].mxu1  ;;  %v5037_v15 = vpop.f32.mrb[58].mxu0  ;;  %v7866_v63 = vld [vmem:[#allocation66_spill] sm:$0xff] }
 0x1c7   : > { %v7142_v62 = vadd.f32 %v5036_v11, %v1162_v35  ;;  %v1156_v34 = vpop.f32.mrb[59].mxu1  ;;  %v1520_v14 = vpop.f32.mrb[59].mxu0  ;;  %v7865_v35 = vld [vmem:[#allocation34_spill] sm:$0xff] }
 0x1c8   : > { %v1157_v13 = vadd.f32 %v1156_v34, %v6879_v5 }
 0x1c9   : > { %5215 = vmatmul.mubr.msk.bf16.gmra.mrb[164].mxu1 %vm648_vm1, %v2559_v45  ;;  %5271 = vmatmul.mubr.msk.bf16.gmra.mrb[164].mxu0 %vm648_vm1, %v7032_v25  ;;  %v7869_v45 = vld [vmem:[#allocation53_spill] sm:$0xff] }
 0x1ca   : > { %v7148_v51 = vadd.f32 %v1520_v14, %v1157_v13  ;;  %5282 = vmatprep.mubr.msk.bf16.mxu1 %vm648_vm1, %v7863_v1  ;;  %5338 = vmatprep.mubr.msk.bf16.mxu0 %vm648_vm1, %v7864_v23 }
 0x1cc   : > { %v4984_v19 = vpop.f32.mrb[60].mxu1  ;;  %v5040_v16 = vpop.f32.mrb[60].mxu0 }
 0x1cd   : > { %v1168_v36 = vpop.f32.mrb[61].mxu1  ;;  %v1532_v29 = vpop.f32.mrb[61].mxu0  ;;  %v7870_v16 = vld [vmem:[#allocation71_spill] sm:$0xff] }
 0x1ce   : > { %v1169_v48 = vadd.f32 %v1168_v36, %v6892_v8  ;;  %v4985_v5 = vpop.f32.mrb[62].mxu1  ;;  %v5041_v42 = vpop.f32.mrb[62].mxu0  ;;  %v7867_v8 = vld [vmem:[#allocation38_spill] sm:$0xff] }
 0x1cf   : > { %v1179_v20 = vadd.f32 %v4985_v5, %v6896_v24  ;;  %v1171_v56 = vpop.f32.mrb[63].mxu1  ;;  %v1535_v0 = vpop.f32.mrb[63].mxu0  ;;  %v7868_v24 = vld [vmem:[#allocation18_spill] sm:$0xff] }
 0x1d0   : > { %v7156_v31 = vadd.f32 %v1532_v29, %v1169_v48  ;;  %v1172_v46 = vadd.f32 %v1171_v56, %v6901_v50  ;;  %v7872_v56 = vld [vmem:[#allocation15_spill] sm:$0xff] }
 0x1d1   : > { %v7159_v11 = vadd.f32 %v5041_v42, %v1179_v20  ;;  %5283 = vmatmul.mubr.msk.bf16.vlgmr.msra.gmra.mrb[168].mxu1 %vm648_vm1, %v7865_v35  ;;  %5339 = vmatmul.mubr.msk.bf16.vlgmr.msra.gmra.mrb[168].mxu0 %vm648_vm1, %v7866_v63  ;;  %v7871_v20 = vld [vmem:[#allocation43_spill] sm:$0xff] }
 0x1d2   : > { %v7165_v28 = vadd.f32 %v1535_v0, %v1172_v46  ;;  %5286 = vmatprep.mubr.msk.bf16.mxu1 %vm648_vm1, %v7867_v8  ;;  %5342 = vmatprep.mubr.msk.bf16.mxu0 %vm648_vm1, %v7868_v24  ;;  %v7873_v0 = vld [vmem:[#allocation54_spill] sm:$0xff] }
 0x1d4   : > { %v4988_v60 = vpop.f32.mrb[64].mxu1  ;;  %v5044_v15 = vpop.f32.mrb[64].mxu0 }
 0x1d5   : > { %v1191_v50 = vadd.f32 %v4988_v60, %v7869_v45  ;;  %v1183_v34 = vpop.f32.mrb[65].mxu1  ;;  %v1547_v14 = vpop.f32.mrb[65].mxu0 }
 0x1d6   : > { %v1184_v13 = vadd.f32 %v1183_v34, %v6920_v54  ;;  %v4989_v1 = vpop.f32.mrb[66].mxu1  ;;  %v5045_v23 = vpop.f32.mrb[66].mxu0  ;;  %v7874_v54 = vld [vmem:[#allocation39_spill] sm:$0xff] }
 0x1d7   : > { %v7173_v19 = vadd.f32 %v5044_v15, %v1191_v50  ;;  %v1194_v36 = vadd.f32 %v4989_v1, %v7870_v16  ;;  %v1186_v29 = vpop.f32.mrb[67].mxu1  ;;  %v1550_v48 = vpop.f32.mrb[67].mxu0  ;;  %v7876_v1 = vld [vmem:[#allocation26_spill] sm:$0xff]  ;;  %v7877_v16 = vld [vmem:[#allocation59_spill] sm:$0xff] }
 0x1d8   : > { %v7176_v5 = vadd.f32 %v1547_v14, %v1184_v13  ;;  %v7875_v13 = vld [vmem:[#allocation57_spill] sm:$0xff] }
 0x1d9   : > { %v7178_v42 = vadd.f32 %v5045_v23, %v1194_v36  ;;  %5287 = vmatmul.mubr.msk.bf16.gmra.mrb[172].mxu1 %vm648_vm1, %v7871_v20  ;;  %5343 = vmatmul.mubr.msk.bf16.gmra.mrb[172].mxu0 %vm648_vm1, %v7872_v56 }
 0x1da   : > { %5290 = vmatprep.mubr.msk.bf16.mxu1 %vm648_vm1, %v7873_v0  ;;  %5346 = vmatprep.mubr.msk.bf16.mxu0 %vm648_vm1, %v7874_v54 }
 0x1dc   : > { %v4992_v46 = vpop.f32.mrb[68].mxu1  ;;  %v5048_v35 = vpop.f32.mrb[68].mxu0 }
 0x1dd   : > { %v1206_v63 = vadd.f32 %v4992_v46, %v6938_v33  ;;  %v1198_v8 = vpop.f32.mrb[69].mxu1  ;;  %v1562_v24 = vpop.f32.mrb[69].mxu0  ;;  %v7878_v33 = vld [vmem:[#allocation23_spill] sm:$0xff] }
 0x1de   : > { %v4993_v60 = vpop.f32.mrb[70].mxu1  ;;  %v5049_v15 = vpop.f32.mrb[70].mxu0 }
 0x1df   : > { %v7189_v45 = vadd.f32 %v5048_v35, %v1206_v63  ;;  %v1200_v50 = vpop.f32.mrb[71].mxu1  ;;  %v1564_v34 = vpop.f32.mrb[71].mxu0  ;;  %v7879_v60 = vld [vmem:[#allocation61_spill] sm:$0xff]  ;;  %v7880_v15 = vld [vmem:[#allocation44_spill] sm:$0xff] }
 0x1e0   : > { %v1201_v14 = vadd.f32 %v1200_v50, %v6943_v53 }
 0x1e1   : > { %5291 = vmatmul.mubr.msk.bf16.gmra.mrb[176].mxu1 %vm648_vm1, %v7875_v13  ;;  %5347 = vmatmul.mubr.msk.bf16.gmra.mrb[176].mxu0 %vm648_vm1, %v7876_v1 }
 0x1e2   : > { %v7196_v23 = vadd.f32 %v1564_v34, %v1201_v14  ;;  %5294 = vmatprep.mubr.msk.bf16.mxu1 %vm648_vm1, %v7877_v16  ;;  %5350 = vmatprep.mubr.msk.bf16.mxu0 %vm648_vm1, %v7878_v33 }
 0x1e4   : > { %v5060_v36 = vpop.f32.mrb[72].mxu1  ;;  %v5116_v29 = vpop.f32.mrb[72].mxu0 }
 0x1e5   : > { %v1774_v48 = vpop.f32.mrb[73].mxu1  ;;  %v2295_v20 = vpop.f32.mrb[73].mxu0 }
 0x1e6   : > { %v1949_v53 = vadd.f32 %v1774_v48, %v6958_v44  ;;  %v5061_v56 = vpop.f32.mrb[74].mxu1  ;;  %v5117_v0 = vpop.f32.mrb[74].mxu0  ;;  %v7881_v44 = vld [vmem:[#allocation64_spill] sm:$0xff] }
 0x1e7   : > { %v1951_v54 = vadd.f32 %v5061_v56, %v6961_v43  ;;  %v1777_v46 = vpop.f32.mrb[75].mxu1  ;;  %v2298_v35 = vpop.f32.mrb[75].mxu0  ;;  %v7882_v43 = vld [vmem:[#allocation49_spill] sm:$0xff] }
 0x1e8   : > { %v7204_v63 = vadd.f32 %v2295_v20, %v1949_v53  ;;  %v1950_v8 = vadd.f32 %v1777_v46, %v6966_v38  ;;  %v7885_v46 = vld [vmem:[#allocation20_spill] sm:$0xff] }
 0x1e9   : > { %v7207_v24 = vadd.f32 %v5117_v0, %v1951_v54  ;;  %5295 = vmatmul.mubr.msk.bf16.gmra.mrb[180].mxu1 %vm648_vm1, %v7879_v60  ;;  %5351 = vmatmul.mubr.msk.bf16.gmra.mrb[180].mxu0 %vm648_vm1, %v7880_v15  ;;  %v7883_v54 = vld [vmem:[#allocation16_spill] sm:$0xff] }
 0x1ea   : > { %v7213_v50 = vadd.f32 %v2298_v35, %v1950_v8  ;;  %5298 = vmatprep.mubr.msk.bf16.mxu1 %vm648_vm1, %v7881_v44  ;;  %5354 = vmatprep.mubr.msk.bf16.mxu0 %vm648_vm1, %v7882_v43 }
 0x1ec   : > { %v5064_v34 = vpop.f32.mrb[76].mxu1  ;;  %v5120_v14 = vpop.f32.mrb[76].mxu0 }
 0x1ed   : > { %v1953_v38 = vadd.f32 %v5064_v34, %v6976_v17  ;;  %v1789_v13 = vpop.f32.mrb[77].mxu1  ;;  %v2310_v1 = vpop.f32.mrb[77].mxu0  ;;  %v7884_v17 = vld [vmem:[#allocation12_spill] sm:$0xff] }
 0x1ee   : > { %v1952_v16 = vadd.f32 %v1789_v13, %v6980_v59  ;;  %v5065_v33 = vpop.f32.mrb[78].mxu1  ;;  %v5121_v36 = vpop.f32.mrb[78].mxu0  ;;  %v7886_v59 = vld [vmem:[#allocation13_spill] sm:$0xff] }
 0x1ef   : > { %v7221_v29 = vadd.f32 %v5120_v14, %v1953_v38  ;;  %v1954_v48 = vadd.f32 %v5065_v33, %v6982_v58  ;;  %v1792_v20 = vpop.f32.mrb[79].mxu1  ;;  %v2313_v53 = vpop.f32.mrb[79].mxu0 }
 0x1f0   : > { %v7224_v56 = vadd.f32 %v2310_v1, %v1952_v16  ;;  %v7887_v1 = vld [vmem:[#allocation24_spill] sm:$0xff]  ;;  %v7888_v16 = vld [vmem:[#allocation14_spill] sm:$0xff] }
 0x1f1   : > { %v7226_v0 = vadd.f32 %v5121_v36, %v1954_v48  ;;  %5299 = vmatmul.mubr.msk.bf16.gmra.mrb[184].mxu1 %vm648_vm1, %v7883_v54  ;;  %5355 = vmatmul.mubr.msk.bf16.gmra.mrb[184].mxu0 %vm648_vm1, %v7884_v17  ;;  %v7889_v36 = vld [vmem:[#allocation29_spill] sm:$0xff] }
 0x1f2   : > { %5302 = vmatprep.mubr.msk.bf16.mxu1 %vm648_vm1, %v7885_v46  ;;  %5358 = vmatprep.mubr.msk.bf16.mxu0 %vm648_vm1, %v7886_v59 }
 0x1f4   : > { %v5068_v35 = vpop.f32.mrb[80].mxu1  ;;  %v5124_v58 = vpop.f32.mrb[80].mxu0 }
 0x1f5   : > { %v1956_v8 = vadd.f32 %v5068_v35, %v6994_v12  ;;  %v1804_v60 = vpop.f32.mrb[81].mxu1  ;;  %v2325_v15 = vpop.f32.mrb[81].mxu0  ;;  %v7890_v12 = vld [vmem:[#allocation17_spill] sm:$0xff] }
 0x1f6   : > { %v5069_v44 = vpop.f32.mrb[82].mxu1  ;;  %v5125_v43 = vpop.f32.mrb[82].mxu0 }
 0x1f7   : > { %v7237_v34 = vadd.f32 %v5124_v58, %v1956_v8  ;;  %v1806_v14 = vpop.f32.mrb[83].mxu1  ;;  %v2327_v38 = vpop.f32.mrb[83].mxu0  ;;  %v7891_v44 = vld [vmem:[#allocation36_spill] sm:$0xff]  ;;  %v7892_v43 = vld [vmem:[#allocation21_spill] sm:$0xff] }
 0x1f8   : > { %v1955_v13 = vadd.f32 %v1806_v14, %v7006_v40 }
 0x1f9   : > { %5303 = vmatmul.mubr.msk.bf16.gmra.mrb[188].mxu1 %vm648_vm1, %v7887_v1  ;;  %5359 = vmatmul.mubr.msk.bf16.gmra.mrb[188].mxu0 %vm648_vm1, %v7888_v16 }
 0x1fa   : > { %v7244_v33 = vadd.f32 %v2327_v38, %v1955_v13  ;;  %5306 = vmatprep.mubr.msk.bf16.mxu1 %vm648_vm1, %v7889_v36  ;;  %5362 = vmatprep.mubr.msk.bf16.mxu0 %vm648_vm1, %v7890_v12 }
 0x1fc   : > { %v5072_v48 = vpop.f32.mrb[84].mxu1  ;;  %v5128_v20 = vpop.f32.mrb[84].mxu0 }
 0x1fd   : > { %v1818_v53 = vpop.f32.mrb[85].mxu1  ;;  %v2339_v54 = vpop.f32.mrb[85].mxu0 }
 0x1fe   : > { %v1957_v40 = vadd.f32 %v1818_v53, %v7028_v7  ;;  %v5073_v17 = vpop.f32.mrb[86].mxu1  ;;  %v5129_v46 = vpop.f32.mrb[86].mxu0  ;;  %v7893_v7 = vld [vmem:[#allocation40_spill] sm:$0xff] }
 0x1ff   : > { %v1959_v59 = vadd.f32 %v5073_v17, %v7042_v21  ;;  %v1821_v35 = vpop.f32.mrb[87].mxu1  ;;  %v2342_v58 = vpop.f32.mrb[87].mxu0  ;;  %v7894_v21 = vld [vmem:[#allocation25_spill] sm:$0xff] }
 0x200   : > { %v7252_v8 = vadd.f32 %v2339_v54, %v1957_v40  ;;  %v1958_v60 = vadd.f32 %v1821_v35, %v7047_v32  ;;  %v7897_v35 = vld [vmem:[#allocation55_spill] sm:$0xff] }
 0x201   : > { %v7255_v15 = vadd.f32 %v5129_v46, %v1959_v59  ;;  %5307 = vmatmul.mubr.msk.bf16.gmra.mrb[192].mxu1 %vm648_vm1, %v7891_v44  ;;  %5363 = vmatmul.mubr.msk.bf16.gmra.mrb[192].mxu0 %vm648_vm1, %v7892_v43  ;;  %v7895_v59 = vld [vmem:[#allocation46_spill] sm:$0xff] }
 0x202   : > { %v7261_v14 = vadd.f32 %v2342_v58, %v1958_v60  ;;  %5310 = vmatprep.mubr.msk.bf16.mxu1 %vm648_vm1, %v7893_v7  ;;  %5366 = vmatprep.mubr.msk.bf16.mxu0 %vm648_vm1, %v7894_v21 }
 0x204   : > { %v5076_v38 = vpop.f32.mrb[88].mxu1  ;;  %v5132_v13 = vpop.f32.mrb[88].mxu0 }
 0x205   : > { %v1961_v32 = vadd.f32 %v5076_v38, %v7063_v10  ;;  %v1833_v1 = vpop.f32.mrb[89].mxu1  ;;  %v2354_v16 = vpop.f32.mrb[89].mxu0  ;;  %v7896_v10 = vld [vmem:[#allocation30_spill] sm:$0xff] }
 0x206   : > { %v1960_v36 = vadd.f32 %v1833_v1, %v7075_v39  ;;  %v5077_v12 = vpop.f32.mrb[90].mxu1  ;;  %v5133_v48 = vpop.f32.mrb[90].mxu0  ;;  %v7898_v39 = vld [vmem:[#allocation33_spill] sm:$0xff] }
 0x207   : > { %v7269_v20 = vadd.f32 %v5132_v13, %v1961_v32  ;;  %v1962_v53 = vadd.f32 %v5077_v12, %v7077_v22  ;;  %v1836_v54 = vpop.f32.mrb[91].mxu1  ;;  %v2357_v40 = vpop.f32.mrb[91].mxu0 }
 0x208   : > { %v7272_v17 = vadd.f32 %v2354_v16, %v1960_v36  ;;  %v7899_v16 = vld [vmem:[#allocation58_spill] sm:$0xff]  ;;  %v7900_v36 = vld [vmem:[#allocation67_spill] sm:$0xff] }
 0x209   : > { %v7274_v46 = vadd.f32 %v5133_v48, %v1962_v53  ;;  %5311 = vmatmul.mubr.msk.bf16.gmra.mrb[196].mxu1 %vm648_vm1, %v7895_v59  ;;  %5367 = vmatmul.mubr.msk.bf16.gmra.mrb[196].mxu0 %vm648_vm1, %v7896_v10  ;;  %v7901_v48 = vld [vmem:[#allocation60_spill] sm:$0xff] }
 0x20a   : > { %5314 = vmatprep.mubr.msk.bf16.mxu1 %vm648_vm1, %v7897_v35  ;;  %5370 = vmatprep.mubr.msk.bf16.mxu0 %vm648_vm1, %v7898_v39 }
 0x20c   : > { %v5080_v58 = vpop.f32.mrb[92].mxu1  ;;  %v5136_v22 = vpop.f32.mrb[92].mxu0 }
 0x20d   : > { %v1964_v60 = vadd.f32 %v5080_v58, %v7089_v18  ;;  %v1848_v44 = vpop.f32.mrb[93].mxu1  ;;  %v2369_v43 = vpop.f32.mrb[93].mxu0  ;;  %v7902_v18 = vld [vmem:[#allocation69_spill] sm:$0xff] }
 0x20e   : > { %v5081_v7 = vpop.f32.mrb[94].mxu1  ;;  %v5137_v21 = vpop.f32.mrb[94].mxu0  ;;  %v7904_v43 = vld [vmem:[#allocation68_spill] sm:$0xff] }
 0x20f   : > { %v7285_v38 = vadd.f32 %v5136_v22, %v1964_v60  ;;  %v1850_v13 = vpop.f32.mrb[95].mxu1  ;;  %v2371_v32 = vpop.f32.mrb[95].mxu0  ;;  %v7903_v60 = vld [vmem:[#allocation63_spill] sm:$0xff]  ;;  %v3512_v7 = vsel %vm1220_vm2, %v7904_v43, %v3511_v47 }
 0x210   : > { %v1963_v1 = vadd.f32 %v1850_v13, %v7096_v4  ;;  %v3202_v44 = vsel %vm427_vm0, %v7903_v60, %v7017_v6 }
 0x211   : > { %5315 = vmatmul.mubr.msk.bf16.gmra.mrb[200].mxu1 %vm648_vm1, %v7899_v16  ;;  %5371 = vmatmul.mubr.msk.bf16.gmra.mrb[200].mxu0 %vm648_vm1, %v7900_v36 }
 0x212   : > { %v7292_v12 = vadd.f32 %v2371_v32, %v1963_v1  ;;  %5318 = vmatprep.mubr.msk.bf16.mxu1 %vm648_vm1, %v7901_v48  ;;  %5374 = vmatprep.mubr.msk.bf16.mxu0 %vm648_vm1, %v7902_v18  ;;  %v7905_v32 = vld [vmem:[#allocation62_spill] sm:$0xff] }
 0x214   : > { %v5084_v53 = vpop.f32.mrb[96].mxu1  ;;  %v5140_v54 = vpop.f32.mrb[96].mxu0 }
 0x215   : > { %v1862_v40 = vpop.f32.mrb[97].mxu1  ;;  %v2383_v59 = vpop.f32.mrb[97].mxu0  ;;  %v3217_v54 = vshrl.u32 %v7032_v25, 16 }
 0x216   : > { %v1965_v4 = vadd.f32 %v1862_v40, %v7107_v37  ;;  %v5085_v10 = vpop.f32.mrb[98].mxu1  ;;  %v5141_v35 = vpop.f32.mrb[98].mxu0  ;;  %v3221_v40 = vshll.u32 %v5573_v9, 16 }
 0x217   : > { %v1967_v39 = vadd.f32 %v5085_v10, %v7110_v27  ;;  %v1865_v58 = vpop.f32.mrb[99].mxu1  ;;  %v2386_v22 = vpop.f32.mrb[99].mxu0  ;;  %v7906_v27 = vld [vmem:[#allocation70_spill] sm:$0xff] }
 0x218   : > { %v7307_v21 = vadd.f32 %v2383_v59, %v1965_v4  ;;  %v1966_v37 = vadd.f32 %v1865_v58, %v7115_v30 }
 0x219   : > { %v7310_v13 = vadd.f32 %v5141_v35, %v1967_v39  ;;  %5319 = vmatmul.mubr.msk.bf16.gmra.mrb[204].mxu1 %vm648_vm1, %v7905_v32  ;;  %5375 = vmatmul.mubr.msk.bf16.gmra.mrb[204].mxu0 %vm648_vm1, %v7906_v27 }
 0x21a   : > { %v7316_v1 = vadd.f32 %v2386_v22, %v1966_v37  ;;  %5322 = vmatprep.mubr.msk.bf16.mxu1 %vm648_vm1, %v3202_v44  ;;  %5378 = vmatprep.mubr.msk.bf16.mxu0 %vm648_vm1, %v3512_v7 }
 0x21c   : > { %v5088_v6 = vpop.f32.mrb[100].mxu1  ;;  %v5144_v47 = vpop.f32.mrb[100].mxu0 }
 0x21d   : > { %v1969_v16 = vadd.f32 %v5088_v6, %v7125_v61  ;;  %v1877_v30 = vpop.f32.mrb[101].mxu1  ;;  %v2398_v36 = vpop.f32.mrb[101].mxu0  ;;  %v3219_v61 = vor.u32 %v3217_v54, %v7056_v41 }
 0x21e   : > { %v1968_v48 = vadd.f32 %v1877_v30, %v7129_v26  ;;  %v5089_v18 = vpop.f32.mrb[102].mxu1  ;;  %v5145_v53 = vpop.f32.mrb[102].mxu0  ;;  %v3223_v26 = vrot.slane %v3221_v40, 1 }
 0x21f   : > { %v7324_v59 = vadd.f32 %v5144_v47, %v1969_v16  ;;  %v1970_v4 = vadd.f32 %v5089_v18, %v7131_v55  ;;  %v1880_v10 = vpop.f32.mrb[103].mxu1  ;;  %v2401_v35 = vpop.f32.mrb[103].mxu0  ;;  %v3517_v55 = vrot.slane %v5573_v9, 1 }
 0x220   : > { %v7327_v39 = vadd.f32 %v2398_v36, %v1968_v48 }
 0x221   : > { %v7329_v58 = vadd.f32 %v5145_v53, %v1970_v4  ;;  %5323 = vmatmul.mubr.msk.bf16.gmra.mrb[208].mxu1 %vm648_vm1, %v7035_v2  ;;  %5379 = vmatmul.mubr.msk.bf16.gmra.mrb[208].mxu0 %vm648_vm1, %v7040_v52  ;;  %v3224_v52 = vsel %vm427_vm0, %v3219_v61, %v3223_v26 }
 0x222   : > { %5326 = vmatprep.mubr.msk.bf16.mxu1 %vm648_vm1, %v7068_v3  ;;  %5382 = vmatprep.mubr.msk.bf16.mxu0 %vm648_vm1, %v7073_v57  ;;  %v3518_v3 = vsel %vm1220_vm2, %v3515_v49, %v3517_v55 }
 0x224   : > { %v5092_v22 = vpop.f32.mrb[104].mxu1  ;;  %v5148_v60 = vpop.f32.mrb[104].mxu0 }
 0x225   : > { %v1972_v44 = vadd.f32 %v5092_v22, %v7142_v62  ;;  %v1892_v43 = vpop.f32.mrb[105].mxu1  ;;  %v2413_v7 = vpop.f32.mrb[105].mxu0 }
 0x226   : > { %v5093_v2 = vpop.f32.mrb[106].mxu1  ;;  %v5149_v37 = vpop.f32.mrb[106].mxu0 }
 0x227   : > { %v7345_v32 = vadd.f32 %v5148_v60, %v1972_v44  ;;  %v1894_v57 = vpop.f32.mrb[107].mxu1  ;;  %v2415_v41 = vpop.f32.mrb[107].mxu0 }
 0x228   : > { %v1971_v27 = vadd.f32 %v1894_v57, %v7148_v51 }
 0x229   : > { %5327 = vmatmul.mubr.msk.bf16.gmra.mrb[212].mxu1 %vm648_vm1, %v3224_v52  ;;  %5383 = vmatmul.mubr.msk.bf16.gmra.mrb[212].mxu0 %vm648_vm1, %v3518_v3 }
 0x22a   : > { %v7350_v62 = vadd.f32 %v2415_v41, %v1971_v27 }
 0x22c   : > { %v5096_v9 = vpop.f32.mrb[108].mxu1  ;;  %v5152_v6 = vpop.f32.mrb[108].mxu0 }
 0x22d   : > { %v1906_v47 = vpop.f32.mrb[109].mxu1  ;;  %v2427_v16 = vpop.f32.mrb[109].mxu0 }
 0x22e   : > { %v1973_v25 = vadd.f32 %v1906_v47, %v7156_v31  ;;  %v5097_v30 = vpop.f32.mrb[110].mxu1  ;;  %v5153_v49 = vpop.f32.mrb[110].mxu0 }
 0x22f   : > { %v1975_v36 = vadd.f32 %v5097_v30, %v7159_v11  ;;  %v1909_v48 = vpop.f32.mrb[111].mxu1  ;;  %v2430_v18 = vpop.f32.mrb[111].mxu0 }
 0x230   : > { %v7354_v53 = vadd.f32 %v2427_v16, %v1973_v25  ;;  %v1974_v51 = vadd.f32 %v1909_v48, %v7165_v28 }
 0x231   : > { %v7357_v54 = vadd.f32 %v5153_v49, %v1975_v36 }
 0x232   : > { %v7359_v40 = vadd.f32 %v2430_v18, %v1974_v51 }
 0x234   : > { %v5100_v4 = vpop.f32.mrb[112].mxu1  ;;  %v5156_v10 = vpop.f32.mrb[112].mxu0 }
 0x235   : > { %v1977_v35 = vadd.f32 %v5100_v4, %v7173_v19  ;;  %v1921_v61 = vpop.f32.mrb[113].mxu1  ;;  %v2442_v31 = vpop.f32.mrb[113].mxu0 }
 0x236   : > { %v1976_v26 = vadd.f32 %v1921_v61, %v7176_v5  ;;  %v5101_v55 = vpop.f32.mrb[114].mxu1  ;;  %v5157_v11 = vpop.f32.mrb[114].mxu0 }
 0x237   : > { %v7363_v22 = vadd.f32 %v5156_v10, %v1977_v35  ;;  %v1978_v60 = vadd.f32 %v5101_v55, %v7178_v42  ;;  %v1924_v44 = vpop.f32.mrb[115].mxu1  ;;  %v2445_v28 = vpop.f32.mrb[115].mxu0 }
 0x238   : > { %v7366_v43 = vadd.f32 %v2442_v31, %v1976_v26 }
 0x239   : > { %v7368_v7 = vadd.f32 %v5157_v11, %v1978_v60 }
 0x23c   : > { %v5104_v2 = vpop.f32.mrb[116].mxu1  ;;  %v5160_v37 = vpop.f32.mrb[116].mxu0 }
 0x23d   : > { %v1980_v19 = vadd.f32 %v5104_v2, %v7189_v45  ;;  %v1936_v52 = vpop.f32.mrb[117].mxu1  ;;  %v2457_v3 = vpop.f32.mrb[117].mxu0 }
 0x23e   : > { %v5105_v57 = vpop.f32.mrb[118].mxu1  ;;  %v5161_v5 = vpop.f32.mrb[118].mxu0 }
 0x23f   : > { %v7371_v41 = vadd.f32 %v5160_v37, %v1980_v19  ;;  %v1938_v27 = vpop.f32.mrb[119].mxu1  ;;  %v2459_v9 = vpop.f32.mrb[119].mxu0 }
 0x240   : > { %v1979_v42 = vadd.f32 %v1938_v27, %v7196_v23 }
 0x242   : > { %v7374_v6 = vadd.f32 %v2459_v9, %v1979_v42 }
 0x244   : > { %v5172_v47 = vpop.f32.mrb[120].mxu1  ;;  %v5228_v16 = vpop.f32.mrb[120].mxu0 }
 0x245   : > { %v2690_v25 = vpop.f32.mrb[121].mxu1  ;;  %v2980_v30 = vpop.f32.mrb[121].mxu0 }
 0x246   : > { %v2865_v49 = vadd.f32 %v2690_v25, %v7204_v63  ;;  %v5173_v36 = vpop.f32.mrb[122].mxu1  ;;  %v5229_v45 = vpop.f32.mrb[122].mxu0 }
 0x247   : > { %v2867_v48 = vadd.f32 %v5173_v36, %v7207_v24  ;;  %v2693_v18 = vpop.f32.mrb[123].mxu1  ;;  %v2983_v51 = vpop.f32.mrb[123].mxu0 }
 0x248   : > { %v7378_v4 = vadd.f32 %v2980_v30, %v2865_v49  ;;  %v2866_v10 = vadd.f32 %v2693_v18, %v7213_v50 }
 0x249   : > { %v7381_v35 = vadd.f32 %v5229_v45, %v2867_v48 }
 0x24a   : > { %v7383_v23 = vadd.f32 %v2983_v51, %v2866_v10 }
 0x24c   : > { %v5176_v61 = vpop.f32.mrb[124].mxu1  ;;  %v5232_v31 = vpop.f32.mrb[124].mxu0 }
 0x24d   : > { %v2869_v26 = vadd.f32 %v5176_v61, %v7221_v29  ;;  %v2705_v55 = vpop.f32.mrb[125].mxu1  ;;  %v2995_v63 = vpop.f32.mrb[125].mxu0 }
 0x24e   : > { %v2868_v11 = vadd.f32 %v2705_v55, %v7224_v56  ;;  %v5177_v60 = vpop.f32.mrb[126].mxu1  ;;  %v5233_v24 = vpop.f32.mrb[126].mxu0 }
 0x24f   : > { %v7387_v44 = vadd.f32 %v5232_v31, %v2869_v26  ;;  %v2870_v28 = vadd.f32 %v5177_v60, %v7226_v0  ;;  %v2708_v2 = vpop.f32.mrb[127].mxu1  ;;  %v2998_v50 = vpop.f32.mrb[127].mxu0 }
 0x250   : > { %v7390_v37 = vadd.f32 %v2995_v63, %v2868_v11 }
 0x251   : > { %v7392_v19 = vadd.f32 %v5233_v24, %v2870_v28 }
 0x254   : > { %v5180_v52 = vpop.f32.mrb[128].mxu1  ;;  %v5236_v3 = vpop.f32.mrb[128].mxu0 }
 0x255   : > { %v2872_v29 = vadd.f32 %v5180_v52, %v7237_v34  ;;  %v2720_v57 = vpop.f32.mrb[129].mxu1  ;;  %v3010_v5 = vpop.f32.mrb[129].mxu0 }
 0x256   : > { %v5181_v27 = vpop.f32.mrb[130].mxu1  ;;  %v5237_v56 = vpop.f32.mrb[130].mxu0 }
 0x257   : > { %v7395_v9 = vadd.f32 %v5236_v3, %v2872_v29  ;;  %v2722_v42 = vpop.f32.mrb[131].mxu1  ;;  %v3012_v47 = vpop.f32.mrb[131].mxu0 }
 0x258   : > { %v2871_v0 = vadd.f32 %v2722_v42, %v7244_v33 }
 0x25a   : > { %v7398_v16 = vadd.f32 %v3012_v47, %v2871_v0 }
 0x25c   : > { %v5184_v25 = vpop.f32.mrb[132].mxu1  ;;  %v5240_v30 = vpop.f32.mrb[132].mxu0 }
 0x25d   : > { %v2734_v49 = vpop.f32.mrb[133].mxu1  ;;  %v3024_v36 = vpop.f32.mrb[133].mxu0 }
 0x25e   : > { %v2873_v45 = vadd.f32 %v2734_v49, %v7252_v8  ;;  %v5185_v48 = vpop.f32.mrb[134].mxu1  ;;  %v5241_v34 = vpop.f32.mrb[134].mxu0 }
 0x25f   : > { %v2875_v18 = vadd.f32 %v5185_v48, %v7255_v15  ;;  %v2737_v51 = vpop.f32.mrb[135].mxu1  ;;  %v3027_v10 = vpop.f32.mrb[135].mxu0 }
 0x260   : > { %v7402_v61 = vadd.f32 %v3024_v36, %v2873_v45  ;;  %v2874_v31 = vadd.f32 %v2737_v51, %v7261_v14 }
 0x261   : > { %v7405_v26 = vadd.f32 %v5241_v34, %v2875_v18 }
 0x262   : > { %v7407_v33 = vadd.f32 %v3027_v10, %v2874_v31 }
 0x264   : > { %v5188_v55 = vpop.f32.mrb[136].mxu1  ;;  %v5244_v63 = vpop.f32.mrb[136].mxu0 }
 0x265   : > { %v2877_v11 = vadd.f32 %v5188_v55, %v7269_v20  ;;  %v2749_v60 = vpop.f32.mrb[137].mxu1  ;;  %v3039_v8 = vpop.f32.mrb[137].mxu0 }
 0x266   : > { %v2876_v24 = vadd.f32 %v2749_v60, %v7272_v17  ;;  %v5189_v28 = vpop.f32.mrb[138].mxu1  ;;  %v5245_v15 = vpop.f32.mrb[138].mxu0 }
 0x267   : > { %v7411_v2 = vadd.f32 %v5244_v63, %v2877_v11  ;;  %v2878_v50 = vadd.f32 %v5189_v28, %v7274_v46  ;;  %v2752_v52 = vpop.f32.mrb[139].mxu1  ;;  %v3042_v14 = vpop.f32.mrb[139].mxu0 }
 0x268   : > { %v7414_v3 = vadd.f32 %v3039_v8, %v2876_v24 }
 0x269   : > { %v7416_v29 = vadd.f32 %v5245_v15, %v2878_v50 }
 0x26c   : > { %v5192_v57 = vpop.f32.mrb[140].mxu1  ;;  %v5248_v5 = vpop.f32.mrb[140].mxu0 }
 0x26d   : > { %v2880_v20 = vadd.f32 %v5192_v57, %v7285_v38  ;;  %v2764_v27 = vpop.f32.mrb[141].mxu1  ;;  %v3054_v56 = vpop.f32.mrb[141].mxu0 }
 0x26e   : > { %v5193_v42 = vpop.f32.mrb[142].mxu1  ;;  %v5249_v17 = vpop.f32.mrb[142].mxu0 }
 0x26f   : > { %v7419_v47 = vadd.f32 %v5248_v5, %v2880_v20  ;;  %v2766_v0 = vpop.f32.mrb[143].mxu1  ;;  %v3056_v25 = vpop.f32.mrb[143].mxu0 }
 0x270   : > { %v2879_v46 = vadd.f32 %v2766_v0, %v7292_v12 }
 0x272   : > { %v7422_v30 = vadd.f32 %v3056_v25, %v2879_v46 }
 0x274   : > { %v5196_v49 = vpop.f32.mrb[144].mxu1  ;;  %v5252_v36 = vpop.f32.mrb[144].mxu0 }
 0x275   : > { %v2778_v45 = vpop.f32.mrb[145].mxu1  ;;  %v3068_v48 = vpop.f32.mrb[145].mxu0 }
 0x276   : > { %v2881_v34 = vadd.f32 %v2778_v45, %v7307_v21  ;;  %v5197_v18 = vpop.f32.mrb[146].mxu1  ;;  %v5253_v38 = vpop.f32.mrb[146].mxu0 }
 0x277   : > { %v2883_v51 = vadd.f32 %v5197_v18, %v7310_v13  ;;  %v2781_v10 = vpop.f32.mrb[147].mxu1  ;;  %v3071_v31 = vpop.f32.mrb[147].mxu0 }
 0x278   : > { %v7426_v55 = vadd.f32 %v3068_v48, %v2881_v34  ;;  %v2882_v63 = vadd.f32 %v2781_v10, %v7316_v1 }
 0x279   : > { %v7429_v11 = vadd.f32 %v5253_v38, %v2883_v51 }
 0x27a   : > { %v7431_v12 = vadd.f32 %v3071_v31, %v2882_v63 }
 0x27c   : > { %v5200_v60 = vpop.f32.mrb[148].mxu1  ;;  %v5256_v8 = vpop.f32.mrb[148].mxu0 }
 0x27d   : > { %v2885_v24 = vadd.f32 %v5200_v60, %v7324_v59  ;;  %v2793_v28 = vpop.f32.mrb[149].mxu1  ;;  %v3083_v21 = vpop.f32.mrb[149].mxu0 }
 0x27e   : > { %v2884_v15 = vadd.f32 %v2793_v28, %v7327_v39  ;;  %v5201_v50 = vpop.f32.mrb[150].mxu1  ;;  %v5257_v13 = vpop.f32.mrb[150].mxu0 }
 0x27f   : > { %v7435_v52 = vadd.f32 %v5256_v8, %v2885_v24  ;;  %v2886_v14 = vadd.f32 %v5201_v50, %v7329_v58  ;;  %v2796_v57 = vpop.f32.mrb[151].mxu1  ;;  %v3086_v1 = vpop.f32.mrb[151].mxu0 }
 0x280   : > { %v7438_v5 = vadd.f32 %v3083_v21, %v2884_v15 }
 0x281   : > { %v7440_v20 = vadd.f32 %v5257_v13, %v2886_v14 }
 0x284   : > { %v5204_v27 = vpop.f32.mrb[152].mxu1  ;;  %v5260_v56 = vpop.f32.mrb[152].mxu0 }
 0x285   : > { %v2888_v59 = vadd.f32 %v5204_v27, %v7345_v32  ;;  %v2808_v42 = vpop.f32.mrb[153].mxu1  ;;  %v3098_v17 = vpop.f32.mrb[153].mxu0 }
 0x286   : > { %v5205_v0 = vpop.f32.mrb[154].mxu1  ;;  %v5261_v39 = vpop.f32.mrb[154].mxu0 }
 0x287   : > { %v7443_v25 = vadd.f32 %v5260_v56, %v2888_v59  ;;  %v2810_v46 = vpop.f32.mrb[155].mxu1  ;;  %v3100_v49 = vpop.f32.mrb[155].mxu0 }
 0x288   : > { %v2887_v58 = vadd.f32 %v2810_v46, %v7350_v62 }
 0x28a   : > { %v7446_v36 = vadd.f32 %v3100_v49, %v2887_v58 }
 0x28c   : > { %v5208_v45 = vpop.f32.mrb[156].mxu1  ;;  %v5264_v48 = vpop.f32.mrb[156].mxu0 }
 0x28d   : > { %v2822_v34 = vpop.f32.mrb[157].mxu1  ;;  %v3112_v18 = vpop.f32.mrb[157].mxu0 }
 0x28e   : > { %v2889_v38 = vadd.f32 %v2822_v34, %v7354_v53  ;;  %v5209_v51 = vpop.f32.mrb[158].mxu1  ;;  %v5265_v32 = vpop.f32.mrb[158].mxu0 }
 0x28f   : > { %v2891_v10 = vadd.f32 %v5209_v51, %v7357_v54  ;;  %v2825_v31 = vpop.f32.mrb[159].mxu1  ;;  %v3115_v63 = vpop.f32.mrb[159].mxu0 }
 0x290   : > { %v7450_v60 = vadd.f32 %v3112_v18, %v2889_v38  ;;  %v2890_v8 = vadd.f32 %v2825_v31, %v7359_v40  ;;  %v7473_v31 = vld [vmem:[#allocation7] ss:$0 sm:$0xff] }
 0x291   : > { %v7453_v24 = vadd.f32 %v5265_v32, %v2891_v10 }
 0x292   : > { %v7455_v62 = vadd.f32 %v3115_v63, %v2890_v8 }
 0x294   : > { %v5212_v28 = vpop.f32.mrb[160].mxu1  ;;  %v5268_v21 = vpop.f32.mrb[160].mxu0 }
 0x295   : > { %v2893_v15 = vadd.f32 %v5212_v28, %v7363_v22  ;;  %v2837_v50 = vpop.f32.mrb[161].mxu1  ;;  %v3127_v53 = vpop.f32.mrb[161].mxu0 }
 0x296   : > { %v2892_v13 = vadd.f32 %v2837_v50, %v7366_v43  ;;  %v5213_v14 = vpop.f32.mrb[162].mxu1  ;;  %v5269_v54 = vpop.f32.mrb[162].mxu0 }
 0x297   : > { %v7459_v57 = vadd.f32 %v5268_v21, %v2893_v15  ;;  %v2894_v1 = vadd.f32 %v5213_v14, %v7368_v7  ;;  %v2840_v27 = vpop.f32.mrb[163].mxu1  ;;  %v3130_v40 = vpop.f32.mrb[163].mxu0 }
 0x298   : > { %v7462_v56 = vadd.f32 %v3127_v53, %v2892_v13 }
 0x299   : > { %v7464_v59 = vadd.f32 %v5269_v54, %v2894_v1 }
 0x29c   : > { %v5216_v42 = vpop.f32.mrb[164].mxu1  ;;  %v5272_v17 = vpop.f32.mrb[164].mxu0 }
 0x29d   : > { %v2896_v22 = vadd.f32 %v5216_v42, %v7371_v41  ;;  %v2852_v0 = vpop.f32.mrb[165].mxu1  ;;  %v3142_v39 = vpop.f32.mrb[165].mxu0 }
 0x29e   : > { %v5217_v46 = vpop.f32.mrb[166].mxu1  ;;  %v5273_v43 = vpop.f32.mrb[166].mxu0 }
 0x29f   : > { %v7467_v49 = vadd.f32 %v5272_v17, %v2896_v22  ;;  %v2854_v58 = vpop.f32.mrb[167].mxu1  ;;  %v3144_v45 = vpop.f32.mrb[167].mxu0 }
 0x2a0   : > { %v2895_v7 = vadd.f32 %v2854_v58, %v7374_v6 }
 0x2a2   : > { %v7470_v48 = vadd.f32 %v3144_v45, %v2895_v7 }
 0x2a4   : > { %v5284_v34 = vpop.f32.mrb[168].mxu1  ;;  %v5340_v18 = vpop.f32.mrb[168].mxu0 }
 0x2a5   : > { %v3295_v38 = vpop.f32.mrb[169].mxu1  ;;  %v3589_v51 = vpop.f32.mrb[169].mxu0 }
 0x2a6   : > { %v3470_v32 = vadd.f32 %v3295_v38, %v7378_v4  ;;  %v5285_v41 = vpop.f32.mrb[170].mxu1  ;;  %v5341_v10 = vpop.f32.mrb[170].mxu0 }
 0x2a7   : > { %v3472_v63 = vadd.f32 %v5285_v41, %v7381_v35  ;;  %v3298_v8 = vpop.f32.mrb[171].mxu1  ;;  %v3592_v28 = vpop.f32.mrb[171].mxu0 }
 0x2a8   : > { %v3764_v21 = vadd.f32 %v3589_v51, %v3470_v32  ;;  %v3471_v6 = vadd.f32 %v3298_v8, %v7383_v23 }
 0x2a9   : > { %v3766_v15 = vadd.f32 %v5341_v10, %v3472_v63 }
 0x2aa   : > { %v3803_v50 = vadd.f32 %v7473_v31, %v3764_v21  ;;  %v3765_v53 = vadd.f32 %v3592_v28, %v3471_v6 }
 0x2ab   : > { %v3805_v43 = vadd.f32 %v7473_v31, %v3766_v15 }
 0x2ac   : > { %v3804_v13 = vadd.f32 %v7473_v31, %v3765_v53  ;;  %v5288_v14 = vpop.f32.mrb[172].mxu1  ;;  %v5344_v4 = vpop.f32.mrb[172].mxu0  ;;  %v3835_v40 = vmax.f32 %v3803_v50, 0.0 }
 0x2ad   : > { %v3474_v54 = vadd.f32 %v5288_v14, %v7387_v44  ;;  %v3310_v1 = vpop.f32.mrb[173].mxu1  ;;  %v3604_v27 = vpop.f32.mrb[173].mxu0  ;;  %v3837_v18 = vmax.f32 %v3805_v43, 0.0 }
 0x2ae   : > { %v3836_v35 = vmax.f32 %v3804_v13, 0.0  ;;  %v3473_v42 = vadd.f32 %v3310_v1, %v7390_v37  ;;  %v5289_v17 = vpop.f32.mrb[174].mxu1  ;;  %v5345_v22 = vpop.f32.mrb[174].mxu0 }
 0x2af   : > { %v3768_v23 = vadd.f32 %v5344_v4, %v3474_v54  ;;  %v3475_v0 = vadd.f32 %v5289_v17, %v7392_v19  ;;  %v3313_v39 = vpop.f32.mrb[175].mxu1  ;;  %v3607_v46 = vpop.f32.mrb[175].mxu0 }
 0x2b0   : > { %v4538_v58 = vpack.c.bf16 %v3836_v35, %v3835_v40  ;;  %v3767_v45 = vadd.f32 %v3604_v27, %v3473_v42 }
 0x2b1   : > { %v3807_v7 = vadd.f32 %v7473_v31, %v3768_v23  ;;  %v3769_v44 = vadd.f32 %v5345_v22, %v3475_v0 }
 0x2b2   : > { %4539 = vst [vmem:[%s7485_s22] sm:$0xff] %v4538_v58   ;;  %v3806_v37 = vadd.f32 %v7473_v31, %v3767_v45 }
 0x2b3   : > { %v3808_v34 = vadd.f32 %v7473_v31, %v3769_v44  ;;  %v3839_v32 = vmax.f32 %v3807_v7, 0.0 }
 0x2b4   : > { %v3838_v19 = vmax.f32 %v3806_v37, 0.0  ;;  %v5292_v38 = vpop.f32.mrb[176].mxu1  ;;  %v5348_v51 = vpop.f32.mrb[176].mxu0 }
 0x2b5   : > { %v3840_v41 = vmax.f32 %v3808_v34, 0.0  ;;  %v3477_v10 = vadd.f32 %v5292_v38, %v7395_v9  ;;  %v3325_v63 = vpop.f32.mrb[177].mxu1  ;;  %v3619_v8 = vpop.f32.mrb[177].mxu0 }
 0x2b6   : > { %v4543_v28 = vpack.c.bf16 %v3838_v19, %v3837_v18  ;;  %v5293_v21 = vpop.f32.mrb[178].mxu1  ;;  %v5349_v6 = vpop.f32.mrb[178].mxu0 }
 0x2b7   : > { %v4548_v15 = vpack.c.bf16 %v3840_v41, %v3839_v32  ;;  %v3771_v50 = vadd.f32 %v5348_v51, %v3477_v10  ;;  %v3327_v53 = vpop.f32.mrb[179].mxu1  ;;  %v3621_v13 = vpop.f32.mrb[179].mxu0 }
 0x2b8   : > { %4615 = vst [vmem:[%s7485_s22 + $0x8] sm:$0xff] %v4543_v28   ;;  %v3476_v14 = vadd.f32 %v3327_v53, %v7398_v16 }
 0x2b9   : > { %4616 = vst [vmem:[%s7485_s22 + $0x10] sm:$0xff] %v4548_v15   ;;  %v3810_v4 = vadd.f32 %v7473_v31, %v3771_v50 }
 0x2ba   : > { %v3770_v54 = vadd.f32 %v3621_v13, %v3476_v14 }
 0x2bb   : > { %v3842_v42 = vmax.f32 %v3810_v4, 0.0 }
 0x2bc   : > { %v3809_v1 = vadd.f32 %v7473_v31, %v3770_v54  ;;  %v5296_v27 = vpop.f32.mrb[180].mxu1  ;;  %v5352_v9 = vpop.f32.mrb[180].mxu0 }
 0x2bd   : > { %v3339_v40 = vpop.f32.mrb[181].mxu1  ;;  %v3633_v35 = vpop.f32.mrb[181].mxu0 }
 0x2be   : > { %v3841_v17 = vmax.f32 %v3809_v1, 0.0  ;;  %v3478_v22 = vadd.f32 %v3339_v40, %v7402_v61  ;;  %v5297_v23 = vpop.f32.mrb[182].mxu1  ;;  %v5353_v0 = vpop.f32.mrb[182].mxu0 }
 0x2bf   : > { %v3480_v39 = vadd.f32 %v5297_v23, %v7405_v26  ;;  %v3342_v16 = vpop.f32.mrb[183].mxu1  ;;  %v3636_v46 = vpop.f32.mrb[183].mxu0 }
 0x2c0   : > { %v4553_v43 = vpack.c.bf16 %v3842_v42, %v3841_v17  ;;  %v3772_v58 = vadd.f32 %v3633_v35, %v3478_v22  ;;  %v3479_v45 = vadd.f32 %v3342_v16, %v7407_v33 }
 0x2c1   : > { %v3774_v7 = vadd.f32 %v5353_v0, %v3480_v39 }
 0x2c2   : > { %4617 = vst [vmem:[%s7485_s22 + $0x18] sm:$0xff] %v4553_v43   ;;  %v3811_v44 = vadd.f32 %v7473_v31, %v3772_v58  ;;  %v3773_v37 = vadd.f32 %v3636_v46, %v3479_v45 }
 0x2c3   : > { %v3813_v6 = vadd.f32 %v7473_v31, %v3774_v7 }
 0x2c4   : > { %v3812_v34 = vadd.f32 %v7473_v31, %v3773_v37  ;;  %v5300_v18 = vpop.f32.mrb[184].mxu1  ;;  %v5356_v19 = vpop.f32.mrb[184].mxu0  ;;  %v3843_v51 = vmax.f32 %v3811_v44, 0.0 }
 0x2c5   : > { %v3482_v61 = vadd.f32 %v5300_v18, %v7411_v2  ;;  %v3354_v38 = vpop.f32.mrb[185].mxu1  ;;  %v3648_v26 = vpop.f32.mrb[185].mxu0 }
 0x2c6   : > { %v3844_v32 = vmax.f32 %v3812_v34, 0.0  ;;  %v3481_v41 = vadd.f32 %v3354_v38, %v7414_v3  ;;  %v5301_v10 = vpop.f32.mrb[186].mxu1  ;;  %v5357_v33 = vpop.f32.mrb[186].mxu0  ;;  %v3845_v3 = vmax.f32 %v3813_v6, 0.0 }
 0x2c7   : > { %v3776_v63 = vadd.f32 %v5356_v19, %v3482_v61  ;;  %v3483_v8 = vadd.f32 %v5301_v10, %v7416_v29  ;;  %v3357_v28 = vpop.f32.mrb[187].mxu1  ;;  %v3651_v21 = vpop.f32.mrb[187].mxu0 }
 0x2c8   : > { %v4558_v15 = vpack.c.bf16 %v3844_v32, %v3843_v51  ;;  %v3775_v50 = vadd.f32 %v3648_v26, %v3481_v41 }
 0x2c9   : > { %v3815_v2 = vadd.f32 %v7473_v31, %v3776_v63  ;;  %v3777_v53 = vadd.f32 %v5357_v33, %v3483_v8 }
 0x2ca   : > { %4618 = vst [vmem:[%s7485_s22 + $0x20] sm:$0xff] %v4558_v15   ;;  %v3814_v13 = vadd.f32 %v7473_v31, %v3775_v50 }
 0x2cb   : > { %v3816_v14 = vadd.f32 %v7473_v31, %v3777_v53  ;;  %v3847_v1 = vmax.f32 %v3815_v2, 0.0 }
 0x2cc   : > { %v3846_v4 = vmax.f32 %v3814_v13, 0.0  ;;  %v5304_v54 = vpop.f32.mrb[188].mxu1  ;;  %v5360_v29 = vpop.f32.mrb[188].mxu0 }
 0x2cd   : > { %v3848_v27 = vmax.f32 %v3816_v14, 0.0  ;;  %v3485_v9 = vadd.f32 %v5304_v54, %v7419_v47  ;;  %v3369_v40 = vpop.f32.mrb[189].mxu1  ;;  %v3663_v35 = vpop.f32.mrb[189].mxu0 }
 0x2ce   : > { %v4563_v42 = vpack.c.bf16 %v3846_v4, %v3845_v3  ;;  %v5305_v17 = vpop.f32.mrb[190].mxu1  ;;  %v5361_v22 = vpop.f32.mrb[190].mxu0 }
 0x2cf   : > { %v4568_v23 = vpack.c.bf16 %v3848_v27, %v3847_v1  ;;  %v3779_v0 = vadd.f32 %v5360_v29, %v3485_v9  ;;  %v3371_v39 = vpop.f32.mrb[191].mxu1  ;;  %v3665_v16 = vpop.f32.mrb[191].mxu0 }
 0x2d0   : > { %4619 = vst [vmem:[%s7485_s22 + $0x28] sm:$0xff] %v4563_v42   ;;  %v3484_v46 = vadd.f32 %v3371_v39, %v7422_v30 }
 0x2d1   : > { %4620 = vst [vmem:[%s7485_s22 + $0x30] sm:$0xff] %v4568_v23   ;;  %v3818_v43 = vadd.f32 %v7473_v31, %v3779_v0 }
 0x2d2   : > { %v3778_v58 = vadd.f32 %v3665_v16, %v3484_v46 }
 0x2d3   : > { %v3850_v34 = vmax.f32 %v3818_v43, 0.0 }
 0x2d4   : > { %v3817_v45 = vadd.f32 %v7473_v31, %v3778_v58  ;;  %v5308_v7 = vpop.f32.mrb[192].mxu1  ;;  %v5364_v47 = vpop.f32.mrb[192].mxu0 }
 0x2d5   : > { %v3383_v44 = vpop.f32.mrb[193].mxu1  ;;  %v3677_v37 = vpop.f32.mrb[193].mxu0 }
 0x2d6   : > { %v3849_v18 = vmax.f32 %v3817_v45, 0.0  ;;  %v3486_v19 = vadd.f32 %v3383_v44, %v7426_v55  ;;  %v5309_v61 = vpop.f32.mrb[194].mxu1  ;;  %v5365_v38 = vpop.f32.mrb[194].mxu0 }
 0x2d7   : > { %v3488_v26 = vadd.f32 %v5309_v61, %v7429_v11  ;;  %v3386_v30 = vpop.f32.mrb[195].mxu1  ;;  %v3680_v51 = vpop.f32.mrb[195].mxu0 }
 0x2d8   : > { %v4573_v32 = vpack.c.bf16 %v3850_v34, %v3849_v18  ;;  %v3780_v41 = vadd.f32 %v3677_v37, %v3486_v19  ;;  %v3487_v10 = vadd.f32 %v3386_v30, %v7431_v12 }
 0x2d9   : > { %v3782_v33 = vadd.f32 %v5365_v38, %v3488_v26 }
 0x2da   : > { %4621 = vst [vmem:[%s7485_s22 + $0x38] sm:$0xff] %v4573_v32   ;;  %v3819_v63 = vadd.f32 %v7473_v31, %v3780_v41  ;;  %v3781_v8 = vadd.f32 %v3680_v51, %v3487_v10 }
 0x2db   : > { %v3821_v29 = vadd.f32 %v7473_v31, %v3782_v33 }
 0x2dc   : > { %v3820_v28 = vadd.f32 %v7473_v31, %v3781_v8  ;;  %v5312_v21 = vpop.f32.mrb[196].mxu1  ;;  %v5368_v6 = vpop.f32.mrb[196].mxu0  ;;  %v3851_v50 = vmax.f32 %v3819_v63, 0.0 }
 0x2dd   : > { %v3490_v55 = vadd.f32 %v5312_v21, %v7435_v52  ;;  %v3398_v15 = vpop.f32.mrb[197].mxu1  ;;  %v3692_v11 = vpop.f32.mrb[197].mxu0 }
 0x2de   : > { %v3852_v2 = vmax.f32 %v3820_v28, 0.0  ;;  %v3489_v53 = vadd.f32 %v3398_v15, %v7438_v5  ;;  %v5313_v13 = vpop.f32.mrb[198].mxu1  ;;  %v5369_v12 = vpop.f32.mrb[198].mxu0  ;;  %v3853_v5 = vmax.f32 %v3821_v29, 0.0 }
 0x2df   : > { %v3784_v14 = vadd.f32 %v5368_v6, %v3490_v55  ;;  %v3491_v3 = vadd.f32 %v5313_v13, %v7440_v20  ;;  %v3401_v4 = vpop.f32.mrb[199].mxu1  ;;  %v3695_v54 = vpop.f32.mrb[199].mxu0 }
 0x2e0   : > { %v4578_v1 = vpack.c.bf16 %v3852_v2, %v3851_v50  ;;  %v3783_v27 = vadd.f32 %v3692_v11, %v3489_v53 }
 0x2e1   : > { %v3823_v52 = vadd.f32 %v7473_v31, %v3784_v14  ;;  %v3785_v9 = vadd.f32 %v5369_v12, %v3491_v3 }
 0x2e2   : > { %4622 = vst [vmem:[%s7485_s22 + $0x40] sm:$0xff] %v4578_v1   ;;  %v3822_v40 = vadd.f32 %v7473_v31, %v3783_v27 }
 0x2e3   : > { %v3824_v35 = vadd.f32 %v7473_v31, %v3785_v9  ;;  %v3855_v22 = vmax.f32 %v3823_v52, 0.0 }
 0x2e4   : > { %v3854_v42 = vmax.f32 %v3822_v40, 0.0  ;;  %v5316_v17 = vpop.f32.mrb[200].mxu1  ;;  %v5372_v20 = vpop.f32.mrb[200].mxu0 }
 0x2e5   : > { %v3856_v23 = vmax.f32 %v3824_v35, 0.0  ;;  %v3493_v0 = vadd.f32 %v5316_v17, %v7443_v25  ;;  %v3413_v39 = vpop.f32.mrb[201].mxu1  ;;  %v3707_v16 = vpop.f32.mrb[201].mxu0 }
 0x2e6   : > { %v4583_v46 = vpack.c.bf16 %v3854_v42, %v3853_v5  ;;  %v5317_v43 = vpop.f32.mrb[202].mxu1  ;;  %v5373_v58 = vpop.f32.mrb[202].mxu0 }
 0x2e7   : > { %v4588_v45 = vpack.c.bf16 %v3856_v23, %v3855_v22  ;;  %v3787_v7 = vadd.f32 %v5372_v20, %v3493_v0  ;;  %v3415_v47 = vpop.f32.mrb[203].mxu1  ;;  %v3709_v44 = vpop.f32.mrb[203].mxu0 }
 0x2e8   : > { %4623 = vst [vmem:[%s7485_s22 + $0x48] sm:$0xff] %v4583_v46   ;;  %v3492_v37 = vadd.f32 %v3415_v47, %v7446_v36 }
 0x2e9   : > { %4624 = vst [vmem:[%s7485_s22 + $0x50] sm:$0xff] %v4588_v45   ;;  %v3826_v34 = vadd.f32 %v7473_v31, %v3787_v7 }
 0x2ea   : > { %v3786_v18 = vadd.f32 %v3709_v44, %v3492_v37 }
 0x2eb   : > { %v3858_v30 = vmax.f32 %v3826_v34, 0.0 }
 0x2ec   : > { %v3825_v19 = vadd.f32 %v7473_v31, %v3786_v18  ;;  %v5320_v61 = vpop.f32.mrb[204].mxu1  ;;  %v5376_v25 = vpop.f32.mrb[204].mxu0 }
 0x2ed   : > { %v3427_v38 = vpop.f32.mrb[205].mxu1  ;;  %v3721_v26 = vpop.f32.mrb[205].mxu0 }
 0x2ee   : > { %v3857_v51 = vmax.f32 %v3825_v19, 0.0  ;;  %v3494_v32 = vadd.f32 %v3427_v38, %v7450_v60  ;;  %v5321_v41 = vpop.f32.mrb[206].mxu1  ;;  %v5377_v10 = vpop.f32.mrb[206].mxu0 }
 0x2ef   : > { %v3496_v33 = vadd.f32 %v5321_v41, %v7453_v24  ;;  %v3430_v36 = vpop.f32.mrb[207].mxu1  ;;  %v3724_v63 = vpop.f32.mrb[207].mxu0 }
 0x2f0   : > { %v4593_v8 = vpack.c.bf16 %v3858_v30, %v3857_v51  ;;  %v3788_v28 = vadd.f32 %v3721_v26, %v3494_v32  ;;  %v3495_v21 = vadd.f32 %v3430_v36, %v7455_v62 }
 0x2f1   : > { %v3790_v6 = vadd.f32 %v5377_v10, %v3496_v33 }
 0x2f2   : > { %4625 = vst [vmem:[%s7485_s22 + $0x58] sm:$0xff] %v4593_v8   ;;  %v3827_v55 = vadd.f32 %v7473_v31, %v3788_v28  ;;  %v3789_v15 = vadd.f32 %v3724_v63, %v3495_v21 }
 0x2f3   : > { %v3829_v27 = vadd.f32 %v7473_v31, %v3790_v6 }
 0x2f4   : > { %v3828_v11 = vadd.f32 %v7473_v31, %v3789_v15  ;;  %v5324_v50 = vpop.f32.mrb[208].mxu1  ;;  %v5380_v2 = vpop.f32.mrb[208].mxu0  ;;  %v3859_v13 = vmax.f32 %v3827_v55, 0.0 }
 0x2f5   : > { %v3498_v60 = vadd.f32 %v5324_v50, %v7459_v57  ;;  %v3442_v53 = vpop.f32.mrb[209].mxu1  ;;  %v3736_v24 = vpop.f32.mrb[209].mxu0 }
 0x2f6   : > { %v3860_v12 = vmax.f32 %v3828_v11, 0.0  ;;  %v3497_v14 = vadd.f32 %v3442_v53, %v7462_v56  ;;  %v5325_v3 = vpop.f32.mrb[210].mxu1  ;;  %v5381_v62 = vpop.f32.mrb[210].mxu0  ;;  %v3861_v56 = vmax.f32 %v3829_v27, 0.0 }
 0x2f7   : > { %v3792_v4 = vadd.f32 %v5380_v2, %v3498_v60  ;;  %v3499_v54 = vadd.f32 %v5325_v3, %v7464_v59  ;;  %v3445_v29 = vpop.f32.mrb[211].mxu1  ;;  %v3739_v1 = vpop.f32.mrb[211].mxu0 }
 0x2f8   : > { %v4598_v52 = vpack.c.bf16 %v3860_v12, %v3859_v13  ;;  %v3791_v9 = vadd.f32 %v3736_v24, %v3497_v14 }
 0x2f9   : > { %v3831_v57 = vadd.f32 %v7473_v31, %v3792_v4  ;;  %v3793_v40 = vadd.f32 %v5381_v62, %v3499_v54 }
 0x2fa   : > { %4626 = vst [vmem:[%s7485_s22 + $0x60] sm:$0xff] %v4598_v52   ;;  %v3830_v35 = vadd.f32 %v7473_v31, %v3791_v9 }
 0x2fb   : > { %v3832_v5 = vadd.f32 %v7473_v31, %v3793_v40  ;;  %v3863_v20 = vmax.f32 %v3831_v57, 0.0 }
 0x2fc   : > { %v3862_v42 = vmax.f32 %v3830_v35, 0.0  ;;  %v5328_v17 = vpop.f32.mrb[212].mxu1  ;;  %v5384_v59 = vpop.f32.mrb[212].mxu0 }
 0x2fd   : > { %v3864_v22 = vmax.f32 %v3832_v5, 0.0  ;;  %v3501_v23 = vadd.f32 %v5328_v17, %v7467_v49  ;;  %v3457_v0 = vpop.f32.mrb[213].mxu1  ;;  %v3751_v39 = vpop.f32.mrb[213].mxu0 }
 0x2fe   : > { %v4603_v16 = vpack.c.bf16 %v3862_v42, %v3861_v56  ;;  %v5329_v46 = vpop.f32.mrb[214].mxu1  ;;  %v5385_v43 = vpop.f32.mrb[214].mxu0 }
 0x2ff   : > { %v4608_v58 = vpack.c.bf16 %v3864_v22, %v3863_v20  ;;  %v3795_v45 = vadd.f32 %v5384_v59, %v3501_v23  ;;  %v3459_v7 = vpop.f32.mrb[215].mxu1  ;;  %v3753_v47 = vpop.f32.mrb[215].mxu0 }
 0x300   : > { %4627 = vst [vmem:[%s7485_s22 + $0x68] sm:$0xff] %v4603_v16   ;;  %v3500_v44 = vadd.f32 %v3459_v7, %v7470_v48 }
 0x301   : > { %4628 = vst [vmem:[%s7485_s22 + $0x70] sm:$0xff] %v4608_v58   ;;  %v3834_v49 = vadd.f32 %v7473_v31, %v3795_v45 }
 0x302   : > { %v3794_v37 = vadd.f32 %v3753_v47, %v3500_v44 }
 0x303   : > { %v3866_v18 = vmax.f32 %v3834_v49, 0.0 }
 0x304   : > { %v3833_v34 = vadd.f32 %v7473_v31, %v3794_v37 }
 0x306   : > { %v3865_v19 = vmax.f32 %v3833_v34, 0.0 }
 0x308   : > { %v4613_v48 = vpack.c.bf16 %v3866_v18, %v3865_v19 }
 0x30a   : > { %4629 = vst [vmem:[%s7485_s22 + $0x78] sm:$0xff] %v4613_v48  }
 0x30b   : > { %5674 = shalt.err (!%p5671_p2)
}
 0x30c   : > { %s5675_s28 = scalar_lea.hbm %s7561_s26, 2048  ;;  %s5679_s8 = scalar_lea.hbm %s7616_s3, 4096 }
 0x30d   : > { %p5676_p0 = scmp.ne.s32.totalorder %s7561_s26, %s5675_s28  ;;  %p5680_p6 = scmp.lt.u32.totalorder %s7561_s26, %s7616_s3 }
 0x30e   : > { %p5681_p7 = scmp.lt.u32.totalorder %s5679_s8, %s5675_s28  ;;  %p5683_p8 = scmp.lt.u32.totalorder %s5675_s28, %s7561_s26 }
 0x30f   : > { %p5677_p4 = pnand %p5676_p0, %p7907_p12 }
 0x310   : > { %p5682_p11 = por %p5681_p7, %p5680_p6 }
 0x311   : > { %p5678_p13 = pneg %p5677_p4 }
 0x312   : > { %p5684_p1 = por %p5683_p8, %p5682_p11 }
 0x314   : > { %p5685_p10 = pnand %p5684_p1, %p5678_p13 }
 0x316   : > { %5688 = shalt.err (!%p5685_p10)
}
 0x317   : > { %s5755_s22 = smov 64   ;;  %s5756_s24 = smov 4  }
 0x318   : > { %5407 = dma.vmem_to_hbm [thread:$0]  (%p7907_p12), %s7563_s11, 2048, %s7561_s26, %s4028_s10, %s5755_s22, %s5755_s22, %s5756_s24  }
 0x319 PF: > { %s4059_s18 = sand.u32 1, %s5727_s12   ;;  %p7908_p3 = scmp.ne.s32.totalorder %s7721_s23, 0 }
 0x31a   : > { %p7909_p5 = scmp.ge.s32.totalorder %s5747_s17, 2  ;;  %s4060_s5 = scalar_lea.sflag [#allocation4], %s4059_s18 }
 0x31c   : > { %p5421_p9 = pnand %p7909_p5, %p7908_p3 }
 0x31e   : > { %5722 = dma.done.wait (!%p5421_p9), %s4060_s5, 2048  }
 0x31f   : > { %5724 = vsyncadd (!%p5421_p9), %s4060_s5, 4294965248  ;;  %s20_s17 = sadd.s32 1, %s5747_s17   ;;  %s7910_s12 = smov %s5731_s13 }
 0x320   : > { %p17_p2 = scmp.ge.s32.totalorder %s20_s17, 4   ;;  %s7911_s13 = smov %s5735_s14 }
 0x321   : > { %s7912_s14 = smov %s5926_s6  ;;  %s7913_s15 = smov %s5743_s16 }
 0x322   : > { %s7914_s16 = smov %s7916_s25  ;;  %19 = sbr.rel (!%p17_p2) target bundleno = 7 (0x7), region = 93 }
 0x329   :  { %4065 = vsyncpa [#allocation3], 1 }
 0x32a   :  { %4067 = vsyncpa [#allocation3 + $0x1], 1 }
 0x32b   :  { %4068 = vsyncpa [#allocation6], 1 }
 0x32c   :  { %4069 = vsyncpa [#allocation4], 1 }
 0x32d   :  { %4071 = vsyncpa [#allocation4 + $0x1], 1 }

</bundles_post_ra>
